<compile_context>
chip_gen: v7x
topology: tpu7x:2x2x1
jax: 0.10.0
libtpu: 0.0.40
codegen_flags: <defaults>
</compile_context>

<pallas_src>
import functools

import jax
import jax.numpy as jnp
from jax.experimental import pallas as pl
from jax.experimental.pallas import tpu as pltpu

EPS = 1e-5


# ----------------------------------------------------------------------------- kernels


def _matmul_and_stats(a, w_ref, y_ref, stats_ref):
    """a @ w with f32 accumulation; also emit per-tile per-channel sum / sumsq."""
    c = w_ref.shape[1]
    y = jnp.dot(a, w_ref[...], preferred_element_type=jnp.float32)
    y_ref[...] = y
    ssum = jnp.sum(y, axis=0, keepdims=True)          # (1, C)
    ssq = jnp.sum(y * y, axis=0, keepdims=True)       # (1, C)
    stats_ref[...] = jnp.concatenate([ssum, ssq], axis=0).reshape(1, 2, c)


def _conv1x1_stats_kernel(x_ref, w_ref, y_ref, stats_ref):
    # stage 1: 1x1 conv (channel reduce) on raw input + BN1 partial stats.
    a = x_ref[...].astype(w_ref.dtype)
    _matmul_and_stats(a, w_ref, y_ref, stats_ref)


def _bn_relu_conv1x1_stats_kernel(x_ref, s_ref, t_ref, w_ref, y_ref, stats_ref):
    # stage 3: BN2 (fused scale/shift) + ReLU in f32, then 1x1 expand conv + stats.
    a = jnp.maximum(x_ref[...].astype(jnp.float32) * s_ref[...] + t_ref[...], 0.0)
    a = a.astype(w_ref.dtype)
    _matmul_and_stats(a, w_ref, y_ref, stats_ref)


def _bn_relu_conv3x3_stats_kernel(y1_ref, s_ref, t_ref, w_ref, y2_ref, stats_ref,
                                  hpad_ref, patch_ref):
    # stage 2: BN1+ReLU -> 3x3 conv (stride 1, pad 1) as a single K-stacked matmul,
    # processed one image per grid step, + BN2 partial stats.
    _, H, W, C = y1_ref.shape
    K9 = 9 * C
    cdt = w_ref.dtype

    # BN affine + ReLU in f32, single cast to the MXU operand dtype.
    s = s_ref[...].reshape(1, 1, C)
    t = t_ref[...].reshape(1, 1, C)
    a = jnp.maximum(y1_ref[0].astype(jnp.float32) * s + t, 0.0).astype(cdt)  # (H, W, C)

    # H-halo scratch: zero only the two halo rows (interior is fully overwritten).
    zrow = jnp.zeros((1, W, C), cdt)
    hpad_ref[pl.ds(0, 1)] = zrow
    hpad_ref[pl.ds(H + 1, 1)] = zrow
    hpad_ref[pl.ds(1, H)] = a

    # im2col with K-stacking: patch[..., tap*C:(tap+1)*C] = input shifted by (ky-1, kx-1).
    # ky shifts are leading-dim slices of the halo scratch (cheap); kx shifts move data
    # along W with explicit zero border columns.
    zcol = jnp.zeros((H, 1, C), cdt)
    for ky in range(3):
        rows = hpad_ref[pl.ds(ky, H)]                                  # (H, W, C)
        for kx in range(3):
            if kx == 0:
                shifted = jnp.concatenate([zcol, rows[:, :W - 1, :]], axis=1)
            elif kx == 1:
                shifted = rows
            else:
                shifted = jnp.concatenate([rows[:, 1:, :], zcol], axis=1)
            tap = ky * 3 + kx
            patch_ref[:, :, tap * C:(tap + 1) * C] = shifted

    # One MXU matmul with contraction depth K = 9*C (instead of nine K=C matmuls).
    p2d = patch_ref[...].reshape(H * W, K9)
    y2 = jnp.dot(p2d, w_ref[...], preferred_element_type=jnp.float32)  # (H*W, C) f32
    y2_ref[0] = y2

    ssum = jnp.sum(y2, axis=0, keepdims=True)
    ssq = jnp.sum(y2 * y2, axis=0, keepdims=True)
    stats_ref[...] = jnp.concatenate([ssum, ssq], axis=0).reshape(1, 2, C)


def _bn_add_relu_kernel(y_ref, s_ref, t_ref, r_ref, o_ref):
    # stage 4: BN3 (fused scale/shift) + identity residual + ReLU; lane-dense output.
    out = y_ref[...] * s_ref[...] + t_ref[...] + r_ref[...].astype(jnp.float32)
    o_ref[...] = jnp.maximum(out, 0.0).astype(o_ref.dtype)


# ----------------------------------------------------------------------------- wrappers


_VMEM_LIMIT = 64 * 1024 * 1024  # within physical VMEM on v5e/v6e (128 MiB) and v7x (64 MiB)


def _row_tile(m):
    for t in (256, 128, 64, 32, 16, 8):
        if m % t == 0:
            return t
    return m


def _conv1x1_stats(x2d, w):
    M, Cin = x2d.shape
    Cout = w.shape[1]
    TM = _row_tile(M)
    G = M // TM
    return pl.pallas_call(
        _conv1x1_stats_kernel,
        grid=(G,),
        in_specs=[pl.BlockSpec((TM, Cin), lambda i: (i, 0)),
                  pl.BlockSpec((Cin, Cout), lambda i: (0, 0))],
        out_specs=[pl.BlockSpec((TM, Cout), lambda i: (i, 0)),
                   pl.BlockSpec((1, 2, Cout), lambda i: (i, 0, 0))],
        out_shape=[jax.ShapeDtypeStruct((M, Cout), jnp.float32),
                   jax.ShapeDtypeStruct((G, 2, Cout), jnp.float32)],
        compiler_params=pltpu.CompilerParams(
            dimension_semantics=("parallel",), vmem_limit_bytes=_VMEM_LIMIT),
    )(x2d, w)


def _bn_relu_conv1x1_stats(x2d, s, t, w):
    M, Cin = x2d.shape
    Cout = w.shape[1]
    TM = _row_tile(M)
    G = M // TM
    return pl.pallas_call(
        _bn_relu_conv1x1_stats_kernel,
        grid=(G,),
        in_specs=[pl.BlockSpec((TM, Cin), lambda i: (i, 0)),
                  pl.BlockSpec((1, Cin), lambda i: (0, 0)),
                  pl.BlockSpec((1, Cin), lambda i: (0, 0)),
                  pl.BlockSpec((Cin, Cout), lambda i: (0, 0))],
        out_specs=[pl.BlockSpec((TM, Cout), lambda i: (i, 0)),
                   pl.BlockSpec((1, 2, Cout), lambda i: (i, 0, 0))],
        out_shape=[jax.ShapeDtypeStruct((M, Cout), jnp.float32),
                   jax.ShapeDtypeStruct((G, 2, Cout), jnp.float32)],
        compiler_params=pltpu.CompilerParams(
            dimension_semantics=("parallel",), vmem_limit_bytes=_VMEM_LIMIT),
    )(x2d, s, t, w)


def _conv3x3_stats(y1_img, s, t, w9):
    N, H, W, C = y1_img.shape
    K9 = 9 * C
    cdt = w9.dtype
    return pl.pallas_call(
        _bn_relu_conv3x3_stats_kernel,
        grid=(N,),
        in_specs=[pl.BlockSpec((1, H, W, C), lambda n: (n, 0, 0, 0)),
                  pl.BlockSpec((1, C), lambda n: (0, 0)),
                  pl.BlockSpec((1, C), lambda n: (0, 0)),
                  pl.BlockSpec((K9, C), lambda n: (0, 0))],
        out_specs=[pl.BlockSpec((1, H * W, C), lambda n: (n, 0, 0)),
                   pl.BlockSpec((1, 2, C), lambda n: (n, 0, 0))],
        out_shape=[jax.ShapeDtypeStruct((N, H * W, C), jnp.float32),
                   jax.ShapeDtypeStruct((N, 2, C), jnp.float32)],
        scratch_shapes=[pltpu.VMEM((H + 2, W, C), cdt),      # H-halo staging
                        pltpu.VMEM((H, W, K9), cdt)],        # K-stacked im2col patches
        compiler_params=pltpu.CompilerParams(
            dimension_semantics=("parallel",), vmem_limit_bytes=_VMEM_LIMIT),
    )(y1_img, s, t, w9)


def _bn_add_relu(y, s, t, res):
    M, C = y.shape
    TM = _row_tile(M)
    G = M // TM
    return pl.pallas_call(
        _bn_add_relu_kernel,
        grid=(G,),
        in_specs=[pl.BlockSpec((TM, C), lambda i: (i, 0)),
                  pl.BlockSpec((1, C), lambda i: (0, 0)),
                  pl.BlockSpec((1, C), lambda i: (0, 0)),
                  pl.BlockSpec((TM, C), lambda i: (i, 0))],
        out_specs=pl.BlockSpec((TM, C), lambda i: (i, 0)),
        out_shape=jax.ShapeDtypeStruct((M, C), jnp.float32),
        compiler_params=pltpu.CompilerParams(
            dimension_semantics=("parallel",), vmem_limit_bytes=_VMEM_LIMIT),
    )(y, s, t, res)


def _finalize_bn(partial, gamma, beta, count):
    # O(C) epilogue math (negligible vs the conv kernels): reduce per-tile partial
    # stats and fold BN into a fused per-channel scale/shift (one mul-add per element
    # in the consuming kernel).  var = E[x^2] - E[x]^2, biased (training-mode BN).
    s = jnp.sum(partial, axis=0)                       # (2, C)
    mean = s[0] / count
    var = s[1] / count - mean * mean
    scale = gamma.astype(jnp.float32) * jax.lax.rsqrt(var + EPS)
    shift = beta.astype(jnp.float32) - mean * scale
    return scale.reshape(1, -1), shift.reshape(1, -1)


@functools.partial(jax.jit, static_argnames=("compute_dtype",))
def bottleneck_forward(x_nchw, w1, w2, w3, g1, b1, g2, b2, g3, b3,
                       *, compute_dtype=jnp.bfloat16):
    """Bottleneck forward, NCHW in / NCHW out (stride=1, downsample=None)."""
    N, Cin, H, W = x_nchw.shape
    Cmid = w1.shape[0]          # planes
    Cout = w3.shape[0]          # planes * expansion
    assert Cout == Cin, "identity skip requires inplanes == planes * 4"
    M = N * H * W

    # Layout plumbing at the boundary: NCHW -> NHWC -> (rows, channels).
    x2d = jnp.transpose(x_nchw, (0, 2, 3, 1)).reshape(M, Cin).astype(jnp.float32)

    # PyTorch OIHW weights -> matmul layouts (MXU operands in compute_dtype).
    w1m = jnp.transpose(w1.reshape(Cmid, Cin), (1, 0)).astype(compute_dtype)       # (Cin, Cmid)
    w2m = jnp.transpose(w2, (2, 3, 1, 0)).reshape(9 * Cmid, Cmid).astype(compute_dtype)
    w3m = jnp.transpose(w3.reshape(Cout, Cmid), (1, 0)).astype(compute_dtype)      # (Cmid, Cout)

    # stage 1: 1x1 reduce conv + BN1 partial stats
    y1, p1 = _conv1x1_stats(x2d.astype(compute_dtype), w1m)
    s1, t1 = _finalize_bn(p1, g1, b1, M)

    # stage 2: BN1+ReLU -> 3x3 conv (im2col, K=9*Cmid) + BN2 partial stats
    y2, p2 = _conv3x3_stats(y1.reshape(N, H, W, Cmid), s1, t1, w2m)
    s2, t2 = _finalize_bn(p2, g2, b2, M)

    # stage 3: BN2+ReLU -> 1x1 expand conv + BN3 partial stats
    y3, p3 = _bn_relu_conv1x1_stats(y2.reshape(M, Cmid), s2, t2, w3m)
    s3, t3 = _finalize_bn(p3, g3, b3, M)

    # stage 4: BN3 + identity residual + ReLU (lane-dense, Cout channels)
    out2d = _bn_add_relu(y3, s3, t3, x2d)

    return jnp.transpose(out2d.reshape(N, H, W, Cout), (0, 3, 1, 2))


# ----------------------------------------------------------------------------- reference


def bottleneck_reference(x, w1, w2, w3, g1, b1, g2, b2, g3, b3):
    """Pure-JAX reference (lax.conv, full f32) used only for correctness checking."""
    def conv(inp, w, pad):
        return jax.lax.conv_general_dilated(
            inp, w, window_strides=(1, 1), padding=pad,
            dimension_numbers=("NCHW", "OIHW", "NCHW"),
            precision=jax.lax.Precision.HIGHEST)

    def bn(y, g, b):
        mean = jnp.mean(y, axis=(0, 2, 3), keepdims=True)
        var = jnp.mean((y - mean) ** 2, axis=(0, 2, 3), keepdims=True)
        return ((y - mean) * jax.lax.rsqrt(var + EPS)
                * g.reshape(1, -1, 1, 1) + b.reshape(1, -1, 1, 1))

    out = jnp.maximum(bn(conv(x, w1, "VALID"), g1, b1), 0.0)
    out = jnp.maximum(bn(conv(out, w2, "SAME"), g2, b2), 0.0)
    out = bn(conv(out, w3, "VALID"), g3, b3)
    return jnp.maximum(out + x, 0.0)


# ----------------------------------------------------------------------------- main


if __name__ == "__main__":
    # Small shapes consistent with Bottleneck(inplanes=128, planes=32, stride=1).
    N, planes, H, W = 2, 32, 16, 16
    Cin = planes * 4

    key = jax.random.PRNGKey(0)
    ks = jax.random.split(key, 10)
    x = jax.random.normal(ks[0], (N, Cin, H, W), jnp.float32)
    w1 = jax.random.normal(ks[1], (planes, Cin, 1, 1), jnp.float32) * (2.0 / Cin) ** 0.5
    w2 = jax.random.normal(ks[2], (planes, planes, 3, 3), jnp.float32) * (2.0 / (9 * planes)) ** 0.5
    w3 = jax.random.normal(ks[3], (planes * 4, planes, 1, 1), jnp.float32) * (2.0 / planes) ** 0.5
    g1 = 1.0 + 0.1 * jax.random.normal(ks[4], (planes,), jnp.float32)
    b1 = 0.1 * jax.random.normal(ks[5], (planes,), jnp.float32)
    g2 = 1.0 + 0.1 * jax.random.normal(ks[6], (planes,), jnp.float32)
    b2 = 0.1 * jax.random.normal(ks[7], (planes,), jnp.float32)
    g3 = 1.0 + 0.1 * jax.random.normal(ks[8], (planes * 4,), jnp.float32)
    b3 = 0.1 * jax.random.normal(ks[9], (planes * 4,), jnp.float32)

    ref = jax.block_until_ready(
        bottleneck_reference(x, w1, w2, w3, g1, b1, g2, b2, g3, b3))

    # f32 MXU-operand path: near-exact vs the f32 reference.
    out_f32 = jax.block_until_ready(
        bottleneck_forward(x, w1, w2, w3, g1, b1, g2, b2, g3, b3,
                           compute_dtype=jnp.float32))
    # bf16 MXU-operand / f32-accumulation path (performance configuration).
    out_bf16 = jax.block_until_ready(
        bottleneck_forward(x, w1, w2, w3, g1, b1, g2, b2, g3, b3,
                           compute_dtype=jnp.bfloat16))

    assert out_f32.shape == (N, Cin, H, W)
    assert out_bf16.shape == (N, Cin, H, W)

    scale = jnp.max(jnp.abs(ref)) + 1e-6
    err_f32 = float(jnp.max(jnp.abs(out_f32 - ref)) / scale)
    err_bf16 = float(jnp.max(jnp.abs(out_bf16 - ref)) / scale)
    if err_f32 > 1e-4:
        raise AssertionError(f"f32 path mismatch vs reference: rel-max-err={err_f32:.3e}")
    if err_bf16 > 3e-2:
        raise AssertionError(f"bf16 path mismatch vs reference: rel-max-err={err_bf16:.3e}")

    print("KERNEL_OK")
</pallas_src>

<mosaic_0001>
module attributes {stable_mosaic.version = 11 : i64} {
  func.func @_conv1x1_stats_kernel(%arg0: i32, %arg1: memref<256x128xf32, #tpu.memory_space<vmem>>, %arg2: memref<128x32xf32, #tpu.memory_space<vmem>>, %arg3: memref<256x32xf32, #tpu.memory_space<vmem>>, %arg4: memref<1x2x32xf32, #tpu.memory_space<vmem>>) attributes {dimension_semantics = [#tpu.dimension_semantics<parallel>], iteration_bounds = array<i64: 2>, scalar_prefetch = 0 : i64, scratch_operands = 0 : i64, tpu.core_type = #tpu.core_type<tc>, window_params = [{transform_indices = @transform_0, window_bounds = array<i64: 256, 128>}, {pipeline_mode = #tpu.pipeline_mode<synchronous>, transform_indices = @transform_1, window_bounds = array<i64: 128, 32>}, {transform_indices = @transform_2, window_bounds = array<i64: 256, 32>}, {transform_indices = @transform_3, window_bounds = array<i64: 1, 2, 32>}]} {
    %c0 = arith.constant 0 : index
    %c0_0 = arith.constant 0 : index
    %0 = vector.load %arg1[%c0, %c0_0] : memref<256x128xf32, #tpu.memory_space<vmem>>, vector<256x128xf32>
    %c0_1 = arith.constant 0 : index
    %c0_2 = arith.constant 0 : index
    %1 = vector.load %arg2[%c0_1, %c0_2] : memref<128x32xf32, #tpu.memory_space<vmem>>, vector<128x32xf32>
    %cst = arith.constant dense<0.000000e+00> : vector<256x32xf32>
    %2 = tpu.matmul %0, %1, %cst {dimension_numbers = #tpu.dot_dimension_numbers<[1], [0], [0], [1], [0, 0, 1, 1], [], []>} : vector<256x128xf32>, vector<128x32xf32>, vector<256x32xf32> -> vector<256x32xf32>
    %c0_3 = arith.constant 0 : index
    %c0_4 = arith.constant 0 : index
    %3 = vector.load %arg3[%c0_3, %c0_4] : memref<256x32xf32, #tpu.memory_space<vmem>>, vector<256x32xf32>
    tpu.vector_store %arg3[%c0_3, %c0_4], %2 {strides = array<i32>} : memref<256x32xf32, #tpu.memory_space<vmem>>, vector<256x32xf32>,
    %cst_5 = arith.constant dense<0.000000e+00> : vector<32xf32>
    %4 = vector.multi_reduction <add>, %2, %cst_5 [0] : vector<256x32xf32> to vector<32xf32>
    %5 = vector.shape_cast %4 : vector<32xf32> to vector<1x32xf32>
    %6 = arith.mulf %2, %2 : vector<256x32xf32>
    %cst_6 = arith.constant dense<0.000000e+00> : vector<32xf32>
    %7 = vector.multi_reduction <add>, %6, %cst_6 [0] : vector<256x32xf32> to vector<32xf32>
    %8 = vector.shape_cast %7 : vector<32xf32> to vector<1x32xf32>
    %9 = tpu.concatenate %5, %8 in 0 : vector<1x32xf32>, vector<1x32xf32> -> vector<2x32xf32>
    %10 = vector.shape_cast %9 : vector<2x32xf32> to vector<1x2x32xf32>
    %c0_7 = arith.constant 0 : index
    %c0_8 = arith.constant 0 : index
    %c0_9 = arith.constant 0 : index
    %11 = vector.load %arg4[%c0_7, %c0_8, %c0_9] : memref<1x2x32xf32, #tpu.memory_space<vmem>>, vector<1x2x32xf32>
    tpu.vector_store %arg4[%c0_7, %c0_8, %c0_9], %10 {strides = array<i32>} : memref<1x2x32xf32, #tpu.memory_space<vmem>>, vector<1x2x32xf32>,
    return
  }
  func.func @transform_0(%arg0: i32) -> (i32, i32) {
    %c0_i32 = arith.constant 0 : i32
    %c0_i32_0 = arith.constant 0 : i32
    return %arg0, %c0_i32 : i32, i32
  }
  func.func @transform_1(%arg0: i32) -> (i32, i32) {
    %c0_i32 = arith.constant 0 : i32
    %c0_i32_0 = arith.constant 0 : i32
    %c0_i32_1 = arith.constant 0 : i32
    return %c0_i32, %c0_i32_0 : i32, i32
  }
  func.func @transform_2(%arg0: i32) -> (i32, i32) {
    %c0_i32 = arith.constant 0 : i32
    %c0_i32_0 = arith.constant 0 : i32
    return %arg0, %c0_i32 : i32, i32
  }
  func.func @transform_3(%arg0: i32) -> (i32, i32, i32) {
    %c0_i32 = arith.constant 0 : i32
    %c0_i32_0 = arith.constant 0 : i32
    %c0_i32_1 = arith.constant 0 : i32
    return %arg0, %c0_i32, %c0_i32_0 : i32, i32, i32
  }
}

module attributes {stable_mosaic.version = 11 : i64} {
  func.func @_bn_relu_conv3x3_stats_kernel(%arg0: i32, %arg1: memref<1x16x16x32xf32, #tpu.memory_space<vmem>>, %arg2: memref<1x32xf32, #tpu.memory_space<vmem>>, %arg3: memref<1x32xf32, #tpu.memory_space<vmem>>, %arg4: memref<288x32xf32, #tpu.memory_space<vmem>>, %arg5: memref<1x256x32xf32, #tpu.memory_space<vmem>>, %arg6: memref<1x2x32xf32, #tpu.memory_space<vmem>>, %arg7: memref<18x16x32xf32, #tpu.memory_space<vmem>>, %arg8: memref<16x16x288xf32, #tpu.memory_space<vmem>>) attributes {dimension_semantics = [#tpu.dimension_semantics<parallel>], iteration_bounds = array<i64: 2>, scalar_prefetch = 0 : i64, scratch_operands = 2 : i64, tpu.core_type = #tpu.core_type<tc>, window_params = [{transform_indices = @transform_0, window_bounds = array<i64: 1, 16, 16, 32>}, {pipeline_mode = #tpu.pipeline_mode<synchronous>, transform_indices = @transform_1, window_bounds = array<i64: 1, 32>}, {pipeline_mode = #tpu.pipeline_mode<synchronous>, transform_indices = @transform_2, window_bounds = array<i64: 1, 32>}, {pipeline_mode = #tpu.pipeline_mode<synchronous>, transform_indices = @transform_3, window_bounds = array<i64: 288, 32>}, {transform_indices = @transform_4, window_bounds = array<i64: 1, 256, 32>}, {transform_indices = @transform_5, window_bounds = array<i64: 1, 2, 32>}]} {
    %c0 = arith.constant 0 : index
    %c0_0 = arith.constant 0 : index
    %0 = vector.load %arg2[%c0, %c0_0] : memref<1x32xf32, #tpu.memory_space<vmem>>, vector<1x32xf32>
    %1 = vector.shape_cast %0 : vector<1x32xf32> to vector<1x1x32xf32>
    %c0_1 = arith.constant 0 : index
    %c0_2 = arith.constant 0 : index
    %2 = vector.load %arg3[%c0_1, %c0_2] : memref<1x32xf32, #tpu.memory_space<vmem>>, vector<1x32xf32>
    %3 = vector.shape_cast %2 : vector<1x32xf32> to vector<1x1x32xf32>
    %c0_3 = arith.constant 0 : index
    %c0_4 = arith.constant 0 : index
    %c0_5 = arith.constant 0 : index
    %c0_6 = arith.constant 0 : index
    %4 = vector.load %arg1[%c0_3, %c0_4, %c0_5, %c0_6] : memref<1x16x16x32xf32, #tpu.memory_space<vmem>>, vector<1x16x16x32xf32>
    %5 = vector.shape_cast %4 : vector<1x16x16x32xf32> to vector<16x16x32xf32>
    %6 = vector.broadcast %1 : vector<1x1x32xf32> to vector<16x16x32xf32>
    %7 = arith.mulf %5, %6 : vector<16x16x32xf32>
    %8 = vector.broadcast %3 : vector<1x1x32xf32> to vector<16x16x32xf32>
    %9 = arith.addf %7, %8 : vector<16x16x32xf32>
    %cst = arith.constant 0.000000e+00 : f32
    %10 = vector.broadcast %cst : f32 to vector<16x16x32xf32>
    %11 = arith.maximumf %9, %10 : vector<16x16x32xf32>
    %cst_7 = arith.constant 0.000000e+00 : f32
    %12 = vector.broadcast %cst_7 : f32 to vector<1x16x32xf32>
    %c0_8 = arith.constant 0 : index
    %c0_9 = arith.constant 0 : index
    %c0_10 = arith.constant 0 : index
    %13 = vector.load %arg7[%c0_8, %c0_9, %c0_10] : memref<18x16x32xf32, #tpu.memory_space<vmem>>, vector<1x16x32xf32>
    tpu.vector_store %arg7[%c0_8, %c0_9, %c0_10], %12 {strides = array<i32>} : memref<18x16x32xf32, #tpu.memory_space<vmem>>, vector<1x16x32xf32>,
    %c17 = arith.constant 17 : index
    %c0_11 = arith.constant 0 : index
    %c0_12 = arith.constant 0 : index
    %14 = vector.load %arg7[%c17, %c0_11, %c0_12] : memref<18x16x32xf32, #tpu.memory_space<vmem>>, vector<1x16x32xf32>
    tpu.vector_store %arg7[%c17, %c0_11, %c0_12], %12 {strides = array<i32>} : memref<18x16x32xf32, #tpu.memory_space<vmem>>, vector<1x16x32xf32>,
    %c1 = arith.constant 1 : index
    %c0_13 = arith.constant 0 : index
    %c0_14 = arith.constant 0 : index
    %15 = vector.load %arg7[%c1, %c0_13, %c0_14] : memref<18x16x32xf32, #tpu.memory_space<vmem>>, vector<16x16x32xf32>
    tpu.vector_store %arg7[%c1, %c0_13, %c0_14], %11 {strides = array<i32>} : memref<18x16x32xf32, #tpu.memory_space<vmem>>, vector<16x16x32xf32>,
    %cst_15 = arith.constant 0.000000e+00 : f32
    %16 = vector.broadcast %cst_15 : f32 to vector<16x1x32xf32>
    %c0_16 = arith.constant 0 : index
    %c0_17 = arith.constant 0 : index
    %c0_18 = arith.constant 0 : index
    %17 = vector.load %arg7[%c0_16, %c0_17, %c0_18] : memref<18x16x32xf32, #tpu.memory_space<vmem>>, vector<16x16x32xf32>
    %18 = vector.extract_strided_slice %17 {offsets = [0, 0, 0], sizes = [16, 15, 32], strides = [1, 1, 1]} : vector<16x16x32xf32> to vector<16x15x32xf32>
    %19 = tpu.concatenate %16, %18 in 1 : vector<16x1x32xf32>, vector<16x15x32xf32> -> vector<16x16x32xf32>
    %c0_19 = arith.constant 0 : index
    %c0_20 = arith.constant 0 : index
    %c0_21 = arith.constant 0 : index
    %20 = vector.load %arg8[%c0_19, %c0_20, %c0_21] : memref<16x16x288xf32, #tpu.memory_space<vmem>>, vector<16x16x32xf32>
    tpu.vector_store %arg8[%c0_19, %c0_20, %c0_21], %19 {strides = array<i32>} : memref<16x16x288xf32, #tpu.memory_space<vmem>>, vector<16x16x32xf32>,
    %c0_22 = arith.constant 0 : index
    %c0_23 = arith.constant 0 : index
    %c32 = arith.constant 32 : index
    %21 = vector.load %arg8[%c0_22, %c0_23, %c32] : memref<16x16x288xf32, #tpu.memory_space<vmem>>, vector<16x16x32xf32>
    tpu.vector_store %arg8[%c0_22, %c0_23, %c32], %17 {strides = array<i32>} : memref<16x16x288xf32, #tpu.memory_space<vmem>>, vector<16x16x32xf32>,
    %22 = vector.extract_strided_slice %17 {offsets = [0, 1, 0], sizes = [16, 15, 32], strides = [1, 1, 1]} : vector<16x16x32xf32> to vector<16x15x32xf32>
    %23 = tpu.concatenate %22, %16 in 1 : vector<16x15x32xf32>, vector<16x1x32xf32> -> vector<16x16x32xf32>
    %c0_24 = arith.constant 0 : index
    %c0_25 = arith.constant 0 : index
    %c64 = arith.constant 64 : index
    %24 = vector.load %arg8[%c0_24, %c0_25, %c64] : memref<16x16x288xf32, #tpu.memory_space<vmem>>, vector<16x16x32xf32>
    tpu.vector_store %arg8[%c0_24, %c0_25, %c64], %23 {strides = array<i32>} : memref<16x16x288xf32, #tpu.memory_space<vmem>>, vector<16x16x32xf32>,
    %c1_26 = arith.constant 1 : index
    %c0_27 = arith.constant 0 : index
    %c0_28 = arith.constant 0 : index
    %25 = vector.load %arg7[%c1_26, %c0_27, %c0_28] : memref<18x16x32xf32, #tpu.memory_space<vmem>>, vector<16x16x32xf32>
    %26 = vector.extract_strided_slice %25 {offsets = [0, 0, 0], sizes = [16, 15, 32], strides = [1, 1, 1]} : vector<16x16x32xf32> to vector<16x15x32xf32>
    %27 = tpu.concatenate %16, %26 in 1 : vector<16x1x32xf32>, vector<16x15x32xf32> -> vector<16x16x32xf32>
    %c0_29 = arith.constant 0 : index
    %c0_30 = arith.constant 0 : index
    %c96 = arith.constant 96 : index
    %28 = vector.load %arg8[%c0_29, %c0_30, %c96] : memref<16x16x288xf32, #tpu.memory_space<vmem>>, vector<16x16x32xf32>
    tpu.vector_store %arg8[%c0_29, %c0_30, %c96], %27 {strides = array<i32>} : memref<16x16x288xf32, #tpu.memory_space<vmem>>, vector<16x16x32xf32>,
    %c0_31 = arith.constant 0 : index
    %c0_32 = arith.constant 0 : index
    %c128 = arith.constant 128 : index
    %29 = vector.load %arg8[%c0_31, %c0_32, %c128] : memref<16x16x288xf32, #tpu.memory_space<vmem>>, vector<16x16x32xf32>
    tpu.vector_store %arg8[%c0_31, %c0_32, %c128], %25 {strides = array<i32>} : memref<16x16x288xf32, #tpu.memory_space<vmem>>, vector<16x16x32xf32>,
    %30 = vector.extract_strided_slice %25 {offsets = [0, 1, 0], sizes = [16, 15, 32], strides = [1, 1, 1]} : vector<16x16x32xf32> to vector<16x15x32xf32>
    %31 = tpu.concatenate %30, %16 in 1 : vector<16x15x32xf32>, vector<16x1x32xf32> -> vector<16x16x32xf32>
    %c0_33 = arith.constant 0 : index
    %c0_34 = arith.constant 0 : index
    %c160 = arith.constant 160 : index
    %32 = vector.load %arg8[%c0_33, %c0_34, %c160] : memref<16x16x288xf32, #tpu.memory_space<vmem>>, vector<16x16x32xf32>
    tpu.vector_store %arg8[%c0_33, %c0_34, %c160], %31 {strides = array<i32>} : memref<16x16x288xf32, #tpu.memory_space<vmem>>, vector<16x16x32xf32>,
    %c2 = arith.constant 2 : index
    %c0_35 = arith.constant 0 : index
    %c0_36 = arith.constant 0 : index
    %33 = vector.load %arg7[%c2, %c0_35, %c0_36] : memref<18x16x32xf32, #tpu.memory_space<vmem>>, vector<16x16x32xf32>
    %34 = vector.extract_strided_slice %33 {offsets = [0, 0, 0], sizes = [16, 15, 32], strides = [1, 1, 1]} : vector<16x16x32xf32> to vector<16x15x32xf32>
    %35 = tpu.concatenate %16, %34 in 1 : vector<16x1x32xf32>, vector<16x15x32xf32> -> vector<16x16x32xf32>
    %c0_37 = arith.constant 0 : index
    %c0_38 = arith.constant 0 : index
    %c192 = arith.constant 192 : index
    %36 = vector.load %arg8[%c0_37, %c0_38, %c192] : memref<16x16x288xf32, #tpu.memory_space<vmem>>, vector<16x16x32xf32>
    tpu.vector_store %arg8[%c0_37, %c0_38, %c192], %35 {strides = array<i32>} : memref<16x16x288xf32, #tpu.memory_space<vmem>>, vector<16x16x32xf32>,
    %c0_39 = arith.constant 0 : index
    %c0_40 = arith.constant 0 : index
    %c224 = arith.constant 224 : index
    %37 = vector.load %arg8[%c0_39, %c0_40, %c224] : memref<16x16x288xf32, #tpu.memory_space<vmem>>, vector<16x16x32xf32>
    tpu.vector_store %arg8[%c0_39, %c0_40, %c224], %33 {strides = array<i32>} : memref<16x16x288xf32, #tpu.memory_space<vmem>>, vector<16x16x32xf32>,
    %38 = vector.extract_strided_slice %33 {offsets = [0, 1, 0], sizes = [16, 15, 32], strides = [1, 1, 1]} : vector<16x16x32xf32> to vector<16x15x32xf32>
    %39 = tpu.concatenate %38, %16 in 1 : vector<16x15x32xf32>, vector<16x1x32xf32> -> vector<16x16x32xf32>
    %c0_41 = arith.constant 0 : index
    %c0_42 = arith.constant 0 : index
    %c256 = arith.constant 256 : index
    %40 = vector.load %arg8[%c0_41, %c0_42, %c256] : memref<16x16x288xf32, #tpu.memory_space<vmem>>, vector<16x16x32xf32>
    tpu.vector_store %arg8[%c0_41, %c0_42, %c256], %39 {strides = array<i32>} : memref<16x16x288xf32, #tpu.memory_space<vmem>>, vector<16x16x32xf32>,
    %c0_43 = arith.constant 0 : index
    %c0_44 = arith.constant 0 : index
    %c0_45 = arith.constant 0 : index
    %41 = vector.load %arg8[%c0_43, %c0_44, %c0_45] : memref<16x16x288xf32, #tpu.memory_space<vmem>>, vector<16x16x288xf32>
    %42 = vector.shape_cast %41 : vector<16x16x288xf32> to vector<256x288xf32>
    %c0_46 = arith.constant 0 : index
    %c0_47 = arith.constant 0 : index
    %43 = vector.load %arg4[%c0_46, %c0_47] : memref<288x32xf32, #tpu.memory_space<vmem>>, vector<288x32xf32>
    %cst_48 = arith.constant dense<0.000000e+00> : vector<256x32xf32>
    %44 = tpu.matmul %42, %43, %cst_48 {dimension_numbers = #tpu.dot_dimension_numbers<[1], [0], [0], [1], [0, 0, 1, 1], [], []>} : vector<256x288xf32>, vector<288x32xf32>, vector<256x32xf32> -> vector<256x32xf32>
    %c0_49 = arith.constant 0 : index
    %c0_50 = arith.constant 0 : index
    %c0_51 = arith.constant 0 : index
    %45 = vector.load %arg5[%c0_49, %c0_50, %c0_51] : memref<1x256x32xf32, #tpu.memory_space<vmem>>, vector<1x256x32xf32>
    %46 = vector.shape_cast %45 : vector<1x256x32xf32> to vector<256x32xf32>
    %47 = vector.shape_cast %44 : vector<256x32xf32> to vector<1x256x32xf32>
    tpu.vector_store %arg5[%c0_49, %c0_50, %c0_51], %47 {strides = array<i32>} : memref<1x256x32xf32, #tpu.memory_space<vmem>>, vector<1x256x32xf32>,
    %cst_52 = arith.constant dense<0.000000e+00> : vector<32xf32>
    %48 = vector.multi_reduction <add>, %44, %cst_52 [0] : vector<256x32xf32> to vector<32xf32>
    %49 = vector.shape_cast %48 : vector<32xf32> to vector<1x32xf32>
    %50 = arith.mulf %44, %44 : vector<256x32xf32>
    %cst_53 = arith.constant dense<0.000000e+00> : vector<32xf32>
    %51 = vector.multi_reduction <add>, %50, %cst_53 [0] : vector<256x32xf32> to vector<32xf32>
    %52 = vector.shape_cast %51 : vector<32xf32> to vector<1x32xf32>
    %53 = tpu.concatenate %49, %52 in 0 : vector<1x32xf32>, vector<1x32xf32> -> vector<2x32xf32>
    %54 = vector.shape_cast %53 : vector<2x32xf32> to vector<1x2x32xf32>
    %c0_54 = arith.constant 0 : index
    %c0_55 = arith.constant 0 : index
    %c0_56 = arith.constant 0 : index
    %55 = vector.load %arg6[%c0_54, %c0_55, %c0_56] : memref<1x2x32xf32, #tpu.memory_space<vmem>>, vector<1x2x32xf32>
    tpu.vector_store %arg6[%c0_54, %c0_55, %c0_56], %54 {strides = array<i32>} : memref<1x2x32xf32, #tpu.memory_space<vmem>>, vector<1x2x32xf32>,
    return
  }
  func.func @transform_0(%arg0: i32) -> (i32, i32, i32, i32) {
    %c0_i32 = arith.constant 0 : i32
    %c0_i32_0 = arith.constant 0 : i32
    %c0_i32_1 = arith.constant 0 : i32
    %c0_i32_2 = arith.constant 0 : i32
    return %arg0, %c0_i32, %c0_i32_0, %c0_i32_1 : i32, i32, i32, i32
  }
  func.func @transform_1(%arg0: i32) -> (i32, i32) {
    %c0_i32 = arith.constant 0 : i32
    %c0_i32_0 = arith.constant 0 : i32
    %c0_i32_1 = arith.constant 0 : i32
    return %c0_i32, %c0_i32_0 : i32, i32
  }
  func.func @transform_2(%arg0: i32) -> (i32, i32) {
    %c0_i32 = arith.constant 0 : i32
    %c0_i32_0 = arith.constant 0 : i32
    %c0_i32_1 = arith.constant 0 : i32
    return %c0_i32, %c0_i32_0 : i32, i32
  }
  func.func @transform_3(%arg0: i32) -> (i32, i32) {
    %c0_i32 = arith.constant 0 : i32
    %c0_i32_0 = arith.constant 0 : i32
    %c0_i32_1 = arith.constant 0 : i32
    return %c0_i32, %c0_i32_0 : i32, i32
  }
  func.func @transform_4(%arg0: i32) -> (i32, i32, i32) {
    %c0_i32 = arith.constant 0 : i32
    %c0_i32_0 = arith.constant 0 : i32
    %c0_i32_1 = arith.constant 0 : i32
    return %arg0, %c0_i32, %c0_i32_0 : i32, i32, i32
  }
  func.func @transform_5(%arg0: i32) -> (i32, i32, i32) {
    %c0_i32 = arith.constant 0 : i32
    %c0_i32_0 = arith.constant 0 : i32
    %c0_i32_1 = arith.constant 0 : i32
    return %arg0, %c0_i32, %c0_i32_0 : i32, i32, i32
  }
}

module attributes {stable_mosaic.version = 11 : i64} {
  func.func @_bn_relu_conv1x1_stats_kernel(%arg0: i32, %arg1: memref<256x32xf32, #tpu.memory_space<vmem>>, %arg2: memref<1x32xf32, #tpu.memory_space<vmem>>, %arg3: memref<1x32xf32, #tpu.memory_space<vmem>>, %arg4: memref<32x128xf32, #tpu.memory_space<vmem>>, %arg5: memref<256x128xf32, #tpu.memory_space<vmem>>, %arg6: memref<1x2x128xf32, #tpu.memory_space<vmem>>) attributes {dimension_semantics = [#tpu.dimension_semantics<parallel>], iteration_bounds = array<i64: 2>, scalar_prefetch = 0 : i64, scratch_operands = 0 : i64, tpu.core_type = #tpu.core_type<tc>, window_params = [{transform_indices = @transform_0, window_bounds = array<i64: 256, 32>}, {pipeline_mode = #tpu.pipeline_mode<synchronous>, transform_indices = @transform_1, window_bounds = array<i64: 1, 32>}, {pipeline_mode = #tpu.pipeline_mode<synchronous>, transform_indices = @transform_2, window_bounds = array<i64: 1, 32>}, {pipeline_mode = #tpu.pipeline_mode<synchronous>, transform_indices = @transform_3, window_bounds = array<i64: 32, 128>}, {transform_indices = @transform_4, window_bounds = array<i64: 256, 128>}, {transform_indices = @transform_5, window_bounds = array<i64: 1, 2, 128>}]} {
    %c0 = arith.constant 0 : index
    %c0_0 = arith.constant 0 : index
    %0 = vector.load %arg1[%c0, %c0_0] : memref<256x32xf32, #tpu.memory_space<vmem>>, vector<256x32xf32>
    %c0_1 = arith.constant 0 : index
    %c0_2 = arith.constant 0 : index
    %1 = vector.load %arg2[%c0_1, %c0_2] : memref<1x32xf32, #tpu.memory_space<vmem>>, vector<1x32xf32>
    %2 = vector.broadcast %1 : vector<1x32xf32> to vector<256x32xf32>
    %3 = arith.mulf %0, %2 : vector<256x32xf32>
    %c0_3 = arith.constant 0 : index
    %c0_4 = arith.constant 0 : index
    %4 = vector.load %arg3[%c0_3, %c0_4] : memref<1x32xf32, #tpu.memory_space<vmem>>, vector<1x32xf32>
    %5 = vector.broadcast %4 : vector<1x32xf32> to vector<256x32xf32>
    %6 = arith.addf %3, %5 : vector<256x32xf32>
    %cst = arith.constant 0.000000e+00 : f32
    %7 = vector.broadcast %cst : f32 to vector<256x32xf32>
    %8 = arith.maximumf %6, %7 : vector<256x32xf32>
    %c0_5 = arith.constant 0 : index
    %c0_6 = arith.constant 0 : index
    %9 = vector.load %arg4[%c0_5, %c0_6] : memref<32x128xf32, #tpu.memory_space<vmem>>, vector<32x128xf32>
    %cst_7 = arith.constant dense<0.000000e+00> : vector<256x128xf32>
    %10 = tpu.matmul %8, %9, %cst_7 {dimension_numbers = #tpu.dot_dimension_numbers<[1], [0], [0], [1], [0, 0, 1, 1], [], []>} : vector<256x32xf32>, vector<32x128xf32>, vector<256x128xf32> -> vector<256x128xf32>
    %c0_8 = arith.constant 0 : index
    %c0_9 = arith.constant 0 : index
    %11 = vector.load %arg5[%c0_8, %c0_9] : memref<256x128xf32, #tpu.memory_space<vmem>>, vector<256x128xf32>
    tpu.vector_store %arg5[%c0_8, %c0_9], %10 {strides = array<i32>} : memref<256x128xf32, #tpu.memory_space<vmem>>, vector<256x128xf32>,
    %cst_10 = arith.constant dense<0.000000e+00> : vector<128xf32>
    %12 = vector.multi_reduction <add>, %10, %cst_10 [0] : vector<256x128xf32> to vector<128xf32>
    %13 = vector.shape_cast %12 : vector<128xf32> to vector<1x128xf32>
    %14 = arith.mulf %10, %10 : vector<256x128xf32>
    %cst_11 = arith.constant dense<0.000000e+00> : vector<128xf32>
    %15 = vector.multi_reduction <add>, %14, %cst_11 [0] : vector<256x128xf32> to vector<128xf32>
    %16 = vector.shape_cast %15 : vector<128xf32> to vector<1x128xf32>
    %17 = tpu.concatenate %13, %16 in 0 : vector<1x128xf32>, vector<1x128xf32> -> vector<2x128xf32>
    %18 = vector.shape_cast %17 : vector<2x128xf32> to vector<1x2x128xf32>
    %c0_12 = arith.constant 0 : index
    %c0_13 = arith.constant 0 : index
    %c0_14 = arith.constant 0 : index
    %19 = vector.load %arg6[%c0_12, %c0_13, %c0_14] : memref<1x2x128xf32, #tpu.memory_space<vmem>>, vector<1x2x128xf32>
    tpu.vector_store %arg6[%c0_12, %c0_13, %c0_14], %18 {strides = array<i32>} : memref<1x2x128xf32, #tpu.memory_space<vmem>>, vector<1x2x128xf32>,
    return
  }
  func.func @transform_0(%arg0: i32) -> (i32, i32) {
    %c0_i32 = arith.constant 0 : i32
    %c0_i32_0 = arith.constant 0 : i32
    return %arg0, %c0_i32 : i32, i32
  }
  func.func @transform_1(%arg0: i32) -> (i32, i32) {
    %c0_i32 = arith.constant 0 : i32
    %c0_i32_0 = arith.constant 0 : i32
    %c0_i32_1 = arith.constant 0 : i32
    return %c0_i32, %c0_i32_0 : i32, i32
  }
  func.func @transform_2(%arg0: i32) -> (i32, i32) {
    %c0_i32 = arith.constant 0 : i32
    %c0_i32_0 = arith.constant 0 : i32
    %c0_i32_1 = arith.constant 0 : i32
    return %c0_i32, %c0_i32_0 : i32, i32
  }
  func.func @transform_3(%arg0: i32) -> (i32, i32) {
    %c0_i32 = arith.constant 0 : i32
    %c0_i32_0 = arith.constant 0 : i32
    %c0_i32_1 = arith.constant 0 : i32
    return %c0_i32, %c0_i32_0 : i32, i32
  }
  func.func @transform_4(%arg0: i32) -> (i32, i32) {
    %c0_i32 = arith.constant 0 : i32
    %c0_i32_0 = arith.constant 0 : i32
    return %arg0, %c0_i32 : i32, i32
  }
  func.func @transform_5(%arg0: i32) -> (i32, i32, i32) {
    %c0_i32 = arith.constant 0 : i32
    %c0_i32_0 = arith.constant 0 : i32
    %c0_i32_1 = arith.constant 0 : i32
    return %arg0, %c0_i32, %c0_i32_0 : i32, i32, i32
  }
}

module attributes {stable_mosaic.version = 11 : i64} {
  func.func @_bn_add_relu_kernel(%arg0: i32, %arg1: memref<256x128xf32, #tpu.memory_space<vmem>>, %arg2: memref<1x128xf32, #tpu.memory_space<vmem>>, %arg3: memref<1x128xf32, #tpu.memory_space<vmem>>, %arg4: memref<256x128xf32, #tpu.memory_space<vmem>>, %arg5: memref<256x128xf32, #tpu.memory_space<vmem>>) attributes {dimension_semantics = [#tpu.dimension_semantics<parallel>], iteration_bounds = array<i64: 2>, scalar_prefetch = 0 : i64, scratch_operands = 0 : i64, tpu.core_type = #tpu.core_type<tc>, window_params = [{transform_indices = @transform_0, window_bounds = array<i64: 256, 128>}, {pipeline_mode = #tpu.pipeline_mode<synchronous>, transform_indices = @transform_1, window_bounds = array<i64: 1, 128>}, {pipeline_mode = #tpu.pipeline_mode<synchronous>, transform_indices = @transform_2, window_bounds = array<i64: 1, 128>}, {transform_indices = @transform_3, window_bounds = array<i64: 256, 128>}, {transform_indices = @transform_4, window_bounds = array<i64: 256, 128>}]} {
    %c0 = arith.constant 0 : index
    %c0_0 = arith.constant 0 : index
    %0 = vector.load %arg1[%c0, %c0_0] : memref<256x128xf32, #tpu.memory_space<vmem>>, vector<256x128xf32>
    %c0_1 = arith.constant 0 : index
    %c0_2 = arith.constant 0 : index
    %1 = vector.load %arg2[%c0_1, %c0_2] : memref<1x128xf32, #tpu.memory_space<vmem>>, vector<1x128xf32>
    %2 = vector.broadcast %1 : vector<1x128xf32> to vector<256x128xf32>
    %3 = arith.mulf %0, %2 : vector<256x128xf32>
    %c0_3 = arith.constant 0 : index
    %c0_4 = arith.constant 0 : index
    %4 = vector.load %arg3[%c0_3, %c0_4] : memref<1x128xf32, #tpu.memory_space<vmem>>, vector<1x128xf32>
    %5 = vector.broadcast %4 : vector<1x128xf32> to vector<256x128xf32>
    %6 = arith.addf %3, %5 : vector<256x128xf32>
    %c0_5 = arith.constant 0 : index
    %c0_6 = arith.constant 0 : index
    %7 = vector.load %arg4[%c0_5, %c0_6] : memref<256x128xf32, #tpu.memory_space<vmem>>, vector<256x128xf32>
    %8 = arith.addf %6, %7 : vector<256x128xf32>
    %cst = arith.constant 0.000000e+00 : f32
    %9 = vector.broadcast %cst : f32 to vector<256x128xf32>
    %10 = arith.maximumf %8, %9 : vector<256x128xf32>
    %c0_7 = arith.constant 0 : index
    %c0_8 = arith.constant 0 : index
    %11 = vector.load %arg5[%c0_7, %c0_8] : memref<256x128xf32, #tpu.memory_space<vmem>>, vector<256x128xf32>
    tpu.vector_store %arg5[%c0_7, %c0_8], %10 {strides = array<i32>} : memref<256x128xf32, #tpu.memory_space<vmem>>, vector<256x128xf32>,
    return
  }
  func.func @transform_0(%arg0: i32) -> (i32, i32) {
    %c0_i32 = arith.constant 0 : i32
    %c0_i32_0 = arith.constant 0 : i32
    return %arg0, %c0_i32 : i32, i32
  }
  func.func @transform_1(%arg0: i32) -> (i32, i32) {
    %c0_i32 = arith.constant 0 : i32
    %c0_i32_0 = arith.constant 0 : i32
    %c0_i32_1 = arith.constant 0 : i32
    return %c0_i32, %c0_i32_0 : i32, i32
  }
  func.func @transform_2(%arg0: i32) -> (i32, i32) {
    %c0_i32 = arith.constant 0 : i32
    %c0_i32_0 = arith.constant 0 : i32
    %c0_i32_1 = arith.constant 0 : i32
    return %c0_i32, %c0_i32_0 : i32, i32
  }
  func.func @transform_3(%arg0: i32) -> (i32, i32) {
    %c0_i32 = arith.constant 0 : i32
    %c0_i32_0 = arith.constant 0 : i32
    return %arg0, %c0_i32 : i32, i32
  }
  func.func @transform_4(%arg0: i32) -> (i32, i32) {
    %c0_i32 = arith.constant 0 : i32
    %c0_i32_0 = arith.constant 0 : i32
    return %arg0, %c0_i32 : i32, i32
  }
}

</mosaic_0001>

<bundles_post_ra>
// kernel: bottleneck_forward.4
= control target key start
LH: loop header
LB: loop body
LE: loop exit
PB: predicated region body
PF: predicated region fallthrough
CT: control target
= control target key end

     0   :  { %9 = vsyncpa [#allocation3], 0  ;;  %s1800_s0 = inlined_call_operand.hbm [shape: f32[512,128], index: 0, kind: input, shape index: {}]   ;;  %s1801_s1 = inlined_call_operand.hbm [shape: f32[128,32], index: 1, kind: input, shape index: {}]   ;;  %s1802_s2 = inlined_call_operand.hbm [shape: f32[512,32], index: 2, kind: output, shape index: {0}]   ;;  %s1803_s3 = inlined_call_operand.hbm [shape: f32[2,2,32], index: 3, kind: output, shape index: {1}]  }
   0x1   :  { %11 = vsyncpa [#allocation3 + $0x1], 0 }
   0x2   :  { %12 = vsyncpa [#allocation6], 0 }
   0x3   :  { %13 = vsyncpa [#allocation4], 0 }
   0x4   :  { %15 = vsyncpa [#allocation4 + $0x1], 0 }
   0x5   :  { %16 = vsyncpa [#allocation9], 0 }
   0x6   :  { %18 = vsyncpa [#allocation9 + $0x1], 0  ;;  %s1297_s12 = smov 0   ;;  %s1299_s13 = smov 0  }
   0x7   :  { %s1301_s14 = smov 0   ;;  %s1303_s15 = smov 0  }
   0x8 LB: > { %s1318_s16 = sadd.s32 4294967295, %s1267_s15   ;;  %s844_s17 = sadd.s32 4294967294, %s1267_s15   ;;  %s1267_s15 = sphi %s1303_s15, %s1823_s15   ;;  %s1263_s14 = sphi %s1301_s14, %s1822_s14   ;;  %s1259_s13 = sphi %s1299_s13, %s1821_s13   ;;  %s1255_s12 = sphi %s1297_s12, %s1820_s12  }
   0x9   : > { %p44_p0 = scmp.ne.s32.totalorder %s1259_s13, %s1255_s12  ;;  %p1804_p1 = scmp.eq.s32.totalorder %s1318_s16, 0 }
   0xa   : > { %p95_p3 = scmp.eq.s32.totalorder %s844_s17, 1  ;;  %p845_p5 = scmp.ge.s32.totalorder %s1267_s15, 1 }
   0xb   : > { %p1327_p4 = por %p1804_p1, %p44_p0  ;;  %p128_p7 = scmp.lt.s32.totalorder %s1267_s15, 3 }
   0xc   : > { %p1332_p6 = por %p95_p3, %p44_p0  ;;  %s1269_s21 = smov [#allocation5]  }
   0xd   : > { %s1807_s18 = scalar_select %p1327_p4, 1, 0 }
   0xe   : > { %s1808_s19 = scalar_select %p1332_p6, 1, 0 }
   0xf   : > { %p1337_p8 = pnand %p845_p5, %p128_p7  ;;  %s140_s22 = sshll.u32 %s1269_s21, 4  ;;  %s1341_s22 = int_to_ptr.vmem [resolvable:$true] %s140_s22 }
  0x10   : > { %s1353_s24 = sadd.s32 1, %s1267_s15   ;;  %s31_s25 = sadd.s32 1, %s1263_s14 }
  0x11   : > { %s1809_s20 = scalar_select %p1337_p8, 1, 0 }
  0x12   : > { %p1051_p9 = pneg %p1337_p8  ;;  %s28_s26 = ssub.s32 %s1267_s15, %s1353_s24 }
  0x13   : > { %s1107_s29 = scalar_lea.hbm %s1801_s1, 2048 }
  0x14   : > { %p1348_p11 = pnand %p1051_p9, %p1804_p1  ;;  %p1108_p12 = scmp.ne.s32.totalorder %s1801_s1, %s1107_s29 }
  0x15   : > { %p1114_p5 = scmp.lt.u32.totalorder %s1107_s29, %s1801_s1 }
  0x16   : > { %p1109_p13 = pneg %p1348_p11 }
  0x18   : > { %p1110_p0 = pnand %p1109_p13, %p1108_p12 }
  0x1a   : > { %p1111_p3 = pneg %p1110_p0 }
  0x1c   : > { %p1116_p7 = pnand %p1114_p5, %p1111_p3 }
  0x1e   : > { %1119 = shalt.err (!%p1116_p7)
}
  0x1f   : > { %s1120_s7 = scalar_lea.vmem %s1341_s22, 2048  ;;  %p1128_p2 = scmp.lt.s32.totalorder %s1341_s22, %s1341_s22 }
  0x20   : > { %p1121_p9 = scmp.ne.s32.totalorder %s1341_s22, %s1120_s7  ;;  %p1129_p6 = scmp.lt.s32.totalorder %s1120_s7, %s1120_s7 }
  0x22   : > { %p1123_p10 = pnand %p1121_p9, %p1109_p13  ;;  %p1130_p4 = por %p1129_p6, %p1128_p2 }
  0x24   : > { %p1124_p1 = pneg %p1123_p10 }
  0x26   : > { %p1131_p8 = pnand %p1130_p4, %p1124_p1 }
  0x28   : > { %1134 = shalt.err (!%p1131_p8)
}
  0x29   : > { %s1270_s8 = smov 128   ;;  %s1271_s9 = smov 8  }
  0x2a   : > { %1054 = dma.hbm_to_vmem [thread:$0]  (!%p1348_p11), %s1801_s1, 2048, %s1341_s22, [#allocation6], %s1270_s8, %s1270_s8, %s1271_s9  }
  0x2b   : > { %p29_p1 = scmp.eq.s32.totalorder %s28_s26, 0  ;;  %p38_p2 = scmp.ne.s32.totalorder %s1263_s14, %s1259_s13 }
  0x2c   : > { %p39_p4 = scmp.eq.s32.totalorder %s1267_s15, 0  ;;  %p1067_p6 = scmp.lt.s32.totalorder %s1267_s15, 2 }
  0x2d   : > { %s1387_s17 = scalar_select %p29_p1, %s1263_s14, %s31_s25  }
  0x2e   : > { %p40_p8 = por %p39_p4, %p38_p2  ;;  %p1811_p10 = scmp.eq.s32.totalorder %s1318_s16, 1 }
  0x2f   : > { %s154_s23 = sand.u32 1, %s1263_s14   ;;  %s863_s27 = sshll.u32 %s1267_s15, 12 }
  0x30   : > { %p1391_p12 = por %p1811_p10, %p38_p2  ;;  %s848_s28 = sshll.u32 %s154_s23, 8 }
  0x31   : > { %s1400_s4 = scalar_lea.hbm %s1800_s0, %s863_s27  ;;  %s158_s22 = scalar_lea.vmem [#allocation2], %s848_s28 }
  0x32   : > { %s165_s25 = sshll.u32 %s158_s22, 4  ;;  %p1402_p11 = pnand %p1067_p6, %p40_p8  ;;  %s1406_s25 = int_to_ptr.vmem [resolvable:$true] %s165_s25 }
  0x33   : > { %s1408_s5 = scalar_lea.sflag [#allocation3], %s154_s23  ;;  %s1135_s6 = scalar_lea.hbm %s1400_s4, 4096 }
  0x34   : > { %p1136_p13 = scmp.ne.s32.totalorder %s1400_s4, %s1135_s6  ;;  %p1137_p0 = pneg %p1402_p11 }
  0x35   : > { %s1140_s11 = scalar_lea.hbm %s1800_s0, 8192  ;;  %p1141_p7 = scmp.lt.u32.totalorder %s1400_s4, %s1800_s0 }
  0x36   : > { %p1138_p3 = pnand %p1137_p0, %p1136_p13  ;;  %p1142_p9 = scmp.lt.u32.totalorder %s1140_s11, %s1135_s6 }
  0x37   : > { %p1144_p2 = scmp.lt.u32.totalorder %s1135_s6, %s1400_s4 }
  0x38   : > { %p1139_p5 = pneg %p1138_p3  ;;  %p1143_p1 = por %p1142_p9, %p1141_p7 }
  0x3a   : > { %p1145_p4 = por %p1144_p2, %p1143_p1 }
  0x3c   : > { %p1146_p6 = pnand %p1145_p4, %p1139_p5 }
  0x3e   : > { %1149 = shalt.err (!%p1146_p6)
}
  0x3f   : > { %s1150_s23 = scalar_lea.vmem %s1406_s25, 4096  ;;  %s1272_s29 = smov [#allocation2]  }
  0x40   : > { %p1151_p8 = scmp.ne.s32.totalorder %s1406_s25, %s1150_s23  ;;  %s1155_s30 = sshll.u32 %s1272_s29, 4  ;;  %s1156_s30 = int_to_ptr.vmem [resolvable:$false] %s1155_s30 }
  0x41   : > { %s1157_s22 = scalar_lea.vmem %s1156_s30, 8192  ;;  %p1158_p3 = scmp.lt.s32.totalorder %s1406_s25, %s1156_s30 }
  0x42   : > { %p1153_p10 = pnand %p1151_p8, %p1137_p0  ;;  %p1159_p7 = scmp.lt.s32.totalorder %s1157_s22, %s1150_s23 }
  0x44   : > { %p1154_p13 = pneg %p1153_p10  ;;  %p1160_p9 = por %p1159_p7, %p1158_p3 }
  0x46   : > { %p1161_p1 = pnand %p1160_p9, %p1154_p13 }
  0x48   : > { %1164 = shalt.err (!%p1161_p1)
}
  0x49   : > { %1058 = dma.hbm_to_vmem [thread:$0]  (!%p1402_p11), %s1400_s4, 4096, %s1406_s25, %s1408_s5, %s1270_s8, %s1270_s8, %s1271_s9  }
  0x4a   : > { %p1814_p0 = scmp.ne.s32.totalorder %s1809_s20, 0 }
  0x4b   : > { %s1442_s6 = sand.u32 (!%p1814_p0), 1, %s1259_s13   ;;  %p1815_p5 = scmp.ne.s32.totalorder (!%p1814_p0), %s1807_s18, 0 }
  0x4c   : > { %177 = sbr.rel (%p1814_p0) target bundleno = 441 (0x1b9), region = 28  ;;  %s852_s7 = sshll.u32 (!%p1814_p0), %s1442_s6, 8 }
  0x4d   : > { %s180_s10 = scalar_lea.sflag (!%p1814_p0), [#allocation3], %s1442_s6  ;;  %s1448_s26 = scalar_lea.vmem (!%p1814_p0), [#allocation2], %s852_s7 }
  0x53   : > { %1238 = dma.done.wait (%p1815_p5), %s180_s10, 4096  }
  0x54   : > { %1240 = vsyncadd (%p1815_p5), %s180_s10, 4294963200  ;;  %p1816_p11 = scmp.eq.s32.totalorder %s1318_s16, 0 }
  0x56   : > { %1242 = dma.done.wait (%p1816_p11), [#allocation6], 2048   ;;  %p1817_p2 = pmov %p1816_p11 }
  0x57   : > { %v249_v0 = vld [vmem:[#allocation5] sm:$0xff]  ;;  %v250_v1 = vld [vmem:[#allocation5 + $0x8] sm:$0xff]  ;;  %v251_v2 = vld [vmem:[#allocation5 + $0x10] sm:$0xff]  ;;  %vm490_vm0 = vcmask 261120   ;;  %s1494_s18 = scalar_lea.vmem [#allocation7], %s852_s7  ;;  %s864_s20 = sshll.u32 %s1318_s16, 12 }
  0x58   : > { %1244 = vsyncadd (%p1817_p2), [#allocation6], 4294965248  ;;  %v993_v3 = vpack.c.bf16 %v250_v1, %v249_v0  ;;  %v252_v4 = vld [vmem:[#allocation5 + $0x18] sm:$0xff]  ;;  %v253_v6 = vld [vmem:[#allocation5 + $0x20] sm:$0xff]  ;;  %s716_s8 = sshll.u32 %s1494_s18, 4  ;;  %s1622_s25 = scalar_lea.hbm %s1802_s2, %s864_s20  ;;  %s1624_s8 = int_to_ptr.vmem [resolvable:$true] %s716_s8 }
  0x59   : > { %v997_v5 = vpack.c.bf16 %v252_v4, %v251_v2  ;;  %v254_v7 = vld [vmem:[#allocation5 + $0x28] sm:$0xff]  ;;  %v217_v9 = vld [vmem:[%s1448_s26] sm:$0xff]  ;;  %v255_v10 = vld [vmem:[#allocation5 + $0x30] sm:$0xff]  ;;  %s698_s5 = scalar_lea.sflag [#allocation4], %s1442_s6  ;;  %s1165_s11 = scalar_lea.vmem %s1624_s8, 4096 }
  0x5a   : > { %994 = vmatprep.subr.bf16.mxu0 %v993_v3  ;;  %1025 = vmatprep.subr.bf16.mxu1 %v993_v3  ;;  %v1001_v8 = vpack.c.bf16 %v254_v7, %v253_v6  ;;  %v256_v11 = vld [vmem:[#allocation5 + $0x38] sm:$0xff]  ;;  %v257_v13 = vld [vmem:[#allocation5 + $0x40] sm:$0xff]  ;;  %v258_v14 = vld [vmem:[#allocation5 + $0x48] sm:$0xff]  ;;  %p1166_p4 = scmp.ne.s32.totalorder %s1624_s8, %s1165_s11  ;;  %s1273_s27 = smov [#allocation7]  }
  0x5b   : > { %996 = vmatpush3.bf16.msra.mxu0 %v993_v3  ;;  %1033 = vmatpush3.bf16.msra.mxu1 %v993_v3  ;;  %v1005_v12 = vpack.c.bf16 %v256_v11, %v255_v10  ;;  %v233_v15 = vld [vmem:[%s1448_s26 + $0x80] sm:$0xff]  ;;  %v1009_v16 = vpack.c.bf16 %v258_v14, %v257_v13  ;;  %v259_v17 = vld [vmem:[#allocation5 + $0x50] sm:$0xff]  ;;  %v260_v18 = vld [vmem:[#allocation5 + $0x58] sm:$0xff]  ;;  %s1169_s28 = sshll.u32 %s1273_s27, 4  ;;  %s1170_s28 = int_to_ptr.vmem [resolvable:$false] %s1169_s28 }
  0x5c   : > { %998 = vmatprep.subr.bf16.mxu0 %v997_v5  ;;  %1026 = vmatprep.subr.bf16.mxu1 %v997_v5  ;;  %v1013_v19 = vpack.c.bf16 %v260_v18, %v259_v17  ;;  %v261_v20 = vld [vmem:[#allocation5 + $0x60] sm:$0xff]  ;;  %v262_v21 = vld [vmem:[#allocation5 + $0x68] sm:$0xff]  ;;  %v263_v23 = vld [vmem:[#allocation5 + $0x70] sm:$0xff]  ;;  %p1167_p6 = pnand %p1166_p4, %p1391_p12  ;;  %s1171_s23 = scalar_lea.vmem %s1170_s28, 8192 }
  0x5d   : > { %945 = vmatprep.mubr.f32.mxu0 %v217_v9  ;;  %969 = vmatprep.mubr.f32.mxu1 %v233_v15  ;;  %v1017_v22 = vpack.c.bf16 %v262_v21, %v261_v20  ;;  %v264_v24 = vld [vmem:[#allocation5 + $0x78] sm:$0xff]  ;;  %v218_v26 = vld [vmem:[%s1448_s26 + $0x8] sm:$0xff]  ;;  %v219_v28 = vld [vmem:[%s1448_s26 + $0x10] sm:$0xff]  ;;  %p1172_p10 = scmp.lt.s32.totalorder %s1624_s8, %s1170_s28  ;;  %p1173_p13 = scmp.lt.s32.totalorder %s1171_s23, %s1165_s11 }
  0x5e   : > { %v1021_v25 = vpack.c.bf16 %v264_v24, %v263_v23  ;;  %v234_v27 = vld [vmem:[%s1448_s26 + $0x88] sm:$0xff]  ;;  %v235_v29 = vld [vmem:[%s1448_s26 + $0x90] sm:$0xff]  ;;  %v220_v30 = vld [vmem:[%s1448_s26 + $0x18] sm:$0xff]  ;;  %p1168_p8 = pneg %p1167_p6 }
  0x5f   : > { %1000 = vmatpush3.bf16.msra.mxu0 %v997_v5  ;;  %1034 = vmatpush3.bf16.msra.mxu1 %v997_v5  ;;  %v236_v31 = vld [vmem:[%s1448_s26 + $0x98] sm:$0xff]  ;;  %v221_v32 = vld [vmem:[%s1448_s26 + $0x20] sm:$0xff]  ;;  %v222_v34 = vld [vmem:[%s1448_s26 + $0x28] sm:$0xff]  ;;  %p1174_p3 = por %p1173_p13, %p1172_p10 }
  0x60   : > { %1002 = vmatprep.subr.bf16.mxu0 %v1001_v8  ;;  %1027 = vmatprep.subr.bf16.mxu1 %v1001_v8  ;;  %v237_v33 = vld [vmem:[%s1448_s26 + $0xa0] sm:$0xff]  ;;  %v238_v35 = vld [vmem:[%s1448_s26 + $0xa8] sm:$0xff]  ;;  %v223_v36 = vld [vmem:[%s1448_s26 + $0x30] sm:$0xff] }
  0x61   : > { %v239_v37 = vld [vmem:[%s1448_s26 + $0xb0] sm:$0xff]  ;;  %v224_v38 = vld [vmem:[%s1448_s26 + $0x38] sm:$0xff]  ;;  %v225_v40 = vld [vmem:[%s1448_s26 + $0x40] sm:$0xff]  ;;  %p1175_p7 = pnand %p1174_p3, %p1168_p8 }
  0x62   : > { %v240_v39 = vld [vmem:[%s1448_s26 + $0xb8] sm:$0xff]  ;;  %v241_v41 = vld [vmem:[%s1448_s26 + $0xc0] sm:$0xff]  ;;  %v226_v42 = vld [vmem:[%s1448_s26 + $0x48] sm:$0xff] }
  0x63   : > { %1004 = vmatpush3.bf16.msra.mxu0 %v1001_v8  ;;  %1035 = vmatpush3.bf16.msra.mxu1 %v1001_v8  ;;  %v242_v43 = vld [vmem:[%s1448_s26 + $0xc8] sm:$0xff]  ;;  %v227_v44 = vld [vmem:[%s1448_s26 + $0x50] sm:$0xff]  ;;  %v228_v46 = vld [vmem:[%s1448_s26 + $0x58] sm:$0xff] }
  0x64   : > { %1006 = vmatprep.subr.bf16.mxu0 %v1005_v12  ;;  %1028 = vmatprep.subr.bf16.mxu1 %v1005_v12  ;;  %v243_v45 = vld [vmem:[%s1448_s26 + $0xd0] sm:$0xff]  ;;  %v244_v47 = vld [vmem:[%s1448_s26 + $0xd8] sm:$0xff]  ;;  %v229_v48 = vld [vmem:[%s1448_s26 + $0x60] sm:$0xff] }
  0x65   : > { %v245_v49 = vld [vmem:[%s1448_s26 + $0xe0] sm:$0xff]  ;;  %v230_v50 = vld [vmem:[%s1448_s26 + $0x68] sm:$0xff]  ;;  %v231_v52 = vld [vmem:[%s1448_s26 + $0x70] sm:$0xff] }
  0x66   : > { %v246_v51 = vld [vmem:[%s1448_s26 + $0xe8] sm:$0xff]  ;;  %v247_v53 = vld [vmem:[%s1448_s26 + $0xf0] sm:$0xff]  ;;  %v232_v54 = vld [vmem:[%s1448_s26 + $0x78] sm:$0xff] }
  0x67   : > { %1008 = vmatpush3.bf16.msra.mxu0 %v1005_v12  ;;  %1036 = vmatpush3.bf16.msra.mxu1 %v1005_v12  ;;  %v248_v55 = vld [vmem:[%s1448_s26 + $0xf8] sm:$0xff] }
  0x68   : > { %1010 = vmatprep.subr.bf16.mxu0 %v1009_v16  ;;  %1029 = vmatprep.subr.bf16.mxu1 %v1009_v16 }
  0x6b   : > { %1012 = vmatpush3.bf16.msra.mxu0 %v1009_v16  ;;  %1037 = vmatpush3.bf16.msra.mxu1 %v1009_v16 }
  0x6c   : > { %1014 = vmatprep.subr.bf16.mxu0 %v1013_v19  ;;  %1030 = vmatprep.subr.bf16.mxu1 %v1013_v19 }
  0x6f   : > { %1016 = vmatpush3.bf16.msra.mxu0 %v1013_v19  ;;  %1038 = vmatpush3.bf16.msra.mxu1 %v1013_v19 }
  0x70   : > { %1018 = vmatprep.subr.bf16.mxu0 %v1017_v22  ;;  %1031 = vmatprep.subr.bf16.mxu1 %v1017_v22 }
  0x73   : > { %1020 = vmatpush3.bf16.msra.mxu0 %v1017_v22  ;;  %1039 = vmatpush3.bf16.msra.mxu1 %v1017_v22 }
  0x74   : > { %1022 = vmatprep.subr.bf16.mxu0 %v1021_v25  ;;  %1032 = vmatprep.subr.bf16.mxu1 %v1021_v25 }
  0x77   : > { %1024 = vmatpush3.bf16.msra.mxu0 %v1021_v25  ;;  %1040 = vmatpush3.bf16.msra.mxu1 %v1021_v25 }
  0x7a   : > { %946 = vmatmul.mubr.f32.vlgmr.msra.gmra.mrb[0].mxu0 %v218_v26  ;;  %970 = vmatmul.mubr.f32.vlgmr.msra.gmra.mrb[0].mxu1 %v234_v27 }
  0x7b   : > { %948 = vmatprep.mubr.f32.mxu0 %v219_v28  ;;  %972 = vmatprep.mubr.f32.mxu1 %v235_v29 }
  0x7e   : > { %949 = vmatmul.mubr.f32.gmra.mrb[2].mxu0 %v220_v30  ;;  %973 = vmatmul.mubr.f32.gmra.mrb[2].mxu1 %v236_v31 }
  0x7f   : > { %951 = vmatprep.mubr.f32.mxu0 %v221_v32  ;;  %975 = vmatprep.mubr.f32.mxu1 %v237_v33 }
  0x82   : > { %952 = vmatmul.mubr.f32.gmra.mrb[4].mxu0 %v222_v34  ;;  %976 = vmatmul.mubr.f32.gmra.mrb[4].mxu1 %v238_v35 }
  0x83   : > { %954 = vmatprep.mubr.f32.mxu0 %v223_v36  ;;  %978 = vmatprep.mubr.f32.mxu1 %v239_v37 }
  0x86   : > { %955 = vmatmul.mubr.f32.gmra.mrb[6].mxu0 %v224_v38  ;;  %979 = vmatmul.mubr.f32.gmra.mrb[6].mxu1 %v240_v39 }
  0x87   : > { %957 = vmatprep.mubr.f32.mxu0 %v225_v40  ;;  %981 = vmatprep.mubr.f32.mxu1 %v241_v41 }
  0x8a   : > { %958 = vmatmul.mubr.f32.gmra.mrb[8].mxu0 %v226_v42  ;;  %982 = vmatmul.mubr.f32.gmra.mrb[8].mxu1 %v242_v43 }
  0x8b   : > { %960 = vmatprep.mubr.f32.mxu0 %v227_v44  ;;  %984 = vmatprep.mubr.f32.mxu1 %v243_v45 }
  0x8e   : > { %961 = vmatmul.mubr.f32.gmra.mrb[10].mxu0 %v228_v46  ;;  %985 = vmatmul.mubr.f32.gmra.mrb[10].mxu1 %v244_v47 }
  0x8f   : > { %963 = vmatprep.mubr.f32.mxu0 %v229_v48  ;;  %987 = vmatprep.mubr.f32.mxu1 %v245_v49 }
  0x92   : > { %964 = vmatmul.mubr.f32.gmra.mrb[12].mxu0 %v230_v50  ;;  %988 = vmatmul.mubr.f32.gmra.mrb[12].mxu1 %v246_v51 }
  0x93   : > { %966 = vmatprep.mubr.f32.mxu0 %v231_v52  ;;  %990 = vmatprep.mubr.f32.mxu1 %v247_v53 }
  0x96   : > { %967 = vmatmul.mubr.f32.gmra.mrb[14].mxu0 %v232_v54  ;;  %991 = vmatmul.mubr.f32.gmra.mrb[14].mxu1 %v248_v55 }
 0x14d   : > { %v947_v56 = vpop.f32.mrb[0].mxu0  ;;  %v1490_v57 = vpop.f32.mrb[0].mxu1 }
 0x14e   : > { %492 = vst.msk [vmem:[%s1494_s18 + $0x8] sm:$0xff] %vm490_vm0, %v947_v56  ;;  %v524_v58 = vsel %vm490_vm0, %v947_v56, 0.0  ;;  %v593_v59 = vmul.f32 %v947_v56, %v947_v56  ;;  %v331_v60 = vpop.f32.mrb[1].mxu0  ;;  %508 = vst.msk [vmem:[%s1494_s18 + $0x88] sm:$0xff] %vm490_vm0, %v1490_v57  ;;  %v1502_v61 = vpop.f32.mrb[1].mxu1 }
 0x14f   : > { %491 = vst.msk [vmem:[%s1494_s18] sm:$0xff] %vm490_vm0, %v331_v60  ;;  %v523_v62 = vsel %vm490_vm0, %v331_v60, 0.0  ;;  %v592_v63 = vmul.f32 %v331_v60, %v331_v60  ;;  %507 = vst.msk [vmem:[%s1494_s18 + $0x80] sm:$0xff] %vm490_vm0, %v1502_v61 }
 0x150   : > { %v625_v0 = vsel %vm490_vm0, %v593_v59, 0.0  ;;  %v525_v1 = vadd.f32 %v524_v58, %v523_v62 }
 0x151   : > { %v624_v2 = vsel %vm490_vm0, %v592_v63, 0.0  ;;  %v950_v3 = vpop.f32.mrb[2].mxu0  ;;  %v1512_v4 = vpop.f32.mrb[2].mxu1 }
 0x152   : > { %v626_v5 = vadd.f32 %v625_v0, %v624_v2  ;;  %494 = vst.msk [vmem:[%s1494_s18 + $0x18] sm:$0xff] %vm490_vm0, %v950_v3  ;;  %v341_v6 = vpop.f32.mrb[3].mxu0  ;;  %510 = vst.msk [vmem:[%s1494_s18 + $0x98] sm:$0xff] %vm490_vm0, %v1512_v4  ;;  %v1519_v7 = vpop.f32.mrb[3].mxu1  ;;  %v595_v8 = vmul.f32 %v950_v3, %v950_v3  ;;  %v528_v12 = vsel %vm490_vm0, %v950_v3, 0.0 }
 0x153   : > { %493 = vst.msk [vmem:[%s1494_s18 + $0x10] sm:$0xff] %vm490_vm0, %v341_v6  ;;  %v526_v9 = vsel %vm490_vm0, %v341_v6, 0.0  ;;  %v594_v10 = vmul.f32 %v341_v6, %v341_v6  ;;  %509 = vst.msk [vmem:[%s1494_s18 + $0x90] sm:$0xff] %vm490_vm0, %v1519_v7 }
 0x154   : > { %v527_v11 = vadd.f32 %v526_v9, %v525_v1  ;;  %v629_v20 = vsel %vm490_vm0, %v595_v8, 0.0 }
 0x155   : > { %v627_v13 = vsel %vm490_vm0, %v594_v10, 0.0  ;;  %v953_v14 = vpop.f32.mrb[4].mxu0  ;;  %v1529_v15 = vpop.f32.mrb[4].mxu1 }
 0x156   : > { %v628_v16 = vadd.f32 %v627_v13, %v626_v5  ;;  %496 = vst.msk [vmem:[%s1494_s18 + $0x28] sm:$0xff] %vm490_vm0, %v953_v14  ;;  %v351_v17 = vpop.f32.mrb[5].mxu0  ;;  %v529_v18 = vadd.f32 %v528_v12, %v527_v11  ;;  %512 = vst.msk [vmem:[%s1494_s18 + $0xa8] sm:$0xff] %vm490_vm0, %v1529_v15  ;;  %v1536_v19 = vpop.f32.mrb[5].mxu1  ;;  %v597_v21 = vmul.f32 %v953_v14, %v953_v14  ;;  %v532_v26 = vsel %vm490_vm0, %v953_v14, 0.0 }
 0x157   : > { %495 = vst.msk [vmem:[%s1494_s18 + $0x20] sm:$0xff] %vm490_vm0, %v351_v17  ;;  %v530_v22 = vsel %vm490_vm0, %v351_v17, 0.0  ;;  %v596_v23 = vmul.f32 %v351_v17, %v351_v17  ;;  %511 = vst.msk [vmem:[%s1494_s18 + $0xa0] sm:$0xff] %vm490_vm0, %v1536_v19 }
 0x158   : > { %v531_v24 = vadd.f32 %v530_v22, %v529_v18  ;;  %v630_v25 = vadd.f32 %v629_v20, %v628_v16  ;;  %v633_v34 = vsel %vm490_vm0, %v597_v21, 0.0 }
 0x159   : > { %v631_v27 = vsel %vm490_vm0, %v596_v23, 0.0  ;;  %v956_v28 = vpop.f32.mrb[6].mxu0  ;;  %v1547_v29 = vpop.f32.mrb[6].mxu1 }
 0x15a   : > { %v632_v30 = vadd.f32 %v631_v27, %v630_v25  ;;  %498 = vst.msk [vmem:[%s1494_s18 + $0x38] sm:$0xff] %vm490_vm0, %v956_v28  ;;  %v361_v31 = vpop.f32.mrb[7].mxu0  ;;  %v533_v32 = vadd.f32 %v532_v26, %v531_v24  ;;  %514 = vst.msk [vmem:[%s1494_s18 + $0xb8] sm:$0xff] %vm490_vm0, %v1547_v29  ;;  %v1554_v33 = vpop.f32.mrb[7].mxu1  ;;  %v599_v35 = vmul.f32 %v956_v28, %v956_v28  ;;  %v536_v40 = vsel %vm490_vm0, %v956_v28, 0.0 }
 0x15b   : > { %497 = vst.msk [vmem:[%s1494_s18 + $0x30] sm:$0xff] %vm490_vm0, %v361_v31  ;;  %v534_v36 = vsel %vm490_vm0, %v361_v31, 0.0  ;;  %v598_v37 = vmul.f32 %v361_v31, %v361_v31  ;;  %513 = vst.msk [vmem:[%s1494_s18 + $0xb0] sm:$0xff] %vm490_vm0, %v1554_v33 }
 0x15c   : > { %v535_v38 = vadd.f32 %v534_v36, %v533_v32  ;;  %v634_v39 = vadd.f32 %v633_v34, %v632_v30  ;;  %v637_v48 = vsel %vm490_vm0, %v599_v35, 0.0  ;;  %v608_v32 = vmul.f32 %v1502_v61, %v1502_v61 }
 0x15d   : > { %v635_v41 = vsel %vm490_vm0, %v598_v37, 0.0  ;;  %v959_v42 = vpop.f32.mrb[8].mxu0  ;;  %v1565_v43 = vpop.f32.mrb[8].mxu1 }
 0x15e   : > { %v636_v44 = vadd.f32 %v635_v41, %v634_v39  ;;  %500 = vst.msk [vmem:[%s1494_s18 + $0x48] sm:$0xff] %vm490_vm0, %v959_v42  ;;  %v371_v45 = vpop.f32.mrb[9].mxu0  ;;  %v537_v46 = vadd.f32 %v536_v40, %v535_v38  ;;  %516 = vst.msk [vmem:[%s1494_s18 + $0xc8] sm:$0xff] %vm490_vm0, %v1565_v43  ;;  %v1572_v47 = vpop.f32.mrb[9].mxu1  ;;  %v601_v49 = vmul.f32 %v959_v42, %v959_v42  ;;  %v540_v54 = vsel %vm490_vm0, %v959_v42, 0.0 }
 0x15f   : > { %499 = vst.msk [vmem:[%s1494_s18 + $0x40] sm:$0xff] %vm490_vm0, %v371_v45  ;;  %v538_v50 = vsel %vm490_vm0, %v371_v45, 0.0  ;;  %v600_v51 = vmul.f32 %v371_v45, %v371_v45  ;;  %515 = vst.msk [vmem:[%s1494_s18 + $0xc0] sm:$0xff] %vm490_vm0, %v1572_v47 }
 0x160   : > { %v539_v52 = vadd.f32 %v538_v50, %v537_v46  ;;  %v638_v53 = vadd.f32 %v637_v48, %v636_v44  ;;  %v641_v0 = vsel %vm490_vm0, %v601_v49, 0.0 }
 0x161   : > { %v639_v55 = vsel %vm490_vm0, %v600_v51, 0.0  ;;  %v962_v56 = vpop.f32.mrb[10].mxu0  ;;  %v1583_v58 = vpop.f32.mrb[10].mxu1 }
 0x162   : > { %v640_v59 = vadd.f32 %v639_v55, %v638_v53  ;;  %502 = vst.msk [vmem:[%s1494_s18 + $0x58] sm:$0xff] %vm490_vm0, %v962_v56  ;;  %v381_v60 = vpop.f32.mrb[11].mxu0  ;;  %v541_v62 = vadd.f32 %v540_v54, %v539_v52  ;;  %518 = vst.msk [vmem:[%s1494_s18 + $0xd8] sm:$0xff] %vm490_vm0, %v1583_v58  ;;  %v1590_v63 = vpop.f32.mrb[11].mxu1  ;;  %v603_v1 = vmul.f32 %v962_v56, %v962_v56  ;;  %v544_v8 = vsel %vm490_vm0, %v962_v56, 0.0 }
 0x163   : > { %501 = vst.msk [vmem:[%s1494_s18 + $0x50] sm:$0xff] %vm490_vm0, %v381_v60  ;;  %v542_v2 = vsel %vm490_vm0, %v381_v60, 0.0  ;;  %v602_v3 = vmul.f32 %v381_v60, %v381_v60  ;;  %517 = vst.msk [vmem:[%s1494_s18 + $0xd0] sm:$0xff] %vm490_vm0, %v1590_v63 }
 0x164   : > { %v543_v5 = vadd.f32 %v542_v2, %v541_v62  ;;  %v642_v6 = vadd.f32 %v641_v0, %v640_v59  ;;  %v645_v17 = vsel %vm490_vm0, %v603_v1, 0.0 }
 0x165   : > { %v643_v9 = vsel %vm490_vm0, %v602_v3, 0.0  ;;  %v965_v10 = vpop.f32.mrb[12].mxu0  ;;  %v1601_v11 = vpop.f32.mrb[12].mxu1 }
 0x166   : > { %v644_v12 = vadd.f32 %v643_v9, %v642_v6  ;;  %504 = vst.msk [vmem:[%s1494_s18 + $0x68] sm:$0xff] %vm490_vm0, %v965_v10  ;;  %v391_v13 = vpop.f32.mrb[13].mxu0  ;;  %v545_v14 = vadd.f32 %v544_v8, %v543_v5  ;;  %520 = vst.msk [vmem:[%s1494_s18 + $0xe8] sm:$0xff] %vm490_vm0, %v1601_v11  ;;  %v1610_v16 = vpop.f32.mrb[13].mxu1  ;;  %v605_v18 = vmul.f32 %v965_v10, %v965_v10  ;;  %v548_v24 = vsel %vm490_vm0, %v965_v10, 0.0 }
 0x167   : > { %503 = vst.msk [vmem:[%s1494_s18 + $0x60] sm:$0xff] %vm490_vm0, %v391_v13  ;;  %v546_v20 = vsel %vm490_vm0, %v391_v13, 0.0  ;;  %v604_v21 = vmul.f32 %v391_v13, %v391_v13  ;;  %519 = vst.msk [vmem:[%s1494_s18 + $0xe0] sm:$0xff] %vm490_vm0, %v1610_v16 }
 0x168   : > { %v547_v22 = vadd.f32 %v546_v20, %v545_v14  ;;  %v646_v23 = vadd.f32 %v645_v17, %v644_v12  ;;  %v649_v35 = vsel %vm490_vm0, %v605_v18, 0.0 }
 0x169   : > { %v647_v25 = vsel %vm490_vm0, %v604_v21, 0.0  ;;  %v968_v26 = vpop.f32.mrb[14].mxu0  ;;  %v992_v27 = vpop.f32.mrb[14].mxu1 }
 0x16a   : > { %v648_v28 = vadd.f32 %v647_v25, %v646_v23  ;;  %506 = vst.msk [vmem:[%s1494_s18 + $0x78] sm:$0xff] %vm490_vm0, %v968_v26  ;;  %v401_v30 = vpop.f32.mrb[15].mxu0  ;;  %v549_v31 = vadd.f32 %v548_v24, %v547_v22  ;;  %522 = vst.msk [vmem:[%s1494_s18 + $0xf8] sm:$0xff] %vm490_vm0, %v992_v27  ;;  %v1634_v34 = vpop.f32.mrb[15].mxu1  ;;  %v607_v36 = vmul.f32 %v968_v26, %v968_v26  ;;  %v1644_v41 = vsel %vm490_vm0, %v992_v27, 0.0 }
 0x16b   : > { %505 = vst.msk [vmem:[%s1494_s18 + $0x70] sm:$0xff] %vm490_vm0, %v401_v30  ;;  %v550_v37 = vsel %vm490_vm0, %v401_v30, 0.0  ;;  %v606_v38 = vmul.f32 %v401_v30, %v401_v30  ;;  %521 = vst.msk [vmem:[%s1494_s18 + $0xf0] sm:$0xff] %vm490_vm0, %v1634_v34 }
 0x16c   : > { %v551_v39 = vadd.f32 %v550_v37, %v549_v31  ;;  %v650_v40 = vadd.f32 %v649_v35, %v648_v28 }
 0x16d   : > { %1178 = shalt.err (!%p1175_p7)
}
 0x16e   : > { %s1179_s29 = scalar_lea.hbm %s1622_s25, 4096  ;;  %s1183_s7 = scalar_lea.hbm %s1802_s2, 8192 }
 0x16f   : > { %p1180_p9 = scmp.ne.s32.totalorder %s1622_s25, %s1179_s29  ;;  %p1184_p5 = scmp.lt.u32.totalorder %s1622_s25, %s1802_s2 }
 0x170   : > { %p1185_p11 = scmp.lt.u32.totalorder %s1183_s7, %s1179_s29  ;;  %p1187_p4 = scmp.lt.u32.totalorder %s1179_s29, %s1622_s25 }
 0x171   : > { %p1181_p1 = pnand %p1180_p9, %p1391_p12 }
 0x172   : > { %p1186_p2 = por %p1185_p11, %p1184_p5 }
 0x173   : > { %p1182_p0 = pneg %p1181_p1 }
 0x174   : > { %p1188_p6 = por %p1187_p4, %p1186_p2 }
 0x176   : > { %p1189_p8 = pnand %p1188_p6, %p1182_p0 }
 0x178   : > { %1192 = shalt.err (!%p1189_p8)
}
 0x179   : > { %s1274_s18 = smov 128   ;;  %s1275_s20 = smov 8   ;;  %v552_v42 = vsel %vm490_vm0, %v968_v26, 0.0  ;;  %v651_v44 = vsel %vm490_vm0, %v606_v38, 0.0  ;;  %v554_v45 = vsel %vm490_vm0, %v1502_v61, 0.0  ;;  %v623_v46 = vmul.f32 %v992_v27, %v992_v27 }
 0x17a   : > { %1047 = dma.vmem_to_hbm [thread:$0]  (%p1391_p12), %s1624_s8, 4096, %s1622_s25, %s698_s5, %s1274_s18, %s1274_s18, %s1275_s20   ;;  %v553_v48 = vadd.f32 %v552_v42, %v551_v39  ;;  %v652_v49 = vadd.f32 %v651_v44, %v650_v40  ;;  %v609_v50 = vmul.f32 %v1490_v57, %v1490_v57  ;;  %v653_v51 = vsel %vm490_vm0, %v607_v36, 0.0 }
 0x17b   : > { %v655_v52 = vsel %vm490_vm0, %v608_v32, 0.0  ;;  %v610_v53 = vmul.f32 %v1519_v7, %v1519_v7  ;;  %v1681_v54 = vsel %vm490_vm0, %v623_v46, 0.0  ;;  %v556_v61 = vsel %vm490_vm0, %v1490_v57, 0.0  ;;  %s855_s8 = sshll.u32 %s1442_s6, 1  ;;  %s860_s9 = sshll.u32 %s1318_s16, 5 }
 0x17c   : > { %v654_v55 = vadd.f32 %v653_v51, %v652_v49  ;;  %v555_v56 = vadd.f32 %v554_v45, %v553_v48  ;;  %v558_v59 = vsel %vm490_vm0, %v1519_v7, 0.0  ;;  %v657_v0 = vsel %vm490_vm0, %v609_v50, 0.0  ;;  %s214_s4 = scalar_lea.vmem [#allocation8], %s855_s8  ;;  %s1756_s27 = scalar_lea.hbm %s1803_s3, %s860_s9 }
 0x17d   : > { %v611_v1 = vmul.f32 %v1512_v4, %v1512_v4  ;;  %v659_v2 = vsel %vm490_vm0, %v610_v53, 0.0  ;;  %v612_v3 = vmul.f32 %v1536_v19, %v1536_v19  ;;  %v560_v57 = vsel %vm490_vm0, %v1512_v4, 0.0  ;;  %s732_s25 = sshll.u32 %s214_s4, 4  ;;  %s703_s28 = scalar_lea.sflag [#allocation9], %s1442_s6  ;;  %s1758_s25 = int_to_ptr.vmem [resolvable:$true] %s732_s25 }
 0x17e   : > { %v656_v60 = vadd.f32 %v655_v52, %v654_v55  ;;  %v557_v62 = vadd.f32 %v556_v61, %v555_v56  ;;  %v562_v7 = vsel %vm490_vm0, %v1536_v19, 0.0  ;;  %v613_v12 = vmul.f32 %v1529_v15, %v1529_v15  ;;  %s1193_s16 = scalar_lea.vmem %s1758_s25, 32  ;;  %s1276_s23 = smov [#allocation8]  }
 0x17f   : > { %v661_v10 = vsel %vm490_vm0, %v611_v1, 0.0  ;;  %v663_v13 = vsel %vm490_vm0, %v612_v3, 0.0  ;;  %v614_v14 = vmul.f32 %v1554_v33, %v1554_v33  ;;  %v564_v4 = vsel %vm490_vm0, %v1529_v15, 0.0  ;;  %p1194_p10 = scmp.ne.s32.totalorder %s1758_s25, %s1193_s16  ;;  %s1197_s29 = sshll.u32 %s1276_s23, 4  ;;  %s1198_s29 = int_to_ptr.vmem [resolvable:$false] %s1197_s29 }
 0x180   : > { %v559_v5 = vadd.f32 %v558_v59, %v557_v62  ;;  %v658_v6 = vadd.f32 %v657_v0, %v656_v60  ;;  %v566_v19 = vsel %vm490_vm0, %v1554_v33, 0.0  ;;  %v665_v22 = vsel %vm490_vm0, %v613_v12, 0.0  ;;  %s1199_s30 = scalar_lea.vmem %s1198_s29, 64  ;;  %p1200_p7 = scmp.lt.s32.totalorder %s1758_s25, %s1198_s29 }
 0x181   : > { %v615_v23 = vmul.f32 %v1547_v29, %v1547_v29  ;;  %v667_v24 = vsel %vm490_vm0, %v614_v14, 0.0  ;;  %v616_v25 = vmul.f32 %v1572_v47, %v1572_v47  ;;  %v568_v15 = vsel %vm490_vm0, %v1547_v29, 0.0  ;;  %p1195_p13 = pnand %p1194_p10, %p1391_p12  ;;  %p1201_p9 = scmp.lt.s32.totalorder %s1199_s30, %s1193_s16 }
 0x182   : > { %v660_v8 = vadd.f32 %v659_v2, %v658_v6  ;;  %v561_v9 = vadd.f32 %v560_v57, %v559_v5  ;;  %v570_v33 = vsel %vm490_vm0, %v1572_v47, 0.0  ;;  %v617_v32 = vmul.f32 %v1565_v43, %v1565_v43 }
 0x183   : > { %v669_v31 = vsel %vm490_vm0, %v615_v23, 0.0  ;;  %v671_v35 = vsel %vm490_vm0, %v616_v25, 0.0  ;;  %v618_v36 = vmul.f32 %v1590_v63, %v1590_v63  ;;  %v572_v29 = vsel %vm490_vm0, %v1565_v43, 0.0  ;;  %p1196_p3 = pneg %p1195_p13  ;;  %p1202_p1 = por %p1201_p9, %p1200_p7 }
 0x184   : > { %v563_v17 = vadd.f32 %v562_v7, %v561_v9  ;;  %v662_v18 = vadd.f32 %v661_v10, %v660_v8  ;;  %v574_v47 = vsel %vm490_vm0, %v1590_v63, 0.0  ;;  %v673_v42 = vsel %vm490_vm0, %v617_v32, 0.0 }
 0x185   : > { %v619_v44 = vmul.f32 %v1583_v58, %v1583_v58  ;;  %v675_v45 = vsel %vm490_vm0, %v618_v36, 0.0  ;;  %v620_v46 = vmul.f32 %v1610_v16, %v1610_v16  ;;  %v576_v43 = vsel %vm490_vm0, %v1583_v58, 0.0  ;;  %p1203_p0 = pnand %p1202_p1, %p1196_p3 }
 0x186   : > { %v664_v20 = vadd.f32 %v663_v13, %v662_v18  ;;  %v565_v21 = vadd.f32 %v564_v4, %v563_v17  ;;  %v578_v63 = vsel %vm490_vm0, %v1610_v16, 0.0  ;;  %v621_v53 = vmul.f32 %v1601_v11, %v1601_v11 }
 0x187   : > { %v677_v52 = vsel %vm490_vm0, %v619_v44, 0.0  ;;  %v679_v55 = vsel %vm490_vm0, %v620_v46, 0.0  ;;  %v622_v56 = vmul.f32 %v1634_v34, %v1634_v34  ;;  %v580_v58 = vsel %vm490_vm0, %v1601_v11, 0.0 }
 0x188   : > { %v567_v26 = vadd.f32 %v566_v19, %v565_v21  ;;  %v666_v27 = vadd.f32 %v665_v22, %v664_v20  ;;  %v582_v16 = vsel %vm490_vm0, %v1634_v34, 0.0  ;;  %v681_v0 = vsel %vm490_vm0, %v621_v53, 0.0 }
 0x189   : > { %v683_v1 = vsel %vm490_vm0, %v622_v56, 0.0  ;;  %vm693_vm1 = vcmask 1040384   ;;  %vm695_vm2 = vcmask 254976  }
 0x18a   : > { %v668_v28 = vadd.f32 %v667_v24, %v666_v27  ;;  %v569_v30 = vadd.f32 %v568_v15, %v567_v26 }
 0x18c   : > { %v571_v37 = vadd.f32 %v570_v33, %v569_v30  ;;  %v670_v38 = vadd.f32 %v669_v31, %v668_v28 }
 0x18e   : > { %v672_v39 = vadd.f32 %v671_v35, %v670_v38  ;;  %v573_v40 = vadd.f32 %v572_v29, %v571_v37 }
 0x190   : > { %v575_v48 = vadd.f32 %v574_v47, %v573_v40  ;;  %v674_v49 = vadd.f32 %v673_v42, %v672_v39 }
 0x192   : > { %v676_v50 = vadd.f32 %v675_v45, %v674_v49  ;;  %v577_v51 = vadd.f32 %v576_v43, %v575_v48 }
 0x194   : > { %v579_v61 = vadd.f32 %v578_v63, %v577_v51  ;;  %v678_v59 = vadd.f32 %v677_v52, %v676_v50 }
 0x196   : > { %v680_v60 = vadd.f32 %v679_v55, %v678_v59  ;;  %v581_v62 = vadd.f32 %v580_v58, %v579_v61 }
 0x198   : > { %v583_v2 = vadd.f32 %v582_v16, %v581_v62  ;;  %v682_v3 = vadd.f32 %v681_v0, %v680_v60 }
 0x19a   : > { %v585_v5 = vadd.f32 %v1644_v41, %v583_v2  ;;  %v684_v6 = vadd.f32 %v683_v1, %v682_v3 }
 0x19c   : > { %v586_v57 = vrot.slane %v585_v5, 4  ;;  %v686_v7 = vadd.f32 %v1681_v54, %v684_v6 }
 0x19e   : > { %v587_v11 = vadd.f32 %v586_v57, %v585_v5  ;;  %v687_v8 = vrot.slane %v686_v7, 4 }
 0x1a0   : > { %v588_v9 = vrot.slane %v587_v11, 2  ;;  %v688_v10 = vadd.f32 %v687_v8, %v686_v7 }
 0x1a2   : > { %v589_v34 = vadd.f32 %v588_v9, %v587_v11  ;;  %v689_v12 = vrot.slane %v688_v10, 2 }
 0x1a4   : > { %v590_v13 = vrot.slane %v589_v34, 1  ;;  %v690_v14 = vadd.f32 %v689_v12, %v688_v10 }
 0x1a6   : > { %v691_v17 = vrot.slane %v690_v14, 1  ;;  %v591_v41 = vadd.f32 %v590_v13, %v589_v34 }
 0x1a8   : > { %v692_v18 = vadd.f32 %v691_v17, %v690_v14 }
 0x1aa   : > { %v694_v54 = vsel %vm693_vm1, %v591_v41, %v692_v18 }
 0x1ab   : > { %696 = vst.msk [vmem:[%s214_s4] sm:$0x3] %vm695_vm2, %v694_v54 }
 0x1ac   : > { %1206 = shalt.err (!%p1203_p0)
}
 0x1ad   : > { %s1207_s6 = scalar_lea.hbm %s1756_s27, 32  ;;  %s1211_s10 = scalar_lea.hbm %s1803_s3, 64 }
 0x1ae   : > { %p1208_p5 = scmp.ne.s32.totalorder %s1756_s27, %s1207_s6  ;;  %p1212_p4 = scmp.lt.u32.totalorder %s1756_s27, %s1803_s3 }
 0x1af   : > { %p1213_p6 = scmp.lt.u32.totalorder %s1211_s10, %s1207_s6  ;;  %p1215_p10 = scmp.lt.u32.totalorder %s1207_s6, %s1756_s27 }
 0x1b0   : > { %p1209_p11 = pnand %p1208_p5, %p1391_p12 }
 0x1b1   : > { %p1214_p8 = por %p1213_p6, %p1212_p4 }
 0x1b2   : > { %p1210_p2 = pneg %p1209_p11 }
 0x1b3   : > { %p1216_p13 = por %p1215_p10, %p1214_p8 }
 0x1b5   : > { %p1217_p3 = pnand %p1216_p13, %p1210_p2 }
 0x1b7   : > { %1220 = shalt.err (!%p1217_p3)
}
 0x1b8   : > { %1048 = dma.vmem_to_hbm [thread:$0]  (%p1391_p12), %s1758_s25, 32, %s1756_s27, %s703_s28  }
 0x1b9 PF: > { %s744_s20 = sand.u32 1, %s1255_s12   ;;  %p1818_p7 = scmp.ne.s32.totalorder %s1808_s19, 0 }
 0x1ba   : > { %p1819_p9 = scmp.ge.s32.totalorder %s1267_s15, 2  ;;  %s745_s8 = scalar_lea.sflag [#allocation4], %s744_s20 }
 0x1bc   : > { %p1060_p1 = pnand %p1819_p9, %p1818_p7 }
 0x1be   : > { %1246 = dma.done.wait (!%p1060_p1), %s745_s8, 4096  }
 0x1bf   : > { %1248 = vsyncadd (!%p1060_p1), %s745_s8, 4294963200  ;;  %s754_s9 = scalar_lea.sflag [#allocation9], %s744_s20 }
 0x1c0   : > { %1250 = dma.done.wait (!%p1060_p1), %s754_s9, 32  }
 0x1c1   : > { %1252 = vsyncadd (!%p1060_p1), %s754_s9, 4294967264  ;;  %p21_p12 = scmp.ge.s32.totalorder %s1353_s24, 4   ;;  %s1820_s12 = smov %s1259_s13 }
 0x1c2   : > { %s1821_s13 = smov %s1263_s14  ;;  %s1822_s14 = smov %s1387_s17 }
 0x1c3   : > { %s1823_s15 = smov %s1353_s24  ;;  %23 = sbr.rel (!%p21_p12) target bundleno = 8 (0x8), region = 94 }
 0x1ca   :  { %759 = vsyncpa [#allocation3], 1 }
 0x1cb   :  { %761 = vsyncpa [#allocation3 + $0x1], 1 }
 0x1cc   :  { %762 = vsyncpa [#allocation6], 1 }
 0x1cd   :  { %763 = vsyncpa [#allocation4], 1 }
 0x1ce   :  { %765 = vsyncpa [#allocation4 + $0x1], 1 }
 0x1cf   :  { %766 = vsyncpa [#allocation9], 1 }
 0x1d0   :  { %768 = vsyncpa [#allocation9 + $0x1], 1 }

// kernel: bottleneck_forward.7
= control target key start
LH: loop header
LB: loop body
LE: loop exit
PB: predicated region body
PF: predicated region fallthrough
CT: control target
= control target key end

     0   :  { %s1443_s0 = inlined_call_operand.hbm [shape: f32[512,128], index: 0, kind: input, shape index: {}]   ;;  %s1444_s1 = inlined_call_operand.hbm [shape: f32[1,128], index: 1, kind: input, shape index: {}]   ;;  %s1445_s2 = inlined_call_operand.hbm [shape: f32[1,128], index: 2, kind: input, shape index: {}]   ;;  %s1446_s3 = inlined_call_operand.hbm [shape: f32[512,128], index: 3, kind: input, shape index: {}]   ;;  %s1447_s4 = inlined_call_operand.hbm [shape: f32[512,128], index: 4, kind: output, shape index: {}]  }
   0x1   :  { %1453 = sst [smem:[#allocation15_spill]] %s1443_s0 }
   0x2   :  { %9 = vsyncpa [#allocation3], 0 }
   0x3   :  { %11 = vsyncpa [#allocation3 + $0x1], 0 }
   0x4   :  { %12 = vsyncpa [#allocation6], 0 }
   0x5   :  { %13 = vsyncpa [#allocation9], 0 }
   0x6   :  { %15 = vsyncpa [#allocation9 + $0x1], 0 }
   0x7   :  { %16 = vsyncpa [#allocation4], 0 }
   0x8   :  { %18 = vsyncpa [#allocation4 + $0x1], 0  ;;  %s980_s15 = smov 0   ;;  %s982_s16 = smov 0  }
   0x9   :  { %s984_s17 = smov 0   ;;  %s986_s18 = smov 0  }
   0xa LB: > { %s1001_s19 = sadd.s32 4294967295, %s944_s18   ;;  %s651_s20 = sadd.s32 4294967294, %s944_s18   ;;  %s944_s18 = sphi %s986_s18, %s1474_s18   ;;  %s940_s17 = sphi %s984_s17, %s1473_s17   ;;  %s936_s16 = sphi %s982_s16, %s1472_s16   ;;  %s932_s15 = sphi %s980_s15, %s1471_s15  }
   0xb   : > { %s1005_s21 = sadd.s32 1, %s944_s18   ;;  %s31_s22 = sadd.s32 1, %s940_s17 }
   0xc   : > { %s28_s23 = ssub.s32 %s944_s18, %s1005_s21  ;;  %p38_p0 = scmp.ne.s32.totalorder %s940_s17, %s936_s16 }
   0xd   : > { %p29_p1 = scmp.eq.s32.totalorder %s28_s23, 0  ;;  %p39_p2 = scmp.eq.s32.totalorder %s944_s18, 0 }
   0xe   : > { %p44_p3 = scmp.ne.s32.totalorder %s936_s16, %s932_s15  ;;  %p1448_p4 = scmp.eq.s32.totalorder %s1001_s19, 0 }
   0xf   : > { %s1017_s24 = scalar_select %p29_p1, %s940_s17, %s31_s22  }
  0x10   : > { %p1019_p5 = por %p39_p2, %p38_p0  ;;  %p1025_p6 = por %p1448_p4, %p44_p3 }
  0x11   : > { %p136_p7 = scmp.eq.s32.totalorder %s1001_s19, 1  ;;  %p142_p8 = scmp.eq.s32.totalorder %s651_s20, 1 }
  0x12   : > { %s1455_s26 = scalar_select %p1025_p6, 1, 0 }
  0x13   : > { %p652_p9 = scmp.ge.s32.totalorder %s944_s18, 1  ;;  %p149_p10 = scmp.lt.s32.totalorder %s944_s18, 3 }
  0x14   : > { %p1032_p11 = por %p136_p7, %p38_p0  ;;  %p1036_p12 = por %p142_p8, %p44_p3 }
  0x15   : > { %p1040_p13 = pnand %p652_p9, %p149_p10  ;;  %s946_s30 = smov [#allocation5]  }
  0x16   : > { %s1456_s27 = scalar_select %p1032_p11, 1, 0 }
  0x17   : > { %s1457_s28 = scalar_select %p1036_p12, 1, 0 }
  0x18   : > { %s1458_s29 = scalar_select %p1040_p13, 1, 0 }
  0x19   : > { %p692_p2 = pneg %p1040_p13  ;;  %s162_s5 = sshll.u32 %s946_s30, 4  ;;  %s163_s5 = int_to_ptr.vmem [resolvable:$true] %s162_s5 }
  0x1a   : > { %p712_p4 = scmp.lt.s32.totalorder %s944_s18, 2  ;;  %p1459_p0 = scmp.eq.s32.totalorder %s1001_s19, 0 }
  0x1b   : > { %s947_s8 = smov [#allocation7]   ;;  %s754_s12 = scalar_lea.hbm %s1444_s1, 16 }
  0x1c   : > { %p1050_p7 = pnand %p692_p2, %p1459_p0  ;;  %p1056_p3 = pnand %p712_p4, %p1019_p5 }
  0x1d   : > { %s173_s9 = sshll.u32 %s947_s8, 4  ;;  %p755_p8 = scmp.ne.s32.totalorder %s1444_s1, %s754_s12  ;;  %s1060_s9 = int_to_ptr.vmem [resolvable:$true] %s173_s9 }
  0x1e   : > { %s1461_s7 = scalar_select %p1056_p3, 1, 0 }
  0x1f   : > { %p756_p9 = pneg %p1050_p7  ;;  %p761_p10 = scmp.lt.u32.totalorder %s754_s12, %s1444_s1 }
  0x21   : > { %p757_p4 = pnand %p756_p9, %p755_p8 }
  0x23   : > { %p758_p5 = pneg %p757_p4 }
  0x25   : > { %p763_p2 = pnand %p761_p10, %p758_p5 }
  0x27   : > { %766 = shalt.err (!%p763_p2)
}
  0x28   : > { %s767_s23 = scalar_lea.vmem %s163_s5, 16  ;;  %s774_s25 = scalar_lea.vmem %s163_s5, 32 }
  0x29   : > { %p768_p0 = scmp.ne.s32.totalorder %s163_s5, %s767_s23  ;;  %p775_p11 = scmp.lt.s32.totalorder %s163_s5, %s163_s5 }
  0x2a   : > { %p776_p6 = scmp.lt.s32.totalorder %s774_s25, %s767_s23 }
  0x2b   : > { %p770_p1 = pnand %p768_p0, %p756_p9 }
  0x2c   : > { %p777_p13 = por %p776_p6, %p775_p11 }
  0x2d   : > { %p771_p12 = pneg %p770_p1 }
  0x2f   : > { %p778_p3 = pnand %p777_p13, %p771_p12 }
  0x31   : > { %781 = shalt.err (!%p778_p3)
}
  0x32   : > { %695 = dma.hbm_to_vmem [thread:$0]  (!%p1050_p7), %s1444_s1, 16, %s163_s5, [#allocation6]  }
  0x33   : > { %s1085_s10 = sand.u32 1, %s940_s17   ;;  %s782_s13 = scalar_lea.hbm %s1445_s2, 16 }
  0x34   : > { %p783_p6 = scmp.ne.s32.totalorder %s1445_s2, %s782_s13  ;;  %p789_p13 = scmp.lt.u32.totalorder %s782_s13, %s1445_s2 }
  0x36   : > { %p785_p11 = pnand %p783_p6, %p756_p9 }
  0x38   : > { %p786_p12 = pneg %p785_p11 }
  0x3a   : > { %p791_p1 = pnand %p789_p13, %p786_p12 }
  0x3c   : > { %794 = shalt.err (!%p791_p1)
}
  0x3d   : > { %s795_s5 = scalar_lea.vmem %s1060_s9, 16  ;;  %s802_s25 = scalar_lea.vmem %s1060_s9, 32 }
  0x3e   : > { %p796_p3 = scmp.ne.s32.totalorder %s1060_s9, %s795_s5  ;;  %p803_p5 = scmp.lt.s32.totalorder %s1060_s9, %s1060_s9 }
  0x3f   : > { %p804_p10 = scmp.lt.s32.totalorder %s802_s25, %s795_s5 }
  0x40   : > { %p798_p8 = pnand %p796_p3, %p756_p9 }
  0x41   : > { %p805_p2 = por %p804_p10, %p803_p5 }
  0x42   : > { %p799_p4 = pneg %p798_p8 }
  0x44   : > { %p806_p0 = pnand %p805_p2, %p799_p4 }
  0x46   : > { %809 = shalt.err (!%p806_p0)
}
  0x47   : > { %698 = dma.hbm_to_vmem [thread:$0]  (!%p1050_p7), %s1445_s2, 16, %s1060_s9, [#allocation6]  }
  0x48   : > { %s656_s11 = sshll.u32 %s1085_s10, 8  ;;  %s675_s12 = sshll.u32 %s944_s18, 12 }
  0x49   : > { %s1462_s0 = sld [smem:[#allocation15_spill]]  ;;  %s188_s6 = scalar_lea.vmem [#allocation2], %s656_s11 }
  0x4a   : > { %s195_s22 = sshll.u32 %s188_s6, 4  ;;  %s185_s23 = scalar_lea.sflag [#allocation3], %s1085_s10  ;;  %s1124_s22 = int_to_ptr.vmem [resolvable:$true] %s195_s22 }
  0x4b   : > { %p1463_p9 = scmp.ne.s32.totalorder %s1461_s7, 0 }
  0x4d   : > { %p812_p6 = pneg %p1463_p9 }
  0x4f   : > { %s1120_s20 = scalar_lea.hbm %s1462_s0, %s675_s12  ;;  %s815_s30 = scalar_lea.hbm %s1462_s0, 8192 }
  0x50   : > { %s810_s5 = scalar_lea.hbm %s1120_s20, 4096  ;;  %p816_p13 = scmp.lt.u32.totalorder %s1120_s20, %s1462_s0 }
  0x51   : > { %p811_p7 = scmp.ne.s32.totalorder %s1120_s20, %s810_s5  ;;  %p817_p1 = scmp.lt.u32.totalorder %s815_s30, %s810_s5 }
  0x52   : > { %p819_p8 = scmp.lt.u32.totalorder %s810_s5, %s1120_s20 }
  0x53   : > { %p813_p11 = pnand %p812_p6, %p811_p7  ;;  %p818_p3 = por %p817_p1, %p816_p13 }
  0x55   : > { %p814_p12 = pneg %p813_p11  ;;  %p820_p4 = por %p819_p8, %p818_p3 }
  0x57   : > { %p821_p5 = pnand %p820_p4, %p814_p12 }
  0x59   : > { %824 = shalt.err (!%p821_p5)
}
  0x5a   : > { %s825_s14 = scalar_lea.vmem %s1124_s22, 4096  ;;  %s948_s6 = smov [#allocation2]  }
  0x5b   : > { %p826_p10 = scmp.ne.s32.totalorder %s1124_s22, %s825_s14  ;;  %s830_s9 = sshll.u32 %s948_s6, 4  ;;  %s831_s9 = int_to_ptr.vmem [resolvable:$false] %s830_s9 }
  0x5c   : > { %s832_s25 = scalar_lea.vmem %s831_s9, 8192  ;;  %p833_p7 = scmp.lt.s32.totalorder %s1124_s22, %s831_s9 }
  0x5d   : > { %p828_p2 = pnand %p826_p10, %p812_p6  ;;  %p834_p11 = scmp.lt.s32.totalorder %s832_s25, %s825_s14 }
  0x5f   : > { %p829_p0 = pneg %p828_p2  ;;  %p835_p13 = por %p834_p11, %p833_p7 }
  0x61   : > { %p836_p1 = pnand %p835_p13, %p829_p0 }
  0x63   : > { %839 = shalt.err (!%p836_p1)
}
  0x64   : > { %s949_s5 = smov 128   ;;  %s950_s30 = smov 8  }
  0x65   : > { %702 = dma.hbm_to_vmem [thread:$0]  (!%p1463_p9), %s1120_s20, 4096, %s1124_s22, %s185_s23, %s949_s5, %s949_s5, %s950_s30  }
  0x66   : > { %s1162_s14 = scalar_lea.hbm %s1446_s3, %s675_s12  ;;  %s209_s6 = scalar_lea.vmem [#allocation8], %s656_s11 }
  0x67   : > { %s216_s9 = sshll.u32 %s209_s6, 4  ;;  %s206_s25 = scalar_lea.sflag [#allocation9], %s1085_s10  ;;  %s1166_s9 = int_to_ptr.vmem [resolvable:$true] %s216_s9 }
  0x68   : > { %s840_s0 = scalar_lea.hbm %s1162_s14, 4096  ;;  %s845_s12 = scalar_lea.hbm %s1446_s3, 8192 }
  0x69   : > { %p841_p12 = scmp.ne.s32.totalorder %s1162_s14, %s840_s0  ;;  %p846_p4 = scmp.lt.u32.totalorder %s1162_s14, %s1446_s3 }
  0x6a   : > { %p847_p5 = scmp.lt.u32.totalorder %s845_s12, %s840_s0  ;;  %p849_p2 = scmp.lt.u32.totalorder %s840_s0, %s1162_s14 }
  0x6b   : > { %p843_p3 = pnand %p841_p12, %p812_p6 }
  0x6c   : > { %p848_p10 = por %p847_p5, %p846_p4 }
  0x6d   : > { %p844_p8 = pneg %p843_p3 }
  0x6e   : > { %p850_p0 = por %p849_p2, %p848_p10 }
  0x70   : > { %p851_p7 = pnand %p850_p0, %p844_p8 }
  0x72   : > { %854 = shalt.err (!%p851_p7)
}
  0x73   : > { %s855_s11 = scalar_lea.vmem %s1166_s9, 4096  ;;  %s951_s13 = smov [#allocation8]  }
  0x74   : > { %p856_p11 = scmp.ne.s32.totalorder %s1166_s9, %s855_s11  ;;  %s860_s6 = sshll.u32 %s951_s13, 4  ;;  %s861_s6 = int_to_ptr.vmem [resolvable:$false] %s860_s6 }
  0x75   : > { %s862_s20 = scalar_lea.vmem %s861_s6, 8192  ;;  %p863_p12 = scmp.lt.s32.totalorder %s1166_s9, %s861_s6 }
  0x76   : > { %p858_p13 = pnand %p856_p11, %p812_p6  ;;  %p864_p3 = scmp.lt.s32.totalorder %s862_s20, %s855_s11 }
  0x78   : > { %p859_p1 = pneg %p858_p13  ;;  %p865_p4 = por %p864_p3, %p863_p12 }
  0x7a   : > { %p866_p5 = pnand %p865_p4, %p859_p1 }
  0x7c   : > { %869 = shalt.err (!%p866_p5)
}
  0x7d   : > { %705 = dma.hbm_to_vmem [thread:$0]  (!%p1463_p9), %s1162_s14, 4096, %s1166_s9, %s206_s25, %s949_s5, %s949_s5, %s950_s30  }
  0x7e   : > { %p1464_p6 = scmp.ne.s32.totalorder %s1458_s29, 0 }
  0x7f   : > { %s1200_s0 = sand.u32 (!%p1464_p6), 1, %s936_s16   ;;  %p1465_p8 = scmp.ne.s32.totalorder (!%p1464_p6), %s1455_s26, 0 }
  0x80   : > { %228 = sbr.rel (%p1464_p6) target bundleno = 196 (0xc4), region = 36  ;;  %s1203_s22 = sshll.u32 (!%p1464_p6), %s1200_s0, 8 }
  0x81   : > { %s231_s7 = scalar_lea.sflag (!%p1464_p6), [#allocation3], %s1200_s0  ;;  %s1207_s12 = scalar_lea.vmem (!%p1464_p6), [#allocation2], %s1203_s22 }
  0x87   : > { %915 = dma.done.wait (%p1465_p8), %s231_s7, 4096  }
  0x88   : > { %917 = vsyncadd (%p1465_p8), %s231_s7, 4294963200  ;;  %p1466_p9 = scmp.eq.s32.totalorder %s1001_s19, 0 }
  0x8a   : > { %919 = dma.done.wait (%p1466_p9), [#allocation6], 32   ;;  %p1467_p10 = pmov %p1466_p9 }
  0x8b   : > { %s248_s29 = scalar_lea.sflag [#allocation9], %s1200_s0  ;;  %s1219_s10 = scalar_lea.vmem [#allocation8], %s1203_s22 }
  0x8c   : > { %921 = vsyncadd (%p1467_p10), [#allocation6], 4294967264 }
  0x8d   : > { %923 = dma.done.wait (%p1465_p8), %s248_s29, 4096  }
  0x8e   : > { %925 = vsyncadd (%p1465_p8), %s248_s29, 4294963200  ;;  %v284_v0 = vld [vmem:[%s1207_s12] sm:$0xff]  ;;  %v285_v4 = vld [vmem:[%s1207_s12 + $0x8] sm:$0xff]  ;;  %s1266_s26 = scalar_lea.vmem [#allocation10], %s1203_s22  ;;  %s677_s5 = sshll.u32 %s1001_s19, 12 }
  0x8f   : > { %v1226_v1 = vld [vmem:[#allocation5] ss:$0 sm:$0xff]  ;;  %v1228_v2 = vld [vmem:[#allocation7] ss:$0 sm:$0xff]  ;;  %v394_v5 = vld [vmem:[%s1219_s10] sm:$0xff]  ;;  %s536_s30 = sshll.u32 %s1266_s26, 4  ;;  %s1393_s19 = scalar_lea.hbm %s1447_s4, %s677_s5  ;;  %s1395_s30 = int_to_ptr.vmem [resolvable:$true] %s536_s30 }
  0x90   : > { %v323_v3 = vmul.f32 %v1226_v1, %v284_v0  ;;  %v324_v6 = vmul.f32 %v1226_v1, %v285_v4  ;;  %v286_v7 = vld [vmem:[%s1207_s12 + $0x10] sm:$0xff]  ;;  %v287_v8 = vld [vmem:[%s1207_s12 + $0x18] sm:$0xff]  ;;  %v288_v14 = vld [vmem:[%s1207_s12 + $0x20] sm:$0xff]  ;;  %s523_s25 = scalar_lea.sflag [#allocation4], %s1200_s0  ;;  %s870_s23 = scalar_lea.vmem %s1395_s30, 4096 }
  0x91   : > { %v395_v10 = vld [vmem:[%s1219_s10 + $0x8] sm:$0xff]  ;;  %v325_v11 = vmul.f32 %v1226_v1, %v286_v7  ;;  %v396_v12 = vld [vmem:[%s1219_s10 + $0x10] sm:$0xff]  ;;  %v326_v13 = vmul.f32 %v1226_v1, %v287_v8  ;;  %v397_v16 = vld [vmem:[%s1219_s10 + $0x18] sm:$0xff]  ;;  %v327_v17 = vmul.f32 %v1226_v1, %v288_v14  ;;  %p871_p2 = scmp.ne.s32.totalorder %s1395_s30, %s870_s23  ;;  %p1468_p0 = scmp.ne.s32.totalorder %s1456_s27, 0 }
  0x92   : > { %v362_v9 = vadd.f32 %v1228_v2, %v323_v3  ;;  %v363_v15 = vadd.f32 %v1228_v2, %v324_v6  ;;  %v289_v18 = vld [vmem:[%s1207_s12 + $0x28] sm:$0xff]  ;;  %v290_v19 = vld [vmem:[%s1207_s12 + $0x30] sm:$0xff]  ;;  %v291_v25 = vld [vmem:[%s1207_s12 + $0x38] sm:$0xff]  ;;  %s952_s8 = smov [#allocation10]  }
  0x93   : > { %v364_v21 = vadd.f32 %v1228_v2, %v325_v11  ;;  %v365_v22 = vadd.f32 %v1228_v2, %v326_v13  ;;  %v398_v23 = vld [vmem:[%s1219_s10 + $0x20] sm:$0xff]  ;;  %v328_v24 = vmul.f32 %v1226_v1, %v289_v18  ;;  %v366_v27 = vadd.f32 %v1228_v2, %v327_v17  ;;  %v399_v28 = vld [vmem:[%s1219_s10 + $0x28] sm:$0xff]  ;;  %v400_v36 = vld [vmem:[%s1219_s10 + $0x30] sm:$0xff]  ;;  %p872_p7 = pnand %p871_p2, %p1468_p0  ;;  %s874_s11 = sshll.u32 %s952_s8, 4  ;;  %s875_s11 = int_to_ptr.vmem [resolvable:$false] %s874_s11 }
  0x94   : > { %v426_v20 = vadd.f32 %v394_v5, %v362_v9  ;;  %v427_v26 = vadd.f32 %v395_v10, %v363_v15  ;;  %v329_v29 = vmul.f32 %v1226_v1, %v290_v19  ;;  %v330_v30 = vmul.f32 %v1226_v1, %v291_v25  ;;  %v292_v31 = vld [vmem:[%s1207_s12 + $0x40] sm:$0xff]  ;;  %v293_v38 = vld [vmem:[%s1207_s12 + $0x48] sm:$0xff]  ;;  %v294_v43 = vld [vmem:[%s1207_s12 + $0x50] sm:$0xff]  ;;  %s876_s13 = scalar_lea.vmem %s875_s11, 8192  ;;  %p877_p13 = scmp.lt.s32.totalorder %s1395_s30, %s875_s11 }
  0x95   : > { %v428_v33 = vadd.f32 %v396_v12, %v364_v21  ;;  %v429_v34 = vadd.f32 %v397_v16, %v365_v22  ;;  %v367_v35 = vadd.f32 %v1228_v2, %v328_v24  ;;  %v401_v37 = vld [vmem:[%s1219_s10 + $0x38] sm:$0xff]  ;;  %v430_v40 = vadd.f32 %v398_v23, %v366_v27  ;;  %v402_v53 = vld [vmem:[%s1219_s10 + $0x40] sm:$0xff]  ;;  %v403_v58 = vld [vmem:[%s1219_s10 + $0x48] sm:$0xff]  ;;  %p873_p11 = pneg %p872_p7  ;;  %p878_p1 = scmp.lt.s32.totalorder %s876_s13, %s870_s23 }
  0x96   : > { %v458_v32 = vmax.f32 %v426_v20, 0.0  ;;  %v459_v39 = vmax.f32 %v427_v26, 0.0  ;;  %v368_v41 = vadd.f32 %v1228_v2, %v329_v29  ;;  %v369_v42 = vadd.f32 %v1228_v2, %v330_v30  ;;  %v295_v44 = vld [vmem:[%s1207_s12 + $0x58] sm:$0xff]  ;;  %v296_v49 = vld [vmem:[%s1207_s12 + $0x60] sm:$0xff]  ;;  %v297_v55 = vld [vmem:[%s1207_s12 + $0x68] sm:$0xff] }
  0x97   : > { %v460_v45 = vmax.f32 %v428_v33, 0.0  ;;  %v461_v46 = vmax.f32 %v429_v34, 0.0  ;;  %v431_v47 = vadd.f32 %v399_v28, %v367_v35  ;;  %v331_v48 = vmul.f32 %v1226_v1, %v292_v31  ;;  %v298_v61 = vld [vmem:[%s1207_s12 + $0x70] sm:$0xff]  ;;  %v299_v62 = vld [vmem:[%s1207_s12 + $0x78] sm:$0xff]  ;;  %v406_v10 = vld [vmem:[%s1219_s10 + $0x60] sm:$0xff]  ;;  %p879_p12 = por %p878_p1, %p877_p13 }
  0x98   : > { %490 = vst [vmem:[%s1266_s26] sm:$0xff] %v458_v32  ;;  %491 = vst [vmem:[%s1266_s26 + $0x8] sm:$0xff] %v459_v39  ;;  %v462_v50 = vmax.f32 %v430_v40, 0.0  ;;  %v432_v51 = vadd.f32 %v400_v36, %v368_v41  ;;  %v433_v52 = vadd.f32 %v401_v37, %v369_v42  ;;  %v332_v54 = vmul.f32 %v1226_v1, %v293_v38  ;;  %v404_v4 = vld [vmem:[%s1219_s10 + $0x50] sm:$0xff]  ;;  %v405_v5 = vld [vmem:[%s1219_s10 + $0x58] sm:$0xff] }
  0x99   : > { %492 = vst [vmem:[%s1266_s26 + $0x10] sm:$0xff] %v460_v45  ;;  %493 = vst [vmem:[%s1266_s26 + $0x18] sm:$0xff] %v461_v46  ;;  %v463_v56 = vmax.f32 %v431_v47, 0.0  ;;  %v370_v57 = vadd.f32 %v1228_v2, %v331_v48  ;;  %v333_v59 = vmul.f32 %v1226_v1, %v294_v43  ;;  %v334_v60 = vmul.f32 %v1226_v1, %v295_v44  ;;  %v407_v14 = vld [vmem:[%s1219_s10 + $0x68] sm:$0xff]  ;;  %v300_v17 = vld [vmem:[%s1207_s12 + $0x80] sm:$0xff]  ;;  %p880_p3 = pnand %p879_p12, %p873_p11 }
  0x9a   : > { %494 = vst [vmem:[%s1266_s26 + $0x20] sm:$0xff] %v462_v50  ;;  %v464_v63 = vmax.f32 %v432_v51, 0.0  ;;  %v465_v0 = vmax.f32 %v433_v52, 0.0  ;;  %v371_v3 = vadd.f32 %v1228_v2, %v332_v54  ;;  %v335_v6 = vmul.f32 %v1226_v1, %v296_v49  ;;  %v408_v22 = vld [vmem:[%s1219_s10 + $0x70] sm:$0xff]  ;;  %v409_v23 = vld [vmem:[%s1219_s10 + $0x78] sm:$0xff]  ;;  %v301_v24 = vld [vmem:[%s1207_s12 + $0x88] sm:$0xff] }
  0x9b   : > { %495 = vst [vmem:[%s1266_s26 + $0x28] sm:$0xff] %v463_v56  ;;  %v434_v7 = vadd.f32 %v402_v53, %v370_v57  ;;  %v372_v8 = vadd.f32 %v1228_v2, %v333_v59  ;;  %v373_v9 = vadd.f32 %v1228_v2, %v334_v60  ;;  %v336_v11 = vmul.f32 %v1226_v1, %v297_v55  ;;  %v302_v29 = vld [vmem:[%s1207_s12 + $0x90] sm:$0xff]  ;;  %v303_v30 = vld [vmem:[%s1207_s12 + $0x98] sm:$0xff]  ;;  %v304_v35 = vld [vmem:[%s1207_s12 + $0xa0] sm:$0xff] }
  0x9c   : > { %496 = vst [vmem:[%s1266_s26 + $0x30] sm:$0xff] %v464_v63  ;;  %497 = vst [vmem:[%s1266_s26 + $0x38] sm:$0xff] %v465_v0  ;;  %v435_v12 = vadd.f32 %v403_v58, %v371_v3  ;;  %v374_v13 = vadd.f32 %v1228_v2, %v335_v6  ;;  %v337_v15 = vmul.f32 %v1226_v1, %v298_v61  ;;  %v410_v39 = vld [vmem:[%s1219_s10 + $0x80] sm:$0xff]  ;;  %v411_v44 = vld [vmem:[%s1219_s10 + $0x88] sm:$0xff] }
  0x9d   : > { %v338_v16 = vmul.f32 %v1226_v1, %v299_v62  ;;  %v466_v18 = vmax.f32 %v434_v7, 0.0  ;;  %v436_v19 = vadd.f32 %v404_v4, %v372_v8  ;;  %v437_v20 = vadd.f32 %v405_v5, %v373_v9  ;;  %v305_v41 = vld [vmem:[%s1207_s12 + $0xa8] sm:$0xff]  ;;  %v306_v47 = vld [vmem:[%s1207_s12 + $0xb0] sm:$0xff]  ;;  %v307_v48 = vld [vmem:[%s1207_s12 + $0xb8] sm:$0xff] }
  0x9e   : > { %v375_v21 = vadd.f32 %v1228_v2, %v336_v11  ;;  %v467_v25 = vmax.f32 %v435_v12, 0.0  ;;  %v438_v26 = vadd.f32 %v406_v10, %v374_v13  ;;  %v376_v27 = vadd.f32 %v1228_v2, %v337_v15  ;;  %v412_v52 = vld [vmem:[%s1219_s10 + $0x90] sm:$0xff]  ;;  %v413_v53 = vld [vmem:[%s1219_s10 + $0x98] sm:$0xff]  ;;  %v414_v58 = vld [vmem:[%s1219_s10 + $0xa0] sm:$0xff] }
  0x9f   : > { %v377_v28 = vadd.f32 %v1228_v2, %v338_v16  ;;  %498 = vst [vmem:[%s1266_s26 + $0x40] sm:$0xff] %v466_v18  ;;  %v468_v31 = vmax.f32 %v436_v19, 0.0  ;;  %v469_v32 = vmax.f32 %v437_v20, 0.0  ;;  %v339_v34 = vmul.f32 %v1226_v1, %v300_v17  ;;  %v415_v62 = vld [vmem:[%s1219_s10 + $0xa8] sm:$0xff]  ;;  %v308_v3 = vld [vmem:[%s1207_s12 + $0xc0] sm:$0xff]  ;;  %v416_v8 = vld [vmem:[%s1219_s10 + $0xb0] sm:$0xff] }
  0xa0   : > { %v439_v33 = vadd.f32 %v407_v14, %v375_v21  ;;  %499 = vst [vmem:[%s1266_s26 + $0x48] sm:$0xff] %v467_v25  ;;  %v470_v36 = vmax.f32 %v438_v26, 0.0  ;;  %v440_v37 = vadd.f32 %v408_v22, %v376_v27  ;;  %v340_v40 = vmul.f32 %v1226_v1, %v301_v24  ;;  %v417_v9 = vld [vmem:[%s1219_s10 + $0xb8] sm:$0xff]  ;;  %v309_v10 = vld [vmem:[%s1207_s12 + $0xc8] sm:$0xff]  ;;  %v310_v15 = vld [vmem:[%s1207_s12 + $0xd0] sm:$0xff] }
  0xa1   : > { %v441_v38 = vadd.f32 %v409_v23, %v377_v28  ;;  %500 = vst [vmem:[%s1266_s26 + $0x50] sm:$0xff] %v468_v31  ;;  %501 = vst [vmem:[%s1266_s26 + $0x58] sm:$0xff] %v469_v32  ;;  %v378_v43 = vadd.f32 %v1228_v2, %v339_v34  ;;  %v341_v45 = vmul.f32 %v1226_v1, %v302_v29  ;;  %v311_v16 = vld [vmem:[%s1207_s12 + $0xd8] sm:$0xff]  ;;  %v312_v21 = vld [vmem:[%s1207_s12 + $0xe0] sm:$0xff] }
  0xa2   : > { %v471_v42 = vmax.f32 %v439_v33, 0.0  ;;  %v342_v46 = vmul.f32 %v1226_v1, %v303_v30  ;;  %502 = vst [vmem:[%s1266_s26 + $0x60] sm:$0xff] %v470_v36  ;;  %v472_v49 = vmax.f32 %v440_v37, 0.0  ;;  %v379_v51 = vadd.f32 %v1228_v2, %v340_v40  ;;  %v418_v25 = vld [vmem:[%s1219_s10 + $0xc0] sm:$0xff]  ;;  %v419_v30 = vld [vmem:[%s1219_s10 + $0xc8] sm:$0xff]  ;;  %v315_v34 = vld [vmem:[%s1207_s12 + $0xf8] sm:$0xff] }
  0xa3   : > { %v473_v50 = vmax.f32 %v441_v38, 0.0  ;;  %v343_v54 = vmul.f32 %v1226_v1, %v304_v35  ;;  %v442_v55 = vadd.f32 %v410_v39, %v378_v43  ;;  %v380_v56 = vadd.f32 %v1228_v2, %v341_v45  ;;  %v313_v27 = vld [vmem:[%s1207_s12 + $0xe8] sm:$0xff]  ;;  %v314_v33 = vld [vmem:[%s1207_s12 + $0xf0] sm:$0xff]  ;;  %v421_v39 = vld [vmem:[%s1219_s10 + $0xd8] sm:$0xff] }
  0xa4   : > { %503 = vst [vmem:[%s1266_s26 + $0x68] sm:$0xff] %v471_v42  ;;  %v381_v57 = vadd.f32 %v1228_v2, %v342_v46  ;;  %v344_v59 = vmul.f32 %v1226_v1, %v305_v41  ;;  %504 = vst [vmem:[%s1266_s26 + $0x70] sm:$0xff] %v472_v49  ;;  %v443_v60 = vadd.f32 %v411_v44, %v379_v51  ;;  %v420_v38 = vld [vmem:[%s1219_s10 + $0xd0] sm:$0xff]  ;;  %v422_v44 = vld [vmem:[%s1219_s10 + $0xe0] sm:$0xff] }
  0xa5   : > { %505 = vst [vmem:[%s1266_s26 + $0x78] sm:$0xff] %v473_v50  ;;  %v382_v61 = vadd.f32 %v1228_v2, %v343_v54  ;;  %v345_v63 = vmul.f32 %v1226_v1, %v306_v47  ;;  %v346_v0 = vmul.f32 %v1226_v1, %v307_v48  ;;  %v474_v4 = vmax.f32 %v442_v55, 0.0  ;;  %v423_v48 = vld [vmem:[%s1219_s10 + $0xe8] sm:$0xff]  ;;  %v424_v55 = vld [vmem:[%s1219_s10 + $0xf0] sm:$0xff] }
  0xa6   : > { %v444_v5 = vadd.f32 %v412_v52, %v380_v56  ;;  %v445_v6 = vadd.f32 %v413_v53, %v381_v57  ;;  %v383_v7 = vadd.f32 %v1228_v2, %v344_v59  ;;  %v475_v11 = vmax.f32 %v443_v60, 0.0  ;;  %v425_v56 = vld [vmem:[%s1219_s10 + $0xf8] sm:$0xff] }
  0xa7   : > { %v446_v12 = vadd.f32 %v414_v58, %v382_v61  ;;  %v384_v13 = vadd.f32 %v1228_v2, %v345_v63  ;;  %v385_v14 = vadd.f32 %v1228_v2, %v346_v0  ;;  %506 = vst [vmem:[%s1266_s26 + $0x80] sm:$0xff] %v474_v4  ;;  %v347_v20 = vmul.f32 %v1226_v1, %v308_v3 }
  0xa8   : > { %v476_v17 = vmax.f32 %v444_v5, 0.0  ;;  %v477_v18 = vmax.f32 %v445_v6, 0.0  ;;  %v447_v19 = vadd.f32 %v415_v62, %v383_v7  ;;  %507 = vst [vmem:[%s1266_s26 + $0x88] sm:$0xff] %v475_v11  ;;  %v348_v26 = vmul.f32 %v1226_v1, %v309_v10 }
  0xa9   : > { %v478_v22 = vmax.f32 %v446_v12, 0.0  ;;  %v448_v23 = vadd.f32 %v416_v8, %v384_v13  ;;  %v449_v24 = vadd.f32 %v417_v9, %v385_v14  ;;  %v386_v29 = vadd.f32 %v1228_v2, %v347_v20 }
  0xaa   : > { %508 = vst [vmem:[%s1266_s26 + $0x90] sm:$0xff] %v476_v17  ;;  %509 = vst [vmem:[%s1266_s26 + $0x98] sm:$0xff] %v477_v18  ;;  %v479_v28 = vmax.f32 %v447_v19, 0.0  ;;  %v349_v31 = vmul.f32 %v1226_v1, %v310_v15  ;;  %v350_v32 = vmul.f32 %v1226_v1, %v311_v16  ;;  %v387_v37 = vadd.f32 %v1228_v2, %v348_v26 }
  0xab   : > { %510 = vst [vmem:[%s1266_s26 + $0xa0] sm:$0xff] %v478_v22  ;;  %v480_v35 = vmax.f32 %v448_v23, 0.0  ;;  %v481_v36 = vmax.f32 %v449_v24, 0.0  ;;  %v351_v40 = vmul.f32 %v1226_v1, %v312_v21  ;;  %v450_v41 = vadd.f32 %v418_v25, %v386_v29 }
  0xac   : > { %511 = vst [vmem:[%s1266_s26 + $0xa8] sm:$0xff] %v479_v28  ;;  %v388_v42 = vadd.f32 %v1228_v2, %v349_v31  ;;  %v389_v43 = vadd.f32 %v1228_v2, %v350_v32  ;;  %v352_v45 = vmul.f32 %v1226_v1, %v313_v27  ;;  %v451_v46 = vadd.f32 %v419_v30, %v387_v37 }
  0xad   : > { %512 = vst [vmem:[%s1266_s26 + $0xb0] sm:$0xff] %v480_v35  ;;  %513 = vst [vmem:[%s1266_s26 + $0xb8] sm:$0xff] %v481_v36  ;;  %v390_v47 = vadd.f32 %v1228_v2, %v351_v40  ;;  %v353_v49 = vmul.f32 %v1226_v1, %v314_v33  ;;  %v354_v50 = vmul.f32 %v1226_v1, %v315_v34  ;;  %v482_v51 = vmax.f32 %v450_v41, 0.0 }
  0xae   : > { %v452_v52 = vadd.f32 %v420_v38, %v388_v42  ;;  %v453_v53 = vadd.f32 %v421_v39, %v389_v43  ;;  %v391_v54 = vadd.f32 %v1228_v2, %v352_v45  ;;  %v483_v57 = vmax.f32 %v451_v46, 0.0 }
  0xaf   : > { %v454_v58 = vadd.f32 %v422_v44, %v390_v47  ;;  %v392_v59 = vadd.f32 %v1228_v2, %v353_v49  ;;  %v393_v60 = vadd.f32 %v1228_v2, %v354_v50  ;;  %514 = vst [vmem:[%s1266_s26 + $0xc0] sm:$0xff] %v482_v51 }
  0xb0   : > { %v484_v1 = vmax.f32 %v452_v52, 0.0  ;;  %v485_v61 = vmax.f32 %v453_v53, 0.0  ;;  %v455_v62 = vadd.f32 %v423_v48, %v391_v54  ;;  %515 = vst [vmem:[%s1266_s26 + $0xc8] sm:$0xff] %v483_v57 }
  0xb1   : > { %v486_v63 = vmax.f32 %v454_v58, 0.0  ;;  %v456_v0 = vadd.f32 %v424_v55, %v392_v59  ;;  %v457_v3 = vadd.f32 %v425_v56, %v393_v60 }
  0xb2   : > { %516 = vst [vmem:[%s1266_s26 + $0xd0] sm:$0xff] %v484_v1  ;;  %517 = vst [vmem:[%s1266_s26 + $0xd8] sm:$0xff] %v485_v61  ;;  %v487_v4 = vmax.f32 %v455_v62, 0.0 }
  0xb3   : > { %518 = vst [vmem:[%s1266_s26 + $0xe0] sm:$0xff] %v486_v63  ;;  %v488_v2 = vmax.f32 %v456_v0, 0.0  ;;  %v489_v5 = vmax.f32 %v457_v3, 0.0 }
  0xb4   : > { %519 = vst [vmem:[%s1266_s26 + $0xe8] sm:$0xff] %v487_v4 }
  0xb5   : > { %520 = vst [vmem:[%s1266_s26 + $0xf0] sm:$0xff] %v488_v2  ;;  %521 = vst [vmem:[%s1266_s26 + $0xf8] sm:$0xff] %v489_v5 }
  0xb6   : > { %883 = shalt.err (!%p880_p3)
}
  0xb7   : > { %s884_s6 = scalar_lea.hbm %s1393_s19, 4096  ;;  %s888_s7 = scalar_lea.hbm %s1447_s4, 8192 }
  0xb8   : > { %p885_p4 = scmp.ne.s32.totalorder %s1393_s19, %s884_s6  ;;  %p889_p8 = scmp.lt.u32.totalorder %s1393_s19, %s1447_s4 }
  0xb9   : > { %p890_p9 = scmp.lt.u32.totalorder %s888_s7, %s884_s6  ;;  %p892_p2 = scmp.lt.u32.totalorder %s884_s6, %s1393_s19 }
  0xba   : > { %p886_p5 = pnand %p885_p4, %p1468_p0 }
  0xbb   : > { %p891_p10 = por %p890_p9, %p889_p8 }
  0xbc   : > { %p887_p6 = pneg %p886_p5 }
  0xbd   : > { %p893_p7 = por %p892_p2, %p891_p10 }
  0xbf   : > { %p894_p11 = pnand %p893_p7, %p887_p6 }
  0xc1   : > { %897 = shalt.err (!%p894_p11)
}
  0xc2   : > { %s953_s10 = smov 128   ;;  %s954_s26 = smov 8  }
  0xc3   : > { %690 = dma.vmem_to_hbm [thread:$0]  (%p1468_p0), %s1395_s30, 4096, %s1393_s19, %s523_s25, %s953_s10, %s953_s10, %s954_s26  }
  0xc4 PF: > { %s551_s5 = sand.u32 1, %s932_s15   ;;  %p1469_p13 = scmp.ne.s32.totalorder %s1457_s28, 0 }
  0xc5   : > { %p1470_p1 = scmp.ge.s32.totalorder %s944_s18, 2  ;;  %s552_s14 = scalar_lea.sflag [#allocation4], %s551_s5 }
  0xc7   : > { %p707_p12 = pnand %p1470_p1, %p1469_p13 }
  0xc9   : > { %927 = dma.done.wait (!%p707_p12), %s552_s14, 4096  }
  0xca   : > { %929 = vsyncadd (!%p707_p12), %s552_s14, 4294963200  ;;  %p21_p3 = scmp.ge.s32.totalorder %s1005_s21, 4   ;;  %s1471_s15 = smov %s936_s16 }
  0xcb   : > { %s1472_s16 = smov %s940_s17  ;;  %s1473_s17 = smov %s1017_s24 }
  0xcc   : > { %s1474_s18 = smov %s1005_s21  ;;  %23 = sbr.rel (!%p21_p3) target bundleno = 10 (0xa), region = 102 }
  0xd3   :  { %557 = vsyncpa [#allocation3], 1 }
  0xd4   :  { %559 = vsyncpa [#allocation3 + $0x1], 1 }
  0xd5   :  { %560 = vsyncpa [#allocation6], 1 }
  0xd6   :  { %561 = vsyncpa [#allocation9], 1 }
  0xd7   :  { %563 = vsyncpa [#allocation9 + $0x1], 1 }
  0xd8   :  { %564 = vsyncpa [#allocation4], 1 }
  0xd9   :  { %566 = vsyncpa [#allocation4 + $0x1], 1 }

// kernel: bottleneck_forward.6
= control target key start
LH: loop header
LB: loop body
LE: loop exit
PB: predicated region body
PF: predicated region fallthrough
CT: control target
= control target key end

     0   :  { %11 = vsyncpa [#allocation3], 0  ;;  %s2145_s0 = inlined_call_operand.hbm [shape: f32[512,32], index: 0, kind: input, shape index: {}]   ;;  %s2146_s1 = inlined_call_operand.hbm [shape: f32[1,32], index: 1, kind: input, shape index: {}]   ;;  %s2147_s2 = inlined_call_operand.hbm [shape: f32[1,32], index: 2, kind: input, shape index: {}]   ;;  %s2148_s3 = inlined_call_operand.hbm [shape: f32[32,128], index: 3, kind: input, shape index: {}]   ;;  %s2149_s4 = inlined_call_operand.hbm [shape: f32[512,128], index: 4, kind: output, shape index: {0}]   ;;  %s2150_s5 = inlined_call_operand.hbm [shape: f32[2,2,128], index: 5, kind: output, shape index: {1}]  }
   0x1   :  { %13 = vsyncpa [#allocation3 + $0x1], 0 }
   0x2   :  { %14 = vsyncpa [#allocation6], 0 }
   0x3   :  { %15 = vsyncpa [#allocation9], 0 }
   0x4   :  { %16 = vsyncpa [#allocation4], 0 }
   0x5   :  { %18 = vsyncpa [#allocation4 + $0x1], 0 }
   0x6   :  { %19 = vsyncpa [#allocation12], 0 }
   0x7   :  { %21 = vsyncpa [#allocation12 + $0x1], 0  ;;  %s1582_s18 = smov 0   ;;  %s1584_s19 = smov 0  }
   0x8   :  { %s1586_s20 = smov 0   ;;  %s1588_s21 = smov 0  }
   0x9 LB: > { %s1603_s22 = sadd.s32 4294967295, %s1540_s21   ;;  %s1071_s23 = sadd.s32 4294967294, %s1540_s21   ;;  %s1540_s21 = sphi %s1588_s21, %s2173_s21   ;;  %s1536_s20 = sphi %s1586_s20, %s2172_s20   ;;  %s1532_s19 = sphi %s1584_s19, %s2171_s19   ;;  %s1528_s18 = sphi %s1582_s18, %s2170_s18  }
   0xa   : > { %p47_p0 = scmp.ne.s32.totalorder %s1532_s19, %s1528_s18  ;;  %p2151_p1 = scmp.eq.s32.totalorder %s1603_s22, 0 }
   0xb   : > { %p140_p3 = scmp.eq.s32.totalorder %s1071_s23, 1  ;;  %p1072_p5 = scmp.ge.s32.totalorder %s1540_s21, 1 }
   0xc   : > { %p1612_p4 = por %p2151_p1, %p47_p0  ;;  %p173_p7 = scmp.lt.s32.totalorder %s1540_s21, 3 }
   0xd   : > { %p1617_p6 = por %p140_p3, %p47_p0  ;;  %s1542_s27 = smov [#allocation5]  }
   0xe   : > { %s2154_s24 = scalar_select %p1612_p4, 1, 0 }
   0xf   : > { %s2155_s25 = scalar_select %p1617_p6, 1, 0 }
  0x10   : > { %p1622_p8 = pnand %p1072_p5, %p173_p7  ;;  %s186_s28 = sshll.u32 %s1542_s27, 4  ;;  %s187_s28 = int_to_ptr.vmem [resolvable:$true] %s186_s28 }
  0x11   : > { %s1543_s29 = smov [#allocation7]   ;;  %s1544_s7 = smov [#allocation8]  }
  0x12   : > { %s2156_s26 = scalar_select %p1622_p8, 1, 0 }
  0x13   : > { %p1252_p10 = pneg %p1622_p8  ;;  %s197_s30 = sshll.u32 %s1543_s29, 4  ;;  %s1635_s30 = int_to_ptr.vmem [resolvable:$true] %s197_s30 }
  0x14   : > { %s207_s8 = sshll.u32 %s1544_s7, 4  ;;  %s1320_s11 = scalar_lea.hbm %s2146_s1, 16  ;;  %s1637_s8 = int_to_ptr.vmem [resolvable:$true] %s207_s8 }
  0x15   : > { %p1631_p11 = pnand %p1252_p10, %p2151_p1  ;;  %p1321_p12 = scmp.ne.s32.totalorder %s2146_s1, %s1320_s11 }
  0x16   : > { %p1327_p5 = scmp.lt.u32.totalorder %s1320_s11, %s2146_s1 }
  0x17   : > { %p1647_p13 = pneg %p1631_p11 }
  0x19   : > { %p1323_p0 = pnand %p1647_p13, %p1321_p12 }
  0x1b   : > { %p1324_p3 = pneg %p1323_p0 }
  0x1d   : > { %p1329_p7 = pnand %p1327_p5, %p1324_p3 }
  0x1f   : > { %1332 = shalt.err (!%p1329_p7)
}
  0x20   : > { %s1333_s17 = scalar_lea.vmem %s187_s28, 16  ;;  %s1340_s23 = scalar_lea.vmem %s187_s28, 32 }
  0x21   : > { %p1334_p10 = scmp.ne.s32.totalorder %s187_s28, %s1333_s17  ;;  %p1341_p2 = scmp.lt.s32.totalorder %s187_s28, %s187_s28 }
  0x22   : > { %p1342_p6 = scmp.lt.s32.totalorder %s1340_s23, %s1333_s17 }
  0x23   : > { %p1336_p9 = pnand %p1334_p10, %p1647_p13 }
  0x24   : > { %p1343_p4 = por %p1342_p6, %p1341_p2 }
  0x25   : > { %p1337_p1 = pneg %p1336_p9 }
  0x27   : > { %p1344_p8 = pnand %p1343_p4, %p1337_p1 }
  0x29   : > { %1347 = shalt.err (!%p1344_p8)
}
  0x2a   : > { %1255 = dma.hbm_to_vmem [thread:$0]  (!%p1631_p11), %s2146_s1, 16, %s187_s28, [#allocation6]  }
  0x2b   : > { %s1348_s10 = scalar_lea.hbm %s2147_s2, 16 }
  0x2c   : > { %p1349_p9 = scmp.ne.s32.totalorder %s2147_s2, %s1348_s10  ;;  %p1355_p1 = scmp.lt.u32.totalorder %s1348_s10, %s2147_s2 }
  0x2e   : > { %p1351_p12 = pnand %p1349_p9, %p1647_p13 }
  0x30   : > { %p1352_p2 = pneg %p1351_p12 }
  0x32   : > { %p1357_p4 = pnand %p1355_p1, %p1352_p2 }
  0x34   : > { %1360 = shalt.err (!%p1357_p4)
}
  0x35   : > { %s1361_s28 = scalar_lea.vmem %s1635_s30, 16  ;;  %s1368_s16 = scalar_lea.vmem %s1635_s30, 32 }
  0x36   : > { %p1362_p6 = scmp.ne.s32.totalorder %s1635_s30, %s1361_s28  ;;  %p1369_p3 = scmp.lt.s32.totalorder %s1635_s30, %s1635_s30 }
  0x37   : > { %p1370_p5 = scmp.lt.s32.totalorder %s1368_s16, %s1361_s28 }
  0x38   : > { %p1364_p8 = pnand %p1362_p6, %p1647_p13 }
  0x39   : > { %p1371_p7 = por %p1370_p5, %p1369_p3 }
  0x3a   : > { %p1365_p0 = pneg %p1364_p8 }
  0x3c   : > { %p1372_p10 = pnand %p1371_p7, %p1365_p0 }
  0x3e   : > { %1375 = shalt.err (!%p1372_p10)
}
  0x3f   : > { %1258 = dma.hbm_to_vmem [thread:$0]  (!%p1631_p11), %s2147_s2, 16, %s1635_s30, [#allocation6]  }
  0x40   : > { %s1376_s7 = scalar_lea.hbm %s2148_s3, 512 }
  0x41   : > { %p1377_p9 = scmp.ne.s32.totalorder %s2148_s3, %s1376_s7  ;;  %p1383_p1 = scmp.lt.u32.totalorder %s1376_s7, %s2148_s3 }
  0x43   : > { %p1379_p12 = pnand %p1377_p9, %p1647_p13 }
  0x45   : > { %p1380_p2 = pneg %p1379_p12 }
  0x47   : > { %p1385_p4 = pnand %p1383_p1, %p1380_p2 }
  0x49   : > { %1388 = shalt.err (!%p1385_p4)
}
  0x4a   : > { %s1389_s30 = scalar_lea.vmem %s1637_s8, 512  ;;  %p1397_p3 = scmp.lt.s32.totalorder %s1637_s8, %s1637_s8 }
  0x4b   : > { %p1390_p6 = scmp.ne.s32.totalorder %s1637_s8, %s1389_s30  ;;  %p1398_p5 = scmp.lt.s32.totalorder %s1389_s30, %s1389_s30 }
  0x4d   : > { %p1392_p8 = pnand %p1390_p6, %p1647_p13  ;;  %p1399_p7 = por %p1398_p5, %p1397_p3 }
  0x4f   : > { %p1393_p0 = pneg %p1392_p8 }
  0x51   : > { %p1400_p10 = pnand %p1399_p7, %p1393_p0 }
  0x53   : > { %1403 = shalt.err (!%p1400_p10)
}
  0x54   : > { %s1545_s13 = smov 128   ;;  %s1546_s14 = smov 8  }
  0x55   : > { %1261 = dma.hbm_to_vmem [thread:$0]  (!%p1631_p11), %s2148_s3, 512, %s1637_s8, [#allocation9], %s1545_s13, %s1545_s13, %s1546_s14  }
  0x56   : > { %s1714_s16 = sadd.s32 1, %s1540_s21   ;;  %s34_s23 = sadd.s32 1, %s1536_s20 }
  0x57   : > { %s31_s17 = ssub.s32 %s1540_s21, %s1714_s16  ;;  %p41_p9 = scmp.ne.s32.totalorder %s1536_s20, %s1532_s19 }
  0x58   : > { %p32_p13 = scmp.eq.s32.totalorder %s31_s17, 0  ;;  %p42_p12 = scmp.eq.s32.totalorder %s1540_s21, 0 }
  0x59   : > { %p1276_p2 = scmp.lt.s32.totalorder %s1540_s21, 2  ;;  %p2159_p4 = scmp.eq.s32.totalorder %s1603_s22, 1 }
  0x5a   : > { %s1724_s27 = scalar_select %p32_p13, %s1536_s20, %s34_s23  }
  0x5b   : > { %p43_p1 = por %p42_p12, %p41_p9  ;;  %p1728_p6 = por %p2159_p4, %p41_p9 }
  0x5c   : > { %s221_s29 = sand.u32 1, %s1536_s20   ;;  %s1128_s7 = sshll.u32 %s1540_s21, 12 }
  0x5d   : > { %s1077_s8 = sshll.u32 %s221_s29, 8  ;;  %s1737_s11 = scalar_lea.hbm %s2145_s0, %s1128_s7 }
  0x5e   : > { %s225_s12 = scalar_lea.vmem [#allocation2], %s1077_s8  ;;  %p1739_p11 = pnand %p1276_p2, %p43_p1 }
  0x5f   : > { %s232_s30 = sshll.u32 %s225_s12, 4  ;;  %s1745_s28 = scalar_lea.sflag [#allocation3], %s221_s29  ;;  %s1743_s30 = int_to_ptr.vmem [resolvable:$true] %s232_s30 }
  0x60   : > { %s1404_s17 = scalar_lea.hbm %s1737_s11, 4096  ;;  %p1406_p0 = pneg %p1739_p11 }
  0x61   : > { %p1405_p8 = scmp.ne.s32.totalorder %s1737_s11, %s1404_s17  ;;  %s1409_s8 = scalar_lea.hbm %s2145_s0, 8192 }
  0x62   : > { %p1410_p7 = scmp.lt.u32.totalorder %s1737_s11, %s2145_s0  ;;  %p1411_p10 = scmp.lt.u32.totalorder %s1409_s8, %s1404_s17 }
  0x63   : > { %p1407_p3 = pnand %p1406_p0, %p1405_p8  ;;  %p1413_p9 = scmp.lt.u32.totalorder %s1404_s17, %s1737_s11 }
  0x64   : > { %p1412_p13 = por %p1411_p10, %p1410_p7 }
  0x65   : > { %p1408_p5 = pneg %p1407_p3 }
  0x66   : > { %p1414_p12 = por %p1413_p9, %p1412_p13 }
  0x68   : > { %p1415_p2 = pnand %p1414_p12, %p1408_p5 }
  0x6a   : > { %1418 = shalt.err (!%p1415_p2)
}
  0x6b   : > { %s1419_s29 = scalar_lea.vmem %s1743_s30, 4096  ;;  %s1547_s12 = smov [#allocation2]  }
  0x6c   : > { %p1420_p1 = scmp.ne.s32.totalorder %s1743_s30, %s1419_s29  ;;  %s1424_s23 = sshll.u32 %s1547_s12, 4  ;;  %s1425_s23 = int_to_ptr.vmem [resolvable:$false] %s1424_s23 }
  0x6d   : > { %s1426_s7 = scalar_lea.vmem %s1425_s23, 8192  ;;  %p1427_p3 = scmp.lt.s32.totalorder %s1743_s30, %s1425_s23 }
  0x6e   : > { %p1422_p4 = pnand %p1420_p1, %p1406_p0  ;;  %p1428_p7 = scmp.lt.s32.totalorder %s1426_s7, %s1419_s29 }
  0x70   : > { %p1423_p8 = pneg %p1422_p4  ;;  %p1429_p10 = por %p1428_p7, %p1427_p3 }
  0x72   : > { %p1430_p13 = pnand %p1429_p10, %p1423_p8 }
  0x74   : > { %1433 = shalt.err (!%p1430_p13)
}
  0x75   : > { %1265 = dma.hbm_to_vmem [thread:$0]  (!%p1739_p11), %s1737_s11, 4096, %s1743_s30, %s1745_s28, %s1545_s13, %s1545_s13, %s1546_s14  }
  0x76   : > { %p2162_p0 = scmp.ne.s32.totalorder %s2156_s26, 0 }
  0x77   : > { %s1779_s17 = sand.u32 (!%p2162_p0), 1, %s1532_s19   ;;  %p2163_p5 = scmp.ne.s32.totalorder (!%p2162_p0), %s2154_s24, 0 }
  0x78   : > { %244 = sbr.rel (%p2162_p0) target bundleno = 463 (0x1cf), region = 36  ;;  %s1081_s8 = sshll.u32 (!%p2162_p0), %s1779_s17, 8 }
  0x79   : > { %s247_s9 = scalar_lea.sflag (!%p2162_p0), [#allocation3], %s1779_s17  ;;  %s1785_s15 = scalar_lea.vmem (!%p2162_p0), [#allocation2], %s1081_s8 }
  0x7f   : > { %1507 = dma.done.wait (%p2163_p5), %s247_s9, 4096  }
  0x80   : > { %1509 = vsyncadd (%p2163_p5), %s247_s9, 4294963200  ;;  %p2164_p11 = scmp.eq.s32.totalorder %s1603_s22, 0 }
  0x82   : > { %1511 = dma.done.wait (%p2164_p11), [#allocation6], 32   ;;  %p2165_p9 = pmov %p2164_p11 }
  0x84   : > { %1513 = vsyncadd (%p2165_p9), [#allocation6], 4294967264  ;;  %p2166_p12 = pmov %p2165_p9 }
  0x85   : > { %p2167_p2 = pmov %p2165_p9 }
  0x86   : > { %1515 = dma.done.wait (%p2166_p12), [#allocation9], 512  }
  0x87   : > { %1517 = vsyncadd (%p2167_p2), [#allocation9], 4294966784  ;;  %v438_v0 = vld [vmem:[#allocation8] sm:$0xff]  ;;  %v439_v1 = vld [vmem:[#allocation8 + $0x8] sm:$0xff]  ;;  %vm442_vm0 = vcmask 261120   ;;  %s1933_s24 = scalar_lea.vmem [#allocation10], %s1081_s8 }
  0x88   : > { %v440_v2 = vld [vmem:[#allocation8 + $0x10] sm:$0xff]  ;;  %v1222_v3 = vpack.c.bf16 %v439_v1, %v438_v0  ;;  %v441_v4 = vld [vmem:[#allocation8 + $0x18] sm:$0xff]  ;;  %v297_v10 = vld [vmem:[%s1785_s15 + $0x8] sm:$0xff]  ;;  %s1129_s26 = sshll.u32 %s1603_s22, 12  ;;  %s924_s13 = sshll.u32 %s1933_s24, 4  ;;  %s2022_s13 = int_to_ptr.vmem [resolvable:$true] %s924_s13 }
  0x89   : > { %v296_v5 = vld [vmem:[%s1785_s15] sm:$0xff]  ;;  %v1226_v7 = vpack.c.bf16 %v441_v4, %v440_v2  ;;  %v298_v11 = vld [vmem:[%s1785_s15 + $0x10] sm:$0xff]  ;;  %v299_v14 = vld [vmem:[%s1785_s15 + $0x18] sm:$0xff]  ;;  %s2020_s30 = scalar_lea.hbm %s2149_s4, %s1129_s26  ;;  %s906_s28 = scalar_lea.sflag [#allocation4], %s1779_s17 }
  0x8a   : > { %v1800_v6 = vld [vmem:[#allocation5] ss:$0 sm:$0xff]  ;;  %v1803_v9 = vld [vmem:[#allocation7] ss:$0 sm:$0xff]  ;;  %1223 = vmatprep.subr.bf16.mxu0 %v1222_v3  ;;  %v301_v16 = vld [vmem:[%s1785_s15 + $0x28] sm:$0xff]  ;;  %1230 = vmatprep.subr.bf16.mxu1 %v1222_v3  ;;  %s1434_s10 = scalar_lea.vmem %s2022_s13, 4096 }
  0x8b   : > { %v335_v8 = vmul.f32 %v1800_v6, %v296_v5  ;;  %v336_v12 = vmul.f32 %v1800_v6, %v297_v10  ;;  %v337_v13 = vmul.f32 %v1800_v6, %v298_v11  ;;  %v300_v15 = vld [vmem:[%s1785_s15 + $0x20] sm:$0xff]  ;;  %1225 = vmatpush3.bf16.msra.mxu0 %v1222_v3  ;;  %v338_v18 = vmul.f32 %v1800_v6, %v299_v14  ;;  %v302_v20 = vld [vmem:[%s1785_s15 + $0x30] sm:$0xff]  ;;  %v303_v26 = vld [vmem:[%s1785_s15 + $0x38] sm:$0xff]  ;;  %p1435_p1 = scmp.ne.s32.totalorder %s2022_s13, %s1434_s10  ;;  %s1548_s29 = smov [#allocation10]  }
  0x8c   : > { %v339_v19 = vmul.f32 %v1800_v6, %v300_v15  ;;  %1227 = vmatprep.subr.bf16.mxu0 %v1226_v7  ;;  %v340_v24 = vmul.f32 %v1800_v6, %v301_v16  ;;  %v341_v25 = vmul.f32 %v1800_v6, %v302_v20  ;;  %1232 = vmatpush3.bf16.msra.mxu1 %v1222_v3  ;;  %v304_v32 = vld [vmem:[%s1785_s15 + $0x40] sm:$0xff]  ;;  %v305_v36 = vld [vmem:[%s1785_s15 + $0x48] sm:$0xff]  ;;  %v306_v40 = vld [vmem:[%s1785_s15 + $0x50] sm:$0xff]  ;;  %s1438_s12 = sshll.u32 %s1548_s29, 4  ;;  %s1439_s12 = int_to_ptr.vmem [resolvable:$false] %s1438_s12 }
  0x8d   : > { %v374_v17 = vadd.f32 %v1803_v9, %v335_v8  ;;  %v375_v21 = vadd.f32 %v1803_v9, %v336_v12  ;;  %v376_v22 = vadd.f32 %v1803_v9, %v337_v13  ;;  %v377_v28 = vadd.f32 %v1803_v9, %v338_v18  ;;  %1231 = vmatprep.subr.bf16.mxu1 %v1226_v7  ;;  %v312_v37 = vld [vmem:[%s1785_s15 + $0x80] sm:$0xff]  ;;  %v313_v41 = vld [vmem:[%s1785_s15 + $0x88] sm:$0xff]  ;;  %v314_v42 = vld [vmem:[%s1785_s15 + $0x90] sm:$0xff]  ;;  %p1436_p4 = pnand %p1435_p1, %p1728_p6  ;;  %s1440_s23 = scalar_lea.vmem %s1439_s12, 8192 }
  0x8e   : > { %v378_v30 = vadd.f32 %v1803_v9, %v339_v19  ;;  %v342_v31 = vmul.f32 %v1800_v6, %v303_v26  ;;  %v379_v33 = vadd.f32 %v1803_v9, %v340_v24  ;;  %v380_v34 = vadd.f32 %v1803_v9, %v341_v25  ;;  %v315_v44 = vld [vmem:[%s1785_s15 + $0x98] sm:$0xff]  ;;  %v316_v45 = vld [vmem:[%s1785_s15 + $0xa0] sm:$0xff]  ;;  %v317_v49 = vld [vmem:[%s1785_s15 + $0xa8] sm:$0xff]  ;;  %p1441_p3 = scmp.lt.s32.totalorder %s2022_s13, %s1439_s12  ;;  %p1442_p7 = scmp.lt.s32.totalorder %s1440_s23, %s1434_s10 }
  0x8f   : > { %v406_v23 = vmax.f32 %v374_v17, 0.0  ;;  %v407_v27 = vmax.f32 %v375_v21, 0.0  ;;  %1229 = vmatpush3.bf16.msra.mxu0 %v1226_v7  ;;  %v408_v29 = vmax.f32 %v376_v22, 0.0  ;;  %v409_v35 = vmax.f32 %v377_v28, 0.0  ;;  %v318_v54 = vld [vmem:[%s1785_s15 + $0xb0] sm:$0xff]  ;;  %v307_v56 = vld [vmem:[%s1785_s15 + $0x58] sm:$0xff]  ;;  %p1437_p8 = pneg %p1436_p4 }
  0x90   : > { %1233 = vmatpush3.bf16.msra.mxu1 %v1226_v7  ;;  %v410_v38 = vmax.f32 %v378_v30, 0.0  ;;  %v343_v39 = vmul.f32 %v1800_v6, %v304_v32  ;;  %v381_v43 = vadd.f32 %v1803_v9, %v342_v31  ;;  %v411_v46 = vmax.f32 %v379_v33, 0.0  ;;  %v308_v61 = vld [vmem:[%s1785_s15 + $0x60] sm:$0xff]  ;;  %v319_v5 = vld [vmem:[%s1785_s15 + $0xb8] sm:$0xff]  ;;  %v309_v16 = vld [vmem:[%s1785_s15 + $0x68] sm:$0xff]  ;;  %p1443_p10 = por %p1442_p7, %p1441_p3 }
  0x91   : > { %1174 = vmatprep.mubr.msk.f32.mxu0 %vm442_vm0, %v406_v23  ;;  %v412_v47 = vmax.f32 %v380_v34, 0.0  ;;  %v351_v48 = vmul.f32 %v1800_v6, %v312_v37  ;;  %v344_v50 = vmul.f32 %v1800_v6, %v305_v36  ;;  %v345_v51 = vmul.f32 %v1800_v6, %v306_v40  ;;  %v320_v12 = vld [vmem:[%s1785_s15 + $0xc0] sm:$0xff]  ;;  %v310_v17 = vld [vmem:[%s1785_s15 + $0x70] sm:$0xff]  ;;  %v321_v24 = vld [vmem:[%s1785_s15 + $0xc8] sm:$0xff] }
  0x92   : > { %1175 = vmatmul.mubr.msk.f32.vlgmr.msra.gmra.mrb[0].mxu0 %vm442_vm0, %v407_v27  ;;  %v352_v52 = vmul.f32 %v1800_v6, %v313_v41  ;;  %v353_v53 = vmul.f32 %v1800_v6, %v314_v42  ;;  %v382_v55 = vadd.f32 %v1803_v9, %v343_v39  ;;  %v354_v58 = vmul.f32 %v1800_v6, %v315_v44  ;;  %v322_v28 = vld [vmem:[%s1785_s15 + $0xd0] sm:$0xff]  ;;  %v311_v32 = vld [vmem:[%s1785_s15 + $0x78] sm:$0xff]  ;;  %p1444_p13 = pnand %p1443_p10, %p1437_p8 }
  0x93   : > { %1177 = vmatprep.mubr.msk.f32.mxu0 %vm442_vm0, %v408_v29  ;;  %v390_v57 = vadd.f32 %v1803_v9, %v351_v48  ;;  %v355_v59 = vmul.f32 %v1800_v6, %v316_v45  ;;  %v413_v60 = vmax.f32 %v381_v43, 0.0  ;;  %v356_v0 = vmul.f32 %v1800_v6, %v317_v49  ;;  %v323_v39 = vld [vmem:[%s1785_s15 + $0xd8] sm:$0xff]  ;;  %v324_v43 = vld [vmem:[%s1785_s15 + $0xe0] sm:$0xff] }
  0x94   : > { %v391_v62 = vadd.f32 %v1803_v9, %v352_v52  ;;  %v392_v63 = vadd.f32 %v1803_v9, %v353_v53  ;;  %v393_v2 = vadd.f32 %v1803_v9, %v354_v58  ;;  %v357_v4 = vmul.f32 %v1800_v6, %v318_v54  ;;  %v325_v52 = vld [vmem:[%s1785_s15 + $0xe8] sm:$0xff] }
  0x95   : > { %v422_v1 = vmax.f32 %v390_v57, 0.0  ;;  %v394_v3 = vadd.f32 %v1803_v9, %v355_v59  ;;  %v383_v7 = vadd.f32 %v1803_v9, %v344_v50  ;;  %v346_v8 = vmul.f32 %v1800_v6, %v307_v56 }
  0x96   : > { %1178 = vmatmul.mubr.msk.f32.gmra.mrb[2].mxu0 %vm442_vm0, %v409_v35  ;;  %v423_v10 = vmax.f32 %v391_v62, 0.0  ;;  %v424_v11 = vmax.f32 %v392_v63, 0.0  ;;  %v414_v13 = vmax.f32 %v382_v55, 0.0  ;;  %v384_v14 = vadd.f32 %v1803_v9, %v345_v51  ;;  %v326_v55 = vld [vmem:[%s1785_s15 + $0xf0] sm:$0xff]  ;;  %v327_v63 = vld [vmem:[%s1785_s15 + $0xf8] sm:$0xff] }
  0x97   : > { %1180 = vmatprep.mubr.msk.f32.mxu0 %vm442_vm0, %v410_v38  ;;  %v347_v15 = vmul.f32 %v1800_v6, %v308_v61  ;;  %1198 = vmatprep.mubr.msk.f32.mxu1 %vm442_vm0, %v422_v1  ;;  %v425_v18 = vmax.f32 %v393_v2, 0.0  ;;  %v395_v19 = vadd.f32 %v1803_v9, %v356_v0  ;;  %v358_v20 = vmul.f32 %v1800_v6, %v319_v5 }
  0x98   : > { %1199 = vmatmul.mubr.msk.f32.vlgmr.msra.gmra.mrb[0].mxu1 %vm442_vm0, %v423_v10  ;;  %v426_v21 = vmax.f32 %v394_v3, 0.0  ;;  %v396_v22 = vadd.f32 %v1803_v9, %v357_v4  ;;  %v359_v23 = vmul.f32 %v1800_v6, %v320_v12  ;;  %v415_v25 = vmax.f32 %v383_v7, 0.0 }
  0x99   : > { %1201 = vmatprep.mubr.msk.f32.mxu1 %vm442_vm0, %v424_v11  ;;  %v385_v26 = vadd.f32 %v1803_v9, %v346_v8  ;;  %v348_v27 = vmul.f32 %v1800_v6, %v309_v16  ;;  %v416_v29 = vmax.f32 %v384_v14, 0.0  ;;  %v386_v30 = vadd.f32 %v1803_v9, %v347_v15 }
  0x9a   : > { %1181 = vmatmul.mubr.msk.f32.gmra.mrb[4].mxu0 %vm442_vm0, %v411_v46  ;;  %v349_v31 = vmul.f32 %v1800_v6, %v310_v17  ;;  %v427_v33 = vmax.f32 %v395_v19, 0.0  ;;  %v397_v34 = vadd.f32 %v1803_v9, %v358_v20  ;;  %v360_v35 = vmul.f32 %v1800_v6, %v321_v24 }
  0x9b   : > { %1183 = vmatprep.mubr.msk.f32.mxu0 %vm442_vm0, %v412_v47  ;;  %v428_v36 = vmax.f32 %v396_v22, 0.0  ;;  %v398_v37 = vadd.f32 %v1803_v9, %v359_v23  ;;  %v361_v38 = vmul.f32 %v1800_v6, %v322_v28  ;;  %v417_v40 = vmax.f32 %v385_v26, 0.0 }
  0x9c   : > { %1202 = vmatmul.mubr.msk.f32.gmra.mrb[2].mxu1 %vm442_vm0, %v425_v18  ;;  %v387_v41 = vadd.f32 %v1803_v9, %v348_v27  ;;  %v350_v42 = vmul.f32 %v1800_v6, %v311_v32  ;;  %v418_v44 = vmax.f32 %v386_v30, 0.0  ;;  %v388_v45 = vadd.f32 %v1803_v9, %v349_v31 }
  0x9d   : > { %1204 = vmatprep.mubr.msk.f32.mxu1 %vm442_vm0, %v426_v21  ;;  %v429_v46 = vmax.f32 %v397_v34, 0.0  ;;  %v399_v47 = vadd.f32 %v1803_v9, %v360_v35  ;;  %v362_v48 = vmul.f32 %v1800_v6, %v323_v39  ;;  %v430_v49 = vmax.f32 %v398_v37, 0.0 }
  0x9e   : > { %1184 = vmatmul.mubr.msk.f32.gmra.mrb[6].mxu0 %vm442_vm0, %v413_v60  ;;  %v400_v50 = vadd.f32 %v1803_v9, %v361_v38  ;;  %v363_v51 = vmul.f32 %v1800_v6, %v324_v43  ;;  %v419_v53 = vmax.f32 %v387_v41, 0.0  ;;  %v389_v54 = vadd.f32 %v1803_v9, %v350_v42 }
  0x9f   : > { %1186 = vmatprep.mubr.msk.f32.mxu0 %vm442_vm0, %v414_v13  ;;  %v420_v56 = vmax.f32 %v388_v45, 0.0  ;;  %v431_v57 = vmax.f32 %v399_v47, 0.0  ;;  %v401_v58 = vadd.f32 %v1803_v9, %v362_v48  ;;  %v364_v59 = vmul.f32 %v1800_v6, %v325_v52 }
  0xa0   : > { %1205 = vmatmul.mubr.msk.f32.gmra.mrb[4].mxu1 %vm442_vm0, %v427_v33  ;;  %v432_v60 = vmax.f32 %v400_v50, 0.0  ;;  %v402_v61 = vadd.f32 %v1803_v9, %v363_v51  ;;  %v365_v62 = vmul.f32 %v1800_v6, %v326_v55  ;;  %v421_v0 = vmax.f32 %v389_v54, 0.0 }
  0xa1   : > { %1207 = vmatprep.mubr.msk.f32.mxu1 %vm442_vm0, %v428_v36  ;;  %v433_v1 = vmax.f32 %v401_v58, 0.0  ;;  %v403_v2 = vadd.f32 %v1803_v9, %v364_v59  ;;  %v366_v3 = vmul.f32 %v1800_v6, %v327_v63 }
  0xa2   : > { %1187 = vmatmul.mubr.msk.f32.gmra.mrb[8].mxu0 %vm442_vm0, %v415_v25  ;;  %v434_v4 = vmax.f32 %v402_v61, 0.0  ;;  %v404_v5 = vadd.f32 %v1803_v9, %v365_v62 }
  0xa3   : > { %1189 = vmatprep.mubr.msk.f32.mxu0 %vm442_vm0, %v416_v29  ;;  %v435_v7 = vmax.f32 %v403_v2, 0.0  ;;  %v405_v8 = vadd.f32 %v1803_v9, %v366_v3 }
  0xa4   : > { %1208 = vmatmul.mubr.msk.f32.gmra.mrb[6].mxu1 %vm442_vm0, %v429_v46  ;;  %v436_v10 = vmax.f32 %v404_v5, 0.0 }
  0xa5   : > { %1210 = vmatprep.mubr.msk.f32.mxu1 %vm442_vm0, %v430_v49  ;;  %v437_v11 = vmax.f32 %v405_v8, 0.0 }
  0xa6   : > { %1190 = vmatmul.mubr.msk.f32.gmra.mrb[10].mxu0 %vm442_vm0, %v417_v40 }
  0xa7   : > { %1192 = vmatprep.mubr.msk.f32.mxu0 %vm442_vm0, %v418_v44 }
  0xa8   : > { %1211 = vmatmul.mubr.msk.f32.gmra.mrb[8].mxu1 %vm442_vm0, %v431_v57 }
  0xa9   : > { %1213 = vmatprep.mubr.msk.f32.mxu1 %vm442_vm0, %v432_v60 }
  0xaa   : > { %1193 = vmatmul.mubr.msk.f32.gmra.mrb[12].mxu0 %vm442_vm0, %v419_v53 }
  0xab   : > { %1195 = vmatprep.mubr.msk.f32.mxu0 %vm442_vm0, %v420_v56 }
  0xac   : > { %1214 = vmatmul.mubr.msk.f32.gmra.mrb[10].mxu1 %vm442_vm0, %v433_v1 }
  0xad   : > { %1216 = vmatprep.mubr.msk.f32.mxu1 %vm442_vm0, %v434_v4 }
  0xae   : > { %1196 = vmatmul.mubr.msk.f32.gmra.mrb[14].mxu0 %vm442_vm0, %v421_v0 }
  0xb0   : > { %1217 = vmatmul.mubr.msk.f32.gmra.mrb[12].mxu1 %vm442_vm0, %v435_v7 }
  0xb1   : > { %1219 = vmatprep.mubr.msk.f32.mxu1 %vm442_vm0, %v436_v10 }
  0xb4   : > { %1220 = vmatmul.mubr.msk.f32.gmra.mrb[14].mxu1 %vm442_vm0, %v437_v11 }
 0x165   : > { %v1176_v6 = vpop.f32.mrb[0].mxu0 }
 0x166   : > { %765 = vst [vmem:[%s1933_s24 + $0x8] sm:$0xff] %v1176_v6  ;;  %v834_v9 = vmul.f32 %v1176_v6, %v1176_v6  ;;  %v605_v12 = vpop.f32.mrb[1].mxu0 }
 0x167   : > { %764 = vst [vmem:[%s1933_s24] sm:$0xff] %v605_v12  ;;  %v796_v13 = vadd.f32 %v1176_v6, %v605_v12  ;;  %v833_v14 = vmul.f32 %v605_v12, %v605_v12 }
 0x169   : > { %v865_v15 = vadd.f32 %v834_v9, %v833_v14  ;;  %v1179_v16 = vpop.f32.mrb[2].mxu0 }
 0x16a   : > { %767 = vst [vmem:[%s1933_s24 + $0x18] sm:$0xff] %v1179_v16  ;;  %v615_v17 = vpop.f32.mrb[3].mxu0  ;;  %v836_v20 = vmul.f32 %v1179_v16, %v1179_v16 }
 0x16b   : > { %766 = vst [vmem:[%s1933_s24 + $0x10] sm:$0xff] %v615_v17  ;;  %v797_v18 = vadd.f32 %v796_v13, %v615_v17  ;;  %v835_v19 = vmul.f32 %v615_v17, %v615_v17  ;;  %v1941_v28 = vpop.f32.mrb[0].mxu1 }
 0x16c   : > { %781 = vst [vmem:[%s1933_s24 + $0x88] sm:$0xff] %v1941_v28  ;;  %v1945_v29 = vpop.f32.mrb[1].mxu1 }
 0x16d   : > { %v866_v21 = vadd.f32 %v865_v15, %v835_v19  ;;  %v1182_v22 = vpop.f32.mrb[4].mxu0  ;;  %v798_v23 = vadd.f32 %v1179_v16, %v797_v18  ;;  %780 = vst [vmem:[%s1933_s24 + $0x80] sm:$0xff] %v1945_v29  ;;  %v849_v19 = vmul.f32 %v1945_v29, %v1945_v29 }
 0x16e   : > { %769 = vst [vmem:[%s1933_s24 + $0x28] sm:$0xff] %v1182_v22  ;;  %v625_v24 = vpop.f32.mrb[5].mxu0  ;;  %v838_v30 = vmul.f32 %v1182_v22, %v1182_v22 }
 0x16f   : > { %768 = vst [vmem:[%s1933_s24 + $0x20] sm:$0xff] %v625_v24  ;;  %v799_v25 = vadd.f32 %v798_v23, %v625_v24  ;;  %v837_v26 = vmul.f32 %v625_v24, %v625_v24  ;;  %v867_v27 = vadd.f32 %v866_v21, %v836_v20  ;;  %v1951_v38 = vpop.f32.mrb[2].mxu1  ;;  %v850_v24 = vmul.f32 %v1941_v28, %v1941_v28 }
 0x170   : > { %783 = vst [vmem:[%s1933_s24 + $0x98] sm:$0xff] %v1951_v38  ;;  %v1955_v39 = vpop.f32.mrb[3].mxu1 }
 0x171   : > { %v868_v31 = vadd.f32 %v867_v27, %v837_v26  ;;  %v1185_v32 = vpop.f32.mrb[6].mxu0  ;;  %v800_v33 = vadd.f32 %v1182_v22, %v799_v25  ;;  %782 = vst [vmem:[%s1933_s24 + $0x90] sm:$0xff] %v1955_v39  ;;  %v851_v27 = vmul.f32 %v1955_v39, %v1955_v39 }
 0x172   : > { %771 = vst [vmem:[%s1933_s24 + $0x38] sm:$0xff] %v1185_v32  ;;  %v635_v34 = vpop.f32.mrb[7].mxu0  ;;  %v840_v40 = vmul.f32 %v1185_v32, %v1185_v32 }
 0x173   : > { %770 = vst [vmem:[%s1933_s24 + $0x30] sm:$0xff] %v635_v34  ;;  %v801_v35 = vadd.f32 %v800_v33, %v635_v34  ;;  %v839_v36 = vmul.f32 %v635_v34, %v635_v34  ;;  %v869_v37 = vadd.f32 %v868_v31, %v838_v30  ;;  %v1961_v48 = vpop.f32.mrb[4].mxu1 }
 0x174   : > { %785 = vst [vmem:[%s1933_s24 + $0xa8] sm:$0xff] %v1961_v48  ;;  %v1965_v49 = vpop.f32.mrb[5].mxu1 }
 0x175   : > { %v870_v41 = vadd.f32 %v869_v37, %v839_v36  ;;  %v1188_v42 = vpop.f32.mrb[8].mxu0  ;;  %v802_v43 = vadd.f32 %v1185_v32, %v801_v35  ;;  %784 = vst [vmem:[%s1933_s24 + $0xa0] sm:$0xff] %v1965_v49  ;;  %v852_v32 = vmul.f32 %v1951_v38, %v1951_v38  ;;  %v853_v35 = vmul.f32 %v1965_v49, %v1965_v49 }
 0x176   : > { %773 = vst [vmem:[%s1933_s24 + $0x48] sm:$0xff] %v1188_v42  ;;  %v645_v44 = vpop.f32.mrb[9].mxu0  ;;  %v842_v50 = vmul.f32 %v1188_v42, %v1188_v42 }
 0x177   : > { %772 = vst [vmem:[%s1933_s24 + $0x40] sm:$0xff] %v645_v44  ;;  %v803_v45 = vadd.f32 %v802_v43, %v645_v44  ;;  %v841_v46 = vmul.f32 %v645_v44, %v645_v44  ;;  %v871_v47 = vadd.f32 %v870_v41, %v840_v40  ;;  %v1971_v58 = vpop.f32.mrb[6].mxu1 }
 0x178   : > { %787 = vst [vmem:[%s1933_s24 + $0xb8] sm:$0xff] %v1971_v58  ;;  %v1975_v59 = vpop.f32.mrb[7].mxu1 }
 0x179   : > { %v872_v51 = vadd.f32 %v871_v47, %v841_v46  ;;  %v1191_v52 = vpop.f32.mrb[10].mxu0  ;;  %v804_v53 = vadd.f32 %v1188_v42, %v803_v45  ;;  %786 = vst [vmem:[%s1933_s24 + $0xb0] sm:$0xff] %v1975_v59 }
 0x17a   : > { %775 = vst [vmem:[%s1933_s24 + $0x58] sm:$0xff] %v1191_v52  ;;  %v655_v54 = vpop.f32.mrb[11].mxu0  ;;  %v844_v60 = vmul.f32 %v1191_v52, %v1191_v52 }
 0x17b   : > { %774 = vst [vmem:[%s1933_s24 + $0x50] sm:$0xff] %v655_v54  ;;  %v805_v55 = vadd.f32 %v804_v53, %v655_v54  ;;  %v843_v56 = vmul.f32 %v655_v54, %v655_v54  ;;  %v873_v57 = vadd.f32 %v872_v51, %v842_v50  ;;  %v1981_v4 = vpop.f32.mrb[8].mxu1 }
 0x17c   : > { %789 = vst [vmem:[%s1933_s24 + $0xc8] sm:$0xff] %v1981_v4  ;;  %v1985_v5 = vpop.f32.mrb[9].mxu1 }
 0x17d   : > { %v874_v61 = vadd.f32 %v873_v57, %v843_v56  ;;  %v1194_v62 = vpop.f32.mrb[12].mxu0  ;;  %v806_v63 = vadd.f32 %v1191_v52, %v805_v55  ;;  %788 = vst [vmem:[%s1933_s24 + $0xc0] sm:$0xff] %v1985_v5 }
 0x17e   : > { %777 = vst [vmem:[%s1933_s24 + $0x68] sm:$0xff] %v1194_v62  ;;  %v665_v0 = vpop.f32.mrb[13].mxu0  ;;  %v846_v7 = vmul.f32 %v1194_v62, %v1194_v62 }
 0x17f   : > { %776 = vst [vmem:[%s1933_s24 + $0x60] sm:$0xff] %v665_v0  ;;  %v807_v1 = vadd.f32 %v806_v63, %v665_v0  ;;  %v845_v2 = vmul.f32 %v665_v0, %v665_v0  ;;  %v875_v3 = vadd.f32 %v874_v61, %v844_v60  ;;  %v1991_v14 = vpop.f32.mrb[10].mxu1 }
 0x180   : > { %791 = vst [vmem:[%s1933_s24 + $0xd8] sm:$0xff] %v1991_v14  ;;  %v1995_v15 = vpop.f32.mrb[11].mxu1 }
 0x181   : > { %v876_v8 = vadd.f32 %v875_v3, %v845_v2  ;;  %v1197_v10 = vpop.f32.mrb[14].mxu0  ;;  %v808_v11 = vadd.f32 %v1194_v62, %v807_v1  ;;  %790 = vst [vmem:[%s1933_s24 + $0xd0] sm:$0xff] %v1995_v15 }
 0x182   : > { %779 = vst [vmem:[%s1933_s24 + $0x78] sm:$0xff] %v1197_v10  ;;  %v675_v6 = vpop.f32.mrb[15].mxu0  ;;  %v848_v16 = vmul.f32 %v1197_v10, %v1197_v10 }
 0x183   : > { %778 = vst [vmem:[%s1933_s24 + $0x70] sm:$0xff] %v675_v6  ;;  %v809_v9 = vadd.f32 %v808_v11, %v675_v6  ;;  %v847_v12 = vmul.f32 %v675_v6, %v675_v6  ;;  %v877_v13 = vadd.f32 %v876_v8, %v846_v7  ;;  %v2002_v22 = vpop.f32.mrb[12].mxu1 }
 0x184   : > { %793 = vst [vmem:[%s1933_s24 + $0xe8] sm:$0xff] %v2002_v22  ;;  %v2008_v23 = vpop.f32.mrb[13].mxu1 }
 0x185   : > { %v810_v17 = vadd.f32 %v1197_v10, %v809_v9  ;;  %v878_v18 = vadd.f32 %v877_v13, %v847_v12  ;;  %792 = vst [vmem:[%s1933_s24 + $0xe0] sm:$0xff] %v2008_v23 }
 0x187   : > { %v879_v20 = vadd.f32 %v878_v18, %v848_v16  ;;  %v811_v21 = vadd.f32 %v810_v17, %v1945_v29  ;;  %v2025_v31 = vpop.f32.mrb[14].mxu1 }
 0x188   : > { %795 = vst [vmem:[%s1933_s24 + $0xf8] sm:$0xff] %v2025_v31 }
 0x189   : > { %v880_v25 = vadd.f32 %v879_v20, %v849_v19  ;;  %v812_v26 = vadd.f32 %v1941_v28, %v811_v21  ;;  %v2029_v28 = vpop.f32.mrb[15].mxu1 }
 0x18a   : > { %794 = vst [vmem:[%s1933_s24 + $0xf0] sm:$0xff] %v2029_v28 }
 0x18b   : > { %v813_v29 = vadd.f32 %v812_v26, %v1955_v39  ;;  %v881_v30 = vadd.f32 %v880_v25, %v850_v24 }
 0x18d   : > { %v882_v33 = vadd.f32 %v881_v30, %v851_v27  ;;  %v814_v34 = vadd.f32 %v1951_v38, %v813_v29 }
 0x18e   : > { %1447 = shalt.err (!%p1444_p13)
}
 0x18f   : > { %s1448_s7 = scalar_lea.hbm %s2020_s30, 4096  ;;  %s1452_s15 = scalar_lea.hbm %s2149_s4, 8192 }
 0x190   : > { %p1449_p0 = scmp.ne.s32.totalorder %s2020_s30, %s1448_s7  ;;  %p1453_p9 = scmp.lt.u32.totalorder %s2020_s30, %s2149_s4 }
 0x191   : > { %p1454_p12 = scmp.lt.u32.totalorder %s1452_s15, %s1448_s7  ;;  %p1456_p1 = scmp.lt.u32.totalorder %s1448_s7, %s2020_s30 }
 0x192   : > { %p1450_p5 = pnand %p1449_p0, %p1728_p6 }
 0x193   : > { %p1455_p2 = por %p1454_p12, %p1453_p9 }
 0x194   : > { %p1451_p11 = pneg %p1450_p5 }
 0x195   : > { %p1457_p4 = por %p1456_p1, %p1455_p2 }
 0x197   : > { %p1458_p8 = pnand %p1457_p4, %p1451_p11 }
 0x199   : > { %1461 = shalt.err (!%p1458_p8)
}
 0x19a   : > { %s1549_s14 = smov 128   ;;  %s1550_s11 = smov 8   ;;  %v815_v36 = vadd.f32 %v814_v34, %v1965_v49  ;;  %v883_v37 = vadd.f32 %v882_v33, %v852_v32  ;;  %v854_v38 = vmul.f32 %v1961_v48, %v1961_v48  ;;  %v855_v41 = vmul.f32 %v1975_v59, %v1975_v59 }
 0x19b   : > { %1248 = dma.vmem_to_hbm [thread:$0]  (%p1728_p6), %s2022_s13, 4096, %s2020_s30, %s906_s28, %s1549_s14, %s1549_s14, %s1550_s11   ;;  %v856_v44 = vmul.f32 %v1971_v58, %v1971_v58  ;;  %v857_v47 = vmul.f32 %v1985_v5, %v1985_v5  ;;  %v859_v53 = vmul.f32 %v1995_v15, %v1995_v15  ;;  %v860_v56 = vmul.f32 %v1991_v14, %v1991_v14 }
 0x19c   : > { %v884_v39 = vadd.f32 %v883_v37, %v853_v35  ;;  %v816_v40 = vadd.f32 %v1961_v48, %v815_v36  ;;  %v858_v48 = vmul.f32 %v1981_v4, %v1981_v4  ;;  %v862_v62 = vmul.f32 %v2002_v22, %v2002_v22  ;;  %s1086_s13 = sshll.u32 %s1779_s17, 1  ;;  %s1125_s30 = sshll.u32 %s1603_s22, 5 }
 0x19d   : > { %v863_v1 = vmul.f32 %v2029_v28, %v2029_v28  ;;  %s293_s28 = scalar_lea.vmem [#allocation11], %s1086_s13  ;;  %vm902_vm1 = vcmask 1040384   ;;  %s2101_s23 = scalar_lea.hbm %s2150_s5, %s1125_s30 }
 0x19e   : > { %v817_v42 = vadd.f32 %v816_v40, %v1975_v59  ;;  %v885_v43 = vadd.f32 %v884_v39, %v854_v38  ;;  %v861_v59 = vmul.f32 %v2008_v23, %v2008_v23  ;;  %s940_s10 = sshll.u32 %s293_s28, 4  ;;  %s911_s7 = scalar_lea.sflag [#allocation12], %s1779_s17  ;;  %s2103_s10 = int_to_ptr.vmem [resolvable:$true] %s940_s10 }
 0x19f   : > { %s1462_s8 = scalar_lea.vmem %s2103_s10, 32  ;;  %s1551_s22 = smov [#allocation11]  }
 0x1a0   : > { %v886_v45 = vadd.f32 %v885_v43, %v855_v41  ;;  %v818_v46 = vadd.f32 %v1971_v58, %v817_v42  ;;  %p1463_p3 = scmp.ne.s32.totalorder %s2103_s10, %s1462_s8  ;;  %s1466_s9 = sshll.u32 %s1551_s22, 4  ;;  %s1467_s9 = int_to_ptr.vmem [resolvable:$false] %s1466_s9 }
 0x1a1   : > { %s1468_s15 = scalar_lea.vmem %s1467_s9, 64  ;;  %p1469_p13 = scmp.lt.s32.totalorder %s2103_s10, %s1467_s9 }
 0x1a2   : > { %v819_v49 = vadd.f32 %v818_v46, %v1985_v5  ;;  %v887_v50 = vadd.f32 %v886_v45, %v856_v44  ;;  %p1464_p7 = pnand %p1463_p3, %p1728_p6  ;;  %p1470_p0 = scmp.lt.s32.totalorder %s1468_s15, %s1462_s8 }
 0x1a4   : > { %v888_v51 = vadd.f32 %v887_v50, %v857_v47  ;;  %v820_v52 = vadd.f32 %v1981_v4, %v819_v49  ;;  %v864_v4 = vmul.f32 %v2025_v31, %v2025_v31  ;;  %p1465_p10 = pneg %p1464_p7  ;;  %p1471_p5 = por %p1470_p0, %p1469_p13 }
 0x1a6   : > { %v821_v54 = vadd.f32 %v820_v52, %v1995_v15  ;;  %v889_v55 = vadd.f32 %v888_v51, %v858_v48  ;;  %p1472_p11 = pnand %p1471_p5, %p1465_p10 }
 0x1a8   : > { %v890_v57 = vadd.f32 %v889_v55, %v859_v53  ;;  %v822_v58 = vadd.f32 %v1991_v14, %v821_v54 }
 0x1aa   : > { %v823_v60 = vadd.f32 %v822_v58, %v2008_v23  ;;  %v891_v61 = vadd.f32 %v890_v57, %v860_v56 }
 0x1ac   : > { %v892_v63 = vadd.f32 %v891_v61, %v861_v59  ;;  %v824_v0 = vadd.f32 %v2002_v22, %v823_v60 }
 0x1ae   : > { %v825_v2 = vadd.f32 %v824_v0, %v2029_v28  ;;  %v893_v3 = vadd.f32 %v892_v63, %v862_v62 }
 0x1b0   : > { %v826_v5 = vadd.f32 %v2025_v31, %v825_v2  ;;  %v894_v7 = vadd.f32 %v893_v3, %v863_v1 }
 0x1b2   : > { %v827_v8 = vrot.slane %v826_v5, 4  ;;  %v895_v10 = vadd.f32 %v894_v7, %v864_v4 }
 0x1b4   : > { %v828_v11 = vadd.f32 %v827_v8, %v826_v5  ;;  %v896_v6 = vrot.slane %v895_v10, 4 }
 0x1b6   : > { %v829_v9 = vrot.slane %v828_v11, 2  ;;  %v897_v12 = vadd.f32 %v896_v6, %v895_v10 }
 0x1b8   : > { %v830_v13 = vadd.f32 %v829_v9, %v828_v11  ;;  %v898_v14 = vrot.slane %v897_v12, 2 }
 0x1ba   : > { %v831_v15 = vrot.slane %v830_v13, 1  ;;  %v899_v16 = vadd.f32 %v898_v14, %v897_v12 }
 0x1bc   : > { %v900_v17 = vrot.slane %v899_v16, 1  ;;  %v832_v18 = vadd.f32 %v831_v15, %v830_v13 }
 0x1be   : > { %v901_v19 = vadd.f32 %v900_v17, %v899_v16 }
 0x1c0   : > { %v903_v20 = vsel %vm902_vm1, %v832_v18, %v901_v19 }
 0x1c1   : > { %904 = vst [vmem:[%s293_s28] sm:$0x3] %v903_v20 }
 0x1c2   : > { %1475 = shalt.err (!%p1472_p11)
}
 0x1c3   : > { %s1476_s17 = scalar_lea.hbm %s2101_s23, 32  ;;  %s1480_s14 = scalar_lea.hbm %s2150_s5, 64 }
 0x1c4   : > { %p1477_p9 = scmp.ne.s32.totalorder %s2101_s23, %s1476_s17  ;;  %p1481_p1 = scmp.lt.u32.totalorder %s2101_s23, %s2150_s5 }
 0x1c5   : > { %p1482_p4 = scmp.lt.u32.totalorder %s1480_s14, %s1476_s17  ;;  %p1484_p3 = scmp.lt.u32.totalorder %s1476_s17, %s2101_s23 }
 0x1c6   : > { %p1478_p12 = pnand %p1477_p9, %p1728_p6 }
 0x1c7   : > { %p1483_p8 = por %p1482_p4, %p1481_p1 }
 0x1c8   : > { %p1479_p2 = pneg %p1478_p12 }
 0x1c9   : > { %p1485_p7 = por %p1484_p3, %p1483_p8 }
 0x1cb   : > { %p1486_p10 = pnand %p1485_p7, %p1479_p2 }
 0x1cd   : > { %1489 = shalt.err (!%p1486_p10)
}
 0x1ce   : > { %1249 = dma.vmem_to_hbm [thread:$0]  (%p1728_p6), %s2103_s10, 32, %s2101_s23, %s911_s7  }
 0x1cf PF: > { %s952_s30 = sand.u32 1, %s1528_s18   ;;  %p2168_p13 = scmp.ne.s32.totalorder %s2155_s25, 0 }
 0x1d0   : > { %p2169_p0 = scmp.ge.s32.totalorder %s1540_s21, 2  ;;  %s953_s28 = scalar_lea.sflag [#allocation4], %s952_s30 }
 0x1d2   : > { %p1267_p5 = pnand %p2169_p0, %p2168_p13 }
 0x1d4   : > { %1519 = dma.done.wait (!%p1267_p5), %s953_s28, 4096  }
 0x1d5   : > { %1521 = vsyncadd (!%p1267_p5), %s953_s28, 4294963200  ;;  %s962_s29 = scalar_lea.sflag [#allocation12], %s952_s30 }
 0x1d6   : > { %1523 = dma.done.wait (!%p1267_p5), %s962_s29, 32  }
 0x1d7   : > { %1525 = vsyncadd (!%p1267_p5), %s962_s29, 4294967264  ;;  %p24_p6 = scmp.ge.s32.totalorder %s1714_s16, 4   ;;  %s2170_s18 = smov %s1532_s19 }
 0x1d8   : > { %s2171_s19 = smov %s1536_s20  ;;  %s2172_s20 = smov %s1724_s27 }
 0x1d9   : > { %s2173_s21 = smov %s1714_s16  ;;  %26 = sbr.rel (!%p24_p6) target bundleno = 9 (0x9), region = 110 }
 0x1e0   :  { %967 = vsyncpa [#allocation3], 1 }
 0x1e1   :  { %969 = vsyncpa [#allocation3 + $0x1], 1 }
 0x1e2   :  { %970 = vsyncpa [#allocation6], 1 }
 0x1e3   :  { %971 = vsyncpa [#allocation9], 1 }
 0x1e4   :  { %972 = vsyncpa [#allocation4], 1 }
 0x1e5   :  { %974 = vsyncpa [#allocation4 + $0x1], 1 }
 0x1e6   :  { %975 = vsyncpa [#allocation12], 1 }
 0x1e7   :  { %977 = vsyncpa [#allocation12 + $0x1], 1 }

// kernel: bottleneck_forward.5
= control target key start
LH: loop header
LB: loop body
LE: loop exit
PB: predicated region body
PF: predicated region fallthrough
CT: control target
= control target key end

     0   :  { %11 = vsyncpa [#allocation5], 0  ;;  %s5665_s0 = inlined_call_operand.hbm [shape: f32[2,16,16,32], index: 0, kind: input, shape index: {}]   ;;  %s5666_s1 = inlined_call_operand.hbm [shape: f32[1,32], index: 1, kind: input, shape index: {}]   ;;  %s5667_s2 = inlined_call_operand.hbm [shape: f32[1,32], index: 2, kind: input, shape index: {}]   ;;  %s5668_s3 = inlined_call_operand.hbm [shape: f32[288,32], index: 3, kind: input, shape index: {}]   ;;  %s5669_s4 = inlined_call_operand.hbm [shape: f32[2,256,32], index: 4, kind: output, shape index: {0}]   ;;  %s5670_s5 = inlined_call_operand.hbm [shape: f32[2,2,32], index: 5, kind: output, shape index: {1}]  }
   0x1   :  { %13 = vsyncpa [#allocation5 + $0x1], 0 }
   0x2   :  { %14 = vsyncpa [#allocation8], 0 }
   0x3   :  { %15 = vsyncpa [#allocation11], 0 }
   0x4   :  { %16 = vsyncpa [#allocation6], 0 }
   0x5   :  { %18 = vsyncpa [#allocation6 + $0x1], 0 }
   0x6   :  { %19 = vsyncpa [#allocation14], 0 }
   0x7   :  { %21 = vsyncpa [#allocation14 + $0x1], 0  ;;  %s3761_s18 = smov 0   ;;  %s3763_s19 = smov 0  }
   0x8   :  { %s3765_s20 = smov 0   ;;  %s3767_s21 = smov 0  }
   0x9 LB: > { %s3782_s22 = sadd.s32 4294967295, %s3714_s21   ;;  %s3162_s23 = sadd.s32 4294967294, %s3714_s21   ;;  %s3714_s21 = sphi %s3767_s21, %s5693_s21   ;;  %s3710_s20 = sphi %s3765_s20, %s5692_s20   ;;  %s3706_s19 = sphi %s3763_s19, %s5691_s19   ;;  %s3702_s18 = sphi %s3761_s18, %s5690_s18  }
   0xa   : > { %p47_p0 = scmp.ne.s32.totalorder %s3706_s19, %s3702_s18  ;;  %p5671_p1 = scmp.eq.s32.totalorder %s3782_s22, 0 }
   0xb   : > { %p140_p3 = scmp.eq.s32.totalorder %s3162_s23, 1  ;;  %p3163_p5 = scmp.ge.s32.totalorder %s3714_s21, 1 }
   0xc   : > { %p3791_p4 = por %p5671_p1, %p47_p0  ;;  %p173_p7 = scmp.lt.s32.totalorder %s3714_s21, 3 }
   0xd   : > { %p3796_p6 = por %p140_p3, %p47_p0  ;;  %s3716_s27 = smov [#allocation7]  }
   0xe   : > { %s5674_s24 = scalar_select %p3791_p4, 1, 0 }
   0xf   : > { %s5675_s25 = scalar_select %p3796_p6, 1, 0 }
  0x10   : > { %p3801_p8 = pnand %p3163_p5, %p173_p7  ;;  %s186_s28 = sshll.u32 %s3716_s27, 4  ;;  %s187_s28 = int_to_ptr.vmem [resolvable:$true] %s186_s28 }
  0x11   : > { %s3717_s29 = smov [#allocation9]   ;;  %s3718_s7 = smov [#allocation10]  }
  0x12   : > { %s5676_s26 = scalar_select %p3801_p8, 1, 0 }
  0x13   : > { %p3419_p10 = pneg %p3801_p8  ;;  %s197_s30 = sshll.u32 %s3717_s29, 4  ;;  %s3814_s30 = int_to_ptr.vmem [resolvable:$true] %s197_s30 }
  0x14   : > { %s207_s8 = sshll.u32 %s3718_s7, 4  ;;  %s3494_s11 = scalar_lea.hbm %s5666_s1, 16  ;;  %s3816_s8 = int_to_ptr.vmem [resolvable:$true] %s207_s8 }
  0x15   : > { %p3810_p11 = pnand %p3419_p10, %p5671_p1  ;;  %p3495_p12 = scmp.ne.s32.totalorder %s5666_s1, %s3494_s11 }
  0x16   : > { %p3501_p5 = scmp.lt.u32.totalorder %s3494_s11, %s5666_s1 }
  0x17   : > { %p3826_p13 = pneg %p3810_p11 }
  0x19   : > { %p3497_p0 = pnand %p3826_p13, %p3495_p12 }
  0x1b   : > { %p3498_p3 = pneg %p3497_p0 }
  0x1d   : > { %p3503_p7 = pnand %p3501_p5, %p3498_p3 }
  0x1f   : > { %3506 = shalt.err (!%p3503_p7)
}
  0x20   : > { %s3507_s17 = scalar_lea.vmem %s187_s28, 16  ;;  %s3514_s23 = scalar_lea.vmem %s187_s28, 32 }
  0x21   : > { %p3508_p10 = scmp.ne.s32.totalorder %s187_s28, %s3507_s17  ;;  %p3515_p2 = scmp.lt.s32.totalorder %s187_s28, %s187_s28 }
  0x22   : > { %p3516_p6 = scmp.lt.s32.totalorder %s3514_s23, %s3507_s17 }
  0x23   : > { %p3510_p9 = pnand %p3508_p10, %p3826_p13 }
  0x24   : > { %p3517_p4 = por %p3516_p6, %p3515_p2 }
  0x25   : > { %p3511_p1 = pneg %p3510_p9 }
  0x27   : > { %p3518_p8 = pnand %p3517_p4, %p3511_p1 }
  0x29   : > { %3521 = shalt.err (!%p3518_p8)
}
  0x2a   : > { %3422 = dma.hbm_to_vmem [thread:$0]  (!%p3810_p11), %s5666_s1, 16, %s187_s28, [#allocation8]  }
  0x2b   : > { %s3522_s10 = scalar_lea.hbm %s5667_s2, 16 }
  0x2c   : > { %p3523_p9 = scmp.ne.s32.totalorder %s5667_s2, %s3522_s10  ;;  %p3529_p1 = scmp.lt.u32.totalorder %s3522_s10, %s5667_s2 }
  0x2e   : > { %p3525_p12 = pnand %p3523_p9, %p3826_p13 }
  0x30   : > { %p3526_p2 = pneg %p3525_p12 }
  0x32   : > { %p3531_p4 = pnand %p3529_p1, %p3526_p2 }
  0x34   : > { %3534 = shalt.err (!%p3531_p4)
}
  0x35   : > { %s3535_s28 = scalar_lea.vmem %s3814_s30, 16  ;;  %s3542_s16 = scalar_lea.vmem %s3814_s30, 32 }
  0x36   : > { %p3536_p6 = scmp.ne.s32.totalorder %s3814_s30, %s3535_s28  ;;  %p3543_p3 = scmp.lt.s32.totalorder %s3814_s30, %s3814_s30 }
  0x37   : > { %p3544_p5 = scmp.lt.s32.totalorder %s3542_s16, %s3535_s28 }
  0x38   : > { %p3538_p8 = pnand %p3536_p6, %p3826_p13 }
  0x39   : > { %p3545_p7 = por %p3544_p5, %p3543_p3 }
  0x3a   : > { %p3539_p0 = pneg %p3538_p8 }
  0x3c   : > { %p3546_p10 = pnand %p3545_p7, %p3539_p0 }
  0x3e   : > { %3549 = shalt.err (!%p3546_p10)
}
  0x3f   : > { %3425 = dma.hbm_to_vmem [thread:$0]  (!%p3810_p11), %s5667_s2, 16, %s3814_s30, [#allocation8]  }
  0x40   : > { %s3550_s7 = scalar_lea.hbm %s5668_s3, 4608 }
  0x41   : > { %p3551_p9 = scmp.ne.s32.totalorder %s5668_s3, %s3550_s7  ;;  %p3557_p1 = scmp.lt.u32.totalorder %s3550_s7, %s5668_s3 }
  0x43   : > { %p3553_p12 = pnand %p3551_p9, %p3826_p13 }
  0x45   : > { %p3554_p2 = pneg %p3553_p12 }
  0x47   : > { %p3559_p4 = pnand %p3557_p1, %p3554_p2 }
  0x49   : > { %3562 = shalt.err (!%p3559_p4)
}
  0x4a   : > { %s3563_s30 = scalar_lea.vmem %s3816_s8, 4608  ;;  %p3571_p3 = scmp.lt.s32.totalorder %s3816_s8, %s3816_s8 }
  0x4b   : > { %p3564_p6 = scmp.ne.s32.totalorder %s3816_s8, %s3563_s30  ;;  %p3572_p5 = scmp.lt.s32.totalorder %s3563_s30, %s3563_s30 }
  0x4d   : > { %p3566_p8 = pnand %p3564_p6, %p3826_p13  ;;  %p3573_p7 = por %p3572_p5, %p3571_p3 }
  0x4f   : > { %p3567_p0 = pneg %p3566_p8 }
  0x51   : > { %p3574_p10 = pnand %p3573_p7, %p3567_p0 }
  0x53   : > { %3577 = shalt.err (!%p3574_p10)
}
  0x54   : > { %s3719_s13 = smov 128   ;;  %s3720_s14 = smov 8  }
  0x55   : > { %3428 = dma.hbm_to_vmem [thread:$0]  (!%p3810_p11), %s5668_s3, 4608, %s3816_s8, [#allocation11], %s3719_s13, %s3719_s13, %s3720_s14  }
  0x56   : > { %s3893_s16 = sadd.s32 1, %s3714_s21   ;;  %s34_s23 = sadd.s32 1, %s3710_s20 }
  0x57   : > { %s31_s17 = ssub.s32 %s3714_s21, %s3893_s16  ;;  %p41_p9 = scmp.ne.s32.totalorder %s3710_s20, %s3706_s19 }
  0x58   : > { %p32_p13 = scmp.eq.s32.totalorder %s31_s17, 0  ;;  %p42_p12 = scmp.eq.s32.totalorder %s3714_s21, 0 }
  0x59   : > { %p3443_p2 = scmp.lt.s32.totalorder %s3714_s21, 2  ;;  %p5679_p4 = scmp.eq.s32.totalorder %s3782_s22, 1 }
  0x5a   : > { %s3903_s27 = scalar_select %p32_p13, %s3710_s20, %s34_s23  }
  0x5b   : > { %p43_p1 = por %p42_p12, %p41_p9  ;;  %p3907_p6 = por %p5679_p4, %p41_p9 }
  0x5c   : > { %s221_s29 = sand.u32 1, %s3710_s20   ;;  %s3219_s7 = sshll.u32 %s3714_s21, 12 }
  0x5d   : > { %s3168_s8 = sshll.u32 %s221_s29, 8  ;;  %s3916_s11 = scalar_lea.hbm %s5665_s0, %s3219_s7 }
  0x5e   : > { %s225_s12 = scalar_lea.vmem [#allocation4], %s3168_s8  ;;  %p3918_p11 = pnand %p3443_p2, %p43_p1 }
  0x5f   : > { %s232_s30 = sshll.u32 %s225_s12, 4  ;;  %s3924_s28 = scalar_lea.sflag [#allocation5], %s221_s29  ;;  %s3922_s30 = int_to_ptr.vmem [resolvable:$true] %s232_s30 }
  0x60   : > { %s3578_s17 = scalar_lea.hbm %s3916_s11, 4096  ;;  %p3580_p0 = pneg %p3918_p11 }
  0x61   : > { %p3579_p8 = scmp.ne.s32.totalorder %s3916_s11, %s3578_s17  ;;  %s3583_s8 = scalar_lea.hbm %s5665_s0, 8192 }
  0x62   : > { %p3584_p7 = scmp.lt.u32.totalorder %s3916_s11, %s5665_s0  ;;  %p3585_p10 = scmp.lt.u32.totalorder %s3583_s8, %s3578_s17 }
  0x63   : > { %p3581_p3 = pnand %p3580_p0, %p3579_p8  ;;  %p3587_p9 = scmp.lt.u32.totalorder %s3578_s17, %s3916_s11 }
  0x64   : > { %p3586_p13 = por %p3585_p10, %p3584_p7 }
  0x65   : > { %p3582_p5 = pneg %p3581_p3 }
  0x66   : > { %p3588_p12 = por %p3587_p9, %p3586_p13 }
  0x68   : > { %p3589_p2 = pnand %p3588_p12, %p3582_p5 }
  0x6a   : > { %3592 = shalt.err (!%p3589_p2)
}
  0x6b   : > { %s3593_s29 = scalar_lea.vmem %s3922_s30, 4096  ;;  %s3721_s12 = smov [#allocation4]  }
  0x6c   : > { %p3594_p1 = scmp.ne.s32.totalorder %s3922_s30, %s3593_s29  ;;  %s3598_s23 = sshll.u32 %s3721_s12, 4  ;;  %s3599_s23 = int_to_ptr.vmem [resolvable:$false] %s3598_s23 }
  0x6d   : > { %s3600_s7 = scalar_lea.vmem %s3599_s23, 8192  ;;  %p3601_p3 = scmp.lt.s32.totalorder %s3922_s30, %s3599_s23 }
  0x6e   : > { %p3596_p4 = pnand %p3594_p1, %p3580_p0  ;;  %p3602_p7 = scmp.lt.s32.totalorder %s3600_s7, %s3593_s29 }
  0x70   : > { %p3597_p8 = pneg %p3596_p4  ;;  %p3603_p10 = por %p3602_p7, %p3601_p3 }
  0x72   : > { %p3604_p13 = pnand %p3603_p10, %p3597_p8 }
  0x74   : > { %3607 = shalt.err (!%p3604_p13)
}
  0x75   : > { %3432 = dma.hbm_to_vmem [thread:$0]  (!%p3918_p11), %s3916_s11, 4096, %s3922_s30, %s3924_s28, %s3719_s13, %s3719_s13, %s3720_s14  }
  0x76   : > { %p5682_p0 = scmp.ne.s32.totalorder %s5676_s26, 0 }
  0x77   : > { %s3958_s17 = sand.u32 (!%p5682_p0), 1, %s3706_s19   ;;  %p5683_p5 = scmp.ne.s32.totalorder (!%p5682_p0), %s5674_s24, 0 }
  0x78   : > { %244 = sbr.rel (%p5682_p0) target bundleno = 925 (0x39d), region = 36  ;;  %s3172_s8 = sshll.u32 (!%p5682_p0), %s3958_s17, 8 }
  0x79   : > { %s247_s9 = scalar_lea.sflag (!%p5682_p0), [#allocation5], %s3958_s17  ;;  %s3964_s15 = scalar_lea.vmem (!%p5682_p0), [#allocation4], %s3172_s8 }
  0x7f   : > { %3681 = dma.done.wait (%p5683_p5), %s247_s9, 4096  }
  0x80   : > { %3683 = vsyncadd (%p5683_p5), %s247_s9, 4294963200  ;;  %p5684_p11 = scmp.eq.s32.totalorder %s3782_s22, 0 }
  0x82   : > { %3685 = dma.done.wait (%p5684_p11), [#allocation8], 32   ;;  %p5685_p9 = pmov %p5684_p11 }
  0x84   : > { %3687 = vsyncadd (%p5685_p9), [#allocation8], 4294967264  ;;  %p5686_p12 = pmov %p5685_p9 }
  0x85   : > { %p5687_p2 = pmov %p5685_p9 }
  0x86   : > { %3689 = dma.done.wait (%p5686_p12), [#allocation11], 4608  }
  0x87   : > { %3691 = vsyncadd (%p5687_p2), [#allocation11], 4294962688  ;;  %vm436_vm0 = vcmask 261120   ;;  %v3722_v0 = vmov 0.0   ;;  %v3723_v1 = vmov 0.0|0.0   ;;  %v298_v4 = vld [vmem:[%s3964_s15 + $0x10] sm:$0xff] }
  0x88   : > { %438 = vst.msk [vmem:[#allocation2 + $0x8] sm:$0xff] %vm436_vm0, %v3722_v0  ;;  %441 = vst.msk [vmem:[#allocation2 + $0x118] sm:$0xff] %vm436_vm0, %v3722_v0  ;;  %3313 = vmatprep.subr.bf16.mxu0 %v3723_v1  ;;  %3369 = vmatprep.subr.bf16.mxu1 %v3723_v1  ;;  %v3984_v2 = vld [vmem:[#allocation7] ss:$0 sm:$0xff]  ;;  %v3986_v3 = vld [vmem:[#allocation9] ss:$0 sm:$0xff] }
  0x89   : > { %437 = vst.msk [vmem:[#allocation2] sm:$0xff] %vm436_vm0, %v3722_v0  ;;  %440 = vst.msk [vmem:[#allocation2 + $0x110] sm:$0xff] %vm436_vm0, %v3722_v0  ;;  %vm539_vm1 = vcmask 1040384   ;;  %vm797_vm2 = vcmask 1046528   ;;  %v336_v7 = vmul.f32 %v3984_v2, %v298_v4  ;;  %v299_v8 = vld [vmem:[%s3964_s15 + $0x18] sm:$0xff]  ;;  %s3724_s24 = smov 32  }
  0x8a   : > { %v296_v13 = vld [vmem:[%s3964_s15] sm:$0xff]  ;;  %v297_v14 = vld [vmem:[%s3964_s15 + $0x8] sm:$0xff]  ;;  %v337_v16 = vmul.f32 %v3984_v2, %v299_v8  ;;  %v318_v27 = vld [vmem:[%s3964_s15 + $0xb0] sm:$0xff]  ;;  %s3725_s26 = smov 64   ;;  %s3726_s13 = smov 96   ;;  %vm764_vm3 = vcmask 523520  }
  0x8b   : > { %v374_v15 = vadd.f32 %v3986_v3, %v336_v7  ;;  %v334_v17 = vmul.f32 %v3984_v2, %v296_v13  ;;  %v335_v18 = vmul.f32 %v3984_v2, %v297_v14  ;;  %v300_v19 = vld [vmem:[%s3964_s15 + $0x20] sm:$0xff]  ;;  %v321_v21 = vld [vmem:[%s3964_s15 + $0xc8] sm:$0xff]  ;;  %v319_v36 = vld [vmem:[%s3964_s15 + $0xb8] sm:$0xff]  ;;  %v356_v42 = vmul.f32 %v3984_v2, %v318_v27  ;;  %s5366_s14 = scalar_lea.vmem [#allocation12], %s3172_s8  ;;  %s3220_s11 = sshll.u32 %s3782_s22, 12 }
  0x8c   : > { %v320_v20 = vld [vmem:[%s3964_s15 + $0xc0] sm:$0xff]  ;;  %v301_v26 = vld [vmem:[%s3964_s15 + $0x28] sm:$0xff]  ;;  %v375_v29 = vadd.f32 %v3986_v3, %v337_v16  ;;  %v338_v32 = vmul.f32 %v3984_v2, %v300_v19  ;;  %v359_v34 = vmul.f32 %v3984_v2, %v321_v21  ;;  %v322_v37 = vld [vmem:[%s3964_s15 + $0xd0] sm:$0xff]  ;;  %v357_v47 = vmul.f32 %v3984_v2, %v319_v36  ;;  %s3015_s30 = sshll.u32 %s5366_s14, 4  ;;  %s5542_s29 = scalar_lea.hbm %s5669_s4, %s3220_s11  ;;  %s5544_s30 = int_to_ptr.vmem [resolvable:$true] %s3015_s30 }
  0x8d   : > { %v406_v28 = vmax.f32 %v374_v15, 0.0  ;;  %v372_v30 = vadd.f32 %v3986_v3, %v334_v17  ;;  %v373_v31 = vadd.f32 %v3986_v3, %v335_v18  ;;  %v358_v33 = vmul.f32 %v3984_v2, %v320_v20  ;;  %v302_v38 = vld [vmem:[%s3964_s15 + $0x30] sm:$0xff]  ;;  %v323_v51 = vld [vmem:[%s3964_s15 + $0xd8] sm:$0xff]  ;;  %v2209_v52 = vld [vmem:[#allocation10] sm:$0xff]  ;;  %s2997_s12 = scalar_lea.sflag [#allocation6], %s3958_s17  ;;  %s3608_s23 = scalar_lea.vmem %s5544_s30, 4096 }
  0x8e   : > { %v339_v35 = vmul.f32 %v3984_v2, %v301_v26  ;;  %v407_v39 = vmax.f32 %v375_v29, 0.0  ;;  %v376_v43 = vadd.f32 %v3986_v3, %v338_v32  ;;  %v397_v45 = vadd.f32 %v3986_v3, %v359_v34  ;;  %v2210_v53 = vld [vmem:[#allocation10 + $0x8] sm:$0xff]  ;;  %v303_v58 = vld [vmem:[%s3964_s15 + $0x38] sm:$0xff]  ;;  %p3609_p1 = scmp.ne.s32.totalorder %s5544_s30, %s3608_s23  ;;  %s3727_s7 = smov [#allocation12]  }
  0x8f   : > { %v476_v5 = vld [vmem:[#allocation2 + $0x8] sm:$0xff]  ;;  %445 = vst.msk [vmem:[#allocation2 + $0x20] sm:$0xff] %vm436_vm0, %v406_v28  ;;  %v404_v40 = vmax.f32 %v372_v30, 0.0  ;;  %v405_v41 = vmax.f32 %v373_v31, 0.0  ;;  %v396_v44 = vadd.f32 %v3986_v3, %v358_v33  ;;  %v394_v48 = vadd.f32 %v3986_v3, %v356_v42  ;;  %v2211_v63 = vld [vmem:[#allocation10 + $0x10] sm:$0xff]  ;;  %v2212_v0 = vld [vmem:[#allocation10 + $0x18] sm:$0xff] }
  0x90   : > { %v475_v6 = vld [vmem:[#allocation2] sm:$0xff]  ;;  %670 = vrot.lane.b32.xlu1 %v476_v5, %s3724_s24  ;;  %v541_v9 = vrot.slane %v476_v5, 7  ;;  %v799_v10 = vrot.slane %v476_v5, 1  ;;  %v377_v46 = vadd.f32 %v3986_v3, %v339_v35  ;;  %446 = vst.msk [vmem:[#allocation2 + $0x28] sm:$0xff] %vm436_vm0, %v407_v39  ;;  %v360_v49 = vmul.f32 %v3984_v2, %v322_v37  ;;  %v2215_v33 = vld [vmem:[#allocation10 + $0x30] sm:$0xff]  ;;  %p3610_p4 = pnand %p3609_p1, %p3907_p6  ;;  %s3612_s8 = sshll.u32 %s3727_s7, 4  ;;  %s3613_s8 = int_to_ptr.vmem [resolvable:$false] %s3612_s8 }
  0x91   : > { %668 = vrot.lane.b32.xlu0 %v475_v6, %s3724_s24  ;;  %v540_v11 = vrot.slane %v475_v6, 7  ;;  %v798_v12 = vrot.slane %v475_v6, 1  ;;  %443 = vst.msk [vmem:[#allocation2 + $0x10] sm:$0xff] %vm436_vm0, %v404_v40  ;;  %444 = vst.msk [vmem:[#allocation2 + $0x18] sm:$0xff] %vm436_vm0, %v405_v41  ;;  %v340_v50 = vmul.f32 %v3984_v2, %v302_v38  ;;  %v408_v54 = vmax.f32 %v376_v43, 0.0  ;;  %v2216_v34 = vld [vmem:[#allocation10 + $0x38] sm:$0xff]  ;;  %p3615_p3 = scmp.lt.s32.totalorder %s5544_s30, %s3613_s8 }
  0x92   : > { %v862_v25 = vsel %vm797_vm2, %v799_v10, 0.0  ;;  %v428_v55 = vmax.f32 %v396_v44, 0.0  ;;  %v429_v56 = vmax.f32 %v397_v45, 0.0  ;;  %v409_v57 = vmax.f32 %v377_v46, 0.0  ;;  %p3611_p8 = pneg %p3610_p4  ;;  %s3614_s9 = scalar_lea.vmem %s3613_s8, 8192 }
  0x93   : > { %v542_v22 = vsel %vm539_vm1, %v540_v11, %v541_v9  ;;  %v620_v23 = vsel %vm539_vm1, 0.0, %v540_v11  ;;  %v800_v24 = vsel %vm797_vm2, %v798_v12, %v799_v10  ;;  %v395_v59 = vadd.f32 %v3986_v3, %v357_v47  ;;  %447 = vst.msk [vmem:[#allocation2 + $0x30] sm:$0xff] %vm436_vm0, %v408_v54  ;;  %v2213_v9 = vld [vmem:[#allocation10 + $0x20] sm:$0xff]  ;;  %v2214_v10 = vld [vmem:[#allocation10 + $0x28] sm:$0xff]  ;;  %p3616_p7 = scmp.lt.s32.totalorder %s3614_s9, %s3608_s23 }
  0x94   : > { %636 = vst.msk [vmem:[#allocation3] sm:$0xff] %vm436_vm0, %v620_v23  ;;  %637 = vst.msk [vmem:[#allocation3 + $0x18] sm:$0xff] %vm436_vm0, %v542_v22  ;;  %894 = vrot.lane.b32.xlu1 %v800_v24, %s3725_s26  ;;  %v426_v60 = vmax.f32 %v394_v48, 0.0  ;;  %v398_v61 = vadd.f32 %v3986_v3, %v360_v49  ;;  %v378_v62 = vadd.f32 %v3986_v3, %v340_v50  ;;  %v324_v12 = vld [vmem:[%s3964_s15 + $0xe0] sm:$0xff]  ;;  %vm990_vm4 = vcmask 785920  }
  0x95   : > { %467 = vst.msk [vmem:[#allocation2 + $0xd0] sm:$0xff] %vm436_vm0, %v428_v55  ;;  %468 = vst.msk [vmem:[#allocation2 + $0xd8] sm:$0xff] %vm436_vm0, %v429_v56  ;;  %v361_v4 = vmul.f32 %v3984_v2, %v323_v51  ;;  %v3314_v5 = vpack.c.bf16 %v2210_v53, %v2209_v52  ;;  %v427_v6 = vmax.f32 %v395_v59, 0.0  ;;  %v341_v11 = vmul.f32 %v3984_v2, %v303_v58  ;;  %v2217_v59 = vld [vmem:[#allocation10 + $0x40] sm:$0xff]  ;;  %p3617_p10 = por %p3616_p7, %p3615_p3 }
  0x96   : > { %448 = vst.msk [vmem:[#allocation2 + $0x38] sm:$0xff] %vm436_vm0, %v409_v57  ;;  %465 = vst.msk [vmem:[#allocation2 + $0xc0] sm:$0xff] %vm436_vm0, %v426_v60  ;;  %v430_v7 = vmax.f32 %v398_v61, 0.0  ;;  %v410_v8 = vmax.f32 %v378_v62, 0.0  ;;  %v4048_v13 = vld [vmem:[#allocation2 + $0x20] sm:$0xff]  ;;  %v3317_v15 = vpack.c.bf16 %v2212_v0, %v2211_v63  ;;  %v4066_v23 = vpack.c.bf16 %v2214_v10, %v2213_v9  ;;  %v2218_v60 = vld [vmem:[#allocation10 + $0x48] sm:$0xff] }
  0x97   : > { %v399_v14 = vadd.f32 %v3986_v3, %v361_v4  ;;  %3315 = vmatpush1.bf16.msra.mxu0 %v3314_v5  ;;  %1857 = vrot.lane.b32.xlu0 %v4048_v13, %s3726_s13  ;;  %v1985_v16 = vrot.slane %v4048_v13, 1  ;;  %v1633_v17 = vrot.slane %v4048_v13, 7  ;;  %1314 = vst.msk [vmem:[#allocation3 + $0x38] sm:$0xff] %vm436_vm0, %v4048_v13  ;;  %466 = vst.msk [vmem:[#allocation2 + $0xc8] sm:$0xff] %vm436_vm0, %v427_v6  ;;  %v4062_v19 = vld [vmem:[#allocation2 + $0x28] sm:$0xff]  ;;  %vm1279_vm5 = vcmask 1048320   ;;  %p3618_p13 = pnand %p3617_p10, %p3611_p8 }
  0x98   : > { %896 = vrot.lane.b32.xlu1 %v862_v25, %s3725_s26  ;;  %469 = vst.msk [vmem:[#allocation2 + $0xe0] sm:$0xff] %vm436_vm0, %v430_v7  ;;  %449 = vst.msk [vmem:[#allocation2 + $0x40] sm:$0xff] %vm436_vm0, %v410_v8  ;;  %3316 = vmatprep.subr.bf16.mxu0 %v3723_v1  ;;  %v379_v18 = vadd.f32 %v3986_v3, %v341_v11  ;;  %v477_v20 = vld [vmem:[#allocation2 + $0x10] sm:$0xff]  ;;  %v4064_v21 = vld [vmem:[#allocation2 + $0x18] sm:$0xff]  ;;  %v4069_v24 = vmul.f32 %v3984_v2, %v324_v12  ;;  %v1634_v25 = vrot.slane %v4062_v19, 7 }
  0x99   : > { %v431_v22 = vmax.f32 %v399_v14, 0.0  ;;  %3385 = vmatpush1.bf16.msra.mxu1 %v3314_v5  ;;  %v1986_v26 = vrot.slane %v4062_v19, 1  ;;  %v544_v27 = vrot.slane %v4064_v21, 7  ;;  %v543_v28 = vrot.slane %v477_v20, 7  ;;  %1312 = vst.msk [vmem:[#allocation3 + $0x8] sm:$0xff] %vm436_vm0, %v477_v20  ;;  %1313 = vst.msk [vmem:[#allocation3 + $0x20] sm:$0xff] %vm436_vm0, %v4064_v21 }
  0x9a   : > { %1315 = vst.msk [vmem:[#allocation3 + $0x50] sm:$0xff] %vm436_vm0, %v4062_v19  ;;  %3370 = vmatprep.subr.bf16.mxu1 %v3723_v1  ;;  %v801_v29 = vrot.slane %v477_v20, 1  ;;  %v1345_v30 = vrot.slane %v4064_v21, 1  ;;  %v4083_v31 = vsel %vm539_vm1, 0.0, %v1633_v17  ;;  %v411_v32 = vmax.f32 %v379_v18, 0.0  ;;  %v4098_v39 = vld [vmem:[#allocation2 + $0x30] sm:$0xff] }
  0x9b   : > { %470 = vst.msk [vmem:[#allocation2 + $0xe8] sm:$0xff] %vm436_vm0, %v431_v22  ;;  %3318 = vmatpush1.bf16.msra.mxu0 %v3317_v15  ;;  %v4087_v35 = vsel %vm797_vm2, %v1986_v26, 0.0  ;;  %1859 = vrot.lane.b32.xlu0 %v4062_v19, %s3726_s13  ;;  %v4092_v36 = vsel %vm797_vm2, %v1985_v16, %v1986_v26  ;;  %v4095_v37 = vsel %vm539_vm1, %v543_v28, %v544_v27  ;;  %v621_v38 = vsel %vm539_vm1, 0.0, %v543_v28  ;;  %v2219_v14 = vld [vmem:[#allocation10 + $0x50] sm:$0xff]  ;;  %v304_v22 = vld [vmem:[%s3964_s15 + $0x40] sm:$0xff] }
  0x9c   : > { %672 = vrot.lane.b32.xlu1 %v477_v20, %s3724_s24  ;;  %v4100_v40 = vld [vmem:[#allocation2 + $0xd0] sm:$0xff]  ;;  %v4102_v41 = vld [vmem:[#allocation2 + $0xd8] sm:$0xff]  ;;  %640 = vst.msk [vmem:[#allocation3 + $0x60] sm:$0xff] %vm436_vm0, %v4083_v31  ;;  %3319 = vmatprep.subr.bf16.mxu0 %v3723_v1  ;;  %2082 = vst.msk [vmem:[#allocation3 + $0x28] sm:$0xff] %vm436_vm0, %v4087_v35  ;;  %v4115_v42 = vsel %vm797_vm2, %v801_v29, %v1345_v30  ;;  %v4118_v43 = vsel %vm539_vm1, %v1633_v17, %v1634_v25  ;;  %v1636_v44 = vrot.slane %v4098_v39, 7 }
  0x9d   : > { %2081 = vst.msk [vmem:[#allocation3 + $0x10] sm:$0xff] %vm436_vm0, %v4092_v36  ;;  %638 = vst.msk [vmem:[#allocation3 + $0x30] sm:$0xff] %vm436_vm0, %v621_v38  ;;  %v4125_v45 = vld [vmem:[#allocation2 + $0x38] sm:$0xff]  ;;  %3386 = vmatpush1.bf16.msra.mxu1 %v3317_v15  ;;  %v1988_v46 = vrot.slane %v4098_v39, 1  ;;  %v4134_v48 = vld [vmem:[#allocation2 + $0xc0] sm:$0xff]  ;;  %v3323_v54 = vpack.c.bf16 %v2216_v34, %v2215_v33  ;;  %v4165_v61 = vadd.f32 %v3986_v3, %v4069_v24  ;;  %v4170_v62 = vsel %vm797_vm2, %v1345_v30, 0.0 }
  0x9e   : > { %639 = vst.msk [vmem:[#allocation3 + $0x48] sm:$0xff] %vm436_vm0, %v4095_v37  ;;  %1336 = vst.msk [vmem:[#allocation3 + $0x248] sm:$0xff] %vm436_vm0, %v4100_v40  ;;  %v1637_v47 = vrot.slane %v4125_v45, 7  ;;  %3371 = vmatprep.subr.bf16.mxu1 %v3723_v1  ;;  %v4142_v49 = vsel %vm539_vm1, 0.0, %v1636_v44  ;;  %v1989_v50 = vrot.slane %v4125_v45, 1  ;;  %v4145_v51 = vld [vmem:[#allocation2 + $0xc8] sm:$0xff]  ;;  %v3326_v12 = vpack.c.bf16 %v2218_v60, %v2217_v59 }
  0x9f   : > { %1337 = vst.msk [vmem:[#allocation3 + $0x260] sm:$0xff] %vm436_vm0, %v4102_v41  ;;  %1316 = vst.msk [vmem:[#allocation3 + $0x68] sm:$0xff] %vm436_vm0, %v4098_v39  ;;  %v576_v52 = vrot.slane %v4134_v48, 7  ;;  %v4148_v53 = vld [vmem:[#allocation2 + $0xe0] sm:$0xff]  ;;  %3321 = vmatpush1.bf16.msra.mxu0 %v4066_v23  ;;  %1440 = vrot.lane.b32.xlu0 %v4115_v42, %s3724_s24  ;;  %v577_v56 = vrot.slane %v4145_v51, 7  ;;  %v1123_v8 = vrot.slane %v4100_v40, 7 }
  0xa0   : > { %450 = vst.msk [vmem:[#allocation2 + $0x48] sm:$0xff] %vm436_vm0, %v411_v32  ;;  %1729 = vrot.lane.b32.xlu1 %v4083_v31, %s3725_s26  ;;  %1317 = vst.msk [vmem:[#allocation3 + $0x80] sm:$0xff] %vm436_vm0, %v4125_v45  ;;  %v4154_v55 = vsel %vm539_vm1, %v1636_v44, %v1637_v47  ;;  %v1669_v57 = vrot.slane %v4148_v53, 7  ;;  %v4158_v58 = vld [vmem:[#allocation2 + $0x40] sm:$0xff]  ;;  %3322 = vmatprep.subr.bf16.mxu0 %v3723_v1  ;;  %v4173_v63 = vsel %vm797_vm2, %v1988_v46, %v1989_v50  ;;  %v325_v32 = vld [vmem:[%s3964_s15 + $0xe8] sm:$0xff] }
  0xa1   : > { %641 = vst.msk [vmem:[#allocation3 + $0x78] sm:$0xff] %vm436_vm0, %v4118_v43  ;;  %1338 = vst.msk [vmem:[#allocation3 + $0x278] sm:$0xff] %vm436_vm0, %v4148_v53  ;;  %v4176_v0 = vsel %vm797_vm2, %v1989_v50, 0.0  ;;  %v632_v4 = vsel %vm539_vm1, 0.0, %v576_v52  ;;  %3387 = vmatpush1.bf16.msra.mxu1 %v4066_v23  ;;  %v578_v5 = vsel %vm539_vm1, %v576_v52, %v577_v56  ;;  %v2021_v7 = vrot.slane %v4148_v53, 1  ;;  %v2220_v20 = vld [vmem:[#allocation10 + $0x58] sm:$0xff] }
  0xa2   : > { %642 = vst.msk [vmem:[#allocation3 + $0x90] sm:$0xff] %vm436_vm0, %v4142_v49  ;;  %1318 = vst.msk [vmem:[#allocation3 + $0x98] sm:$0xff] %vm436_vm0, %v4158_v58  ;;  %v4192_v6 = vsel %vm539_vm1, 0.0, %v1669_v57  ;;  %v4196_v9 = vld [vmem:[#allocation2 + $0xe8] sm:$0xff]  ;;  %3372 = vmatprep.subr.bf16.mxu1 %v3723_v1  ;;  %v1639_v10 = vrot.slane %v4158_v58, 7  ;;  %v4209_v15 = vsel %vm539_vm1, 0.0, %v1123_v8  ;;  %v363_v56 = vmul.f32 %v3984_v2, %v325_v32 }
  0xa3   : > { %643 = vst.msk [vmem:[#allocation3 + $0xa8] sm:$0xff] %vm436_vm0, %v4154_v55  ;;  %2083 = vst.msk [vmem:[#allocation3 + $0x40] sm:$0xff] %vm436_vm0, %v4173_v63  ;;  %v1670_v11 = vrot.slane %v4196_v9, 7  ;;  %3324 = vmatpush1.bf16.msra.mxu0 %v3323_v54  ;;  %1442 = vrot.lane.b32.xlu0 %v4170_v62, %s3724_s24  ;;  %v1991_v16 = vrot.slane %v4158_v58, 1  ;;  %v2022_v17 = vrot.slane %v4196_v9, 1  ;;  %v1124_v25 = vrot.slane %v4102_v41, 7 }
  0xa4   : > { %1183 = vrot.lane.b32.xlu1 %v621_v38, %s3726_s13  ;;  %2084 = vst.msk [vmem:[#allocation3 + $0x58] sm:$0xff] %vm436_vm0, %v4176_v0  ;;  %660 = vst.msk [vmem:[#allocation3 + $0x240] sm:$0xff] %vm436_vm0, %v632_v4  ;;  %3325 = vmatprep.subr.bf16.mxu0 %v3723_v1  ;;  %v4218_v23 = vsel %vm539_vm1, 0.0, %v1639_v10  ;;  %v432_v30 = vmax.f32 %v4165_v61, 0.0  ;;  %v342_v38 = vmul.f32 %v3984_v2, %v304_v22  ;;  %v2221_v47 = vld [vmem:[#allocation10 + $0x60] sm:$0xff]  ;;  %v2222_v50 = vld [vmem:[#allocation10 + $0x68] sm:$0xff] }
  0xa5   : > { %661 = vst.msk [vmem:[#allocation3 + $0x258] sm:$0xff] %vm436_vm0, %v578_v5  ;;  %1339 = vst.msk [vmem:[#allocation3 + $0x290] sm:$0xff] %vm436_vm0, %v4196_v9  ;;  %v4221_v24 = vsel %vm539_vm1, %v1669_v57, %v1670_v11  ;;  %3388 = vmatpush1.bf16.msra.mxu1 %v3323_v54  ;;  %v4232_v27 = vsel %vm797_vm2, %v2021_v7, %v2022_v17  ;;  %v4235_v28 = vsel %vm797_vm2, %v2022_v17, 0.0  ;;  %v305_v52 = vld [vmem:[%s3964_s15 + $0x48] sm:$0xff]  ;;  %v326_v57 = vld [vmem:[%s3964_s15 + $0xf0] sm:$0xff] }
  0xa6   : > { %664 = vst.msk [vmem:[#allocation3 + $0x2a0] sm:$0xff] %vm436_vm0, %v4192_v6  ;;  %662 = vst.msk [vmem:[#allocation3 + $0x270] sm:$0xff] %vm436_vm0, %v4209_v15  ;;  %3373 = vmatprep.subr.bf16.mxu1 %v3723_v1  ;;  %v4250_v33 = vsel %vm539_vm1, %v1123_v8, %v1124_v25  ;;  %v380_v54 = vadd.f32 %v3986_v3, %v342_v38  ;;  %v306_v59 = vld [vmem:[%s3964_s15 + $0x50] sm:$0xff]  ;;  %v327_v60 = vld [vmem:[%s3964_s15 + $0xf8] sm:$0xff]  ;;  %v3332_v61 = vpack.c.bf16 %v2222_v50, %v2221_v47 }
  0xa7   : > { %v4213_v18 = vld [vmem:[#allocation2 + $0x48] sm:$0xff]  ;;  %665 = vst.msk [vmem:[#allocation3 + $0x2b8] sm:$0xff] %vm436_vm0, %v4221_v24  ;;  %644 = vst.msk [vmem:[#allocation3 + $0xc0] sm:$0xff] %vm436_vm0, %v4218_v23  ;;  %3327 = vmatpush1.bf16.msra.mxu0 %v3326_v12  ;;  %1731 = vrot.lane.b32.xlu0 %v4118_v43, %s3725_s26  ;;  %v401_v5 = vadd.f32 %v3986_v3, %v363_v56  ;;  %v343_v7 = vmul.f32 %v3984_v2, %v305_v52  ;;  %v2223_v8 = vld [vmem:[#allocation10 + $0x70] sm:$0xff] }
  0xa8   : > { %v1640_v26 = vrot.slane %v4213_v18, 7  ;;  %1319 = vst.msk [vmem:[#allocation3 + $0xb0] sm:$0xff] %vm436_vm0, %v4213_v18  ;;  %1185 = vrot.lane.b32.xlu1 %v4095_v37, %s3726_s13  ;;  %v1992_v29 = vrot.slane %v4213_v18, 1  ;;  %2105 = vst.msk [vmem:[#allocation3 + $0x250] sm:$0xff] %vm436_vm0, %v4232_v27  ;;  %v3329_v37 = vpack.c.bf16 %v2220_v20, %v2219_v14  ;;  %3328 = vmatprep.subr.bf16.mxu0 %v3723_v1  ;;  %v412_v4 = vmax.f32 %v380_v54, 0.0  ;;  %v2226_v32 = vld [vmem:[#allocation10 + $0x88] sm:$0xff] }
  0xa9   : > { %2106 = vst.msk [vmem:[#allocation3 + $0x268] sm:$0xff] %vm436_vm0, %v4235_v28  ;;  %663 = vst.msk [vmem:[#allocation3 + $0x288] sm:$0xff] %vm436_vm0, %v4250_v33  ;;  %3389 = vmatpush1.bf16.msra.mxu1 %v3326_v12  ;;  %v364_v11 = vmul.f32 %v3984_v2, %v326_v57  ;;  %v365_v12 = vmul.f32 %v3984_v2, %v327_v60  ;;  %v433_v14 = vmax.f32 %v401_v5, 0.0  ;;  %v2227_v54 = vld [vmem:[#allocation10 + $0x90] sm:$0xff]  ;;  %v2228_v56 = vld [vmem:[#allocation10 + $0x98] sm:$0xff]  ;;  %v1380_v57 = vrot.slane %v4100_v40, 1 }
  0xaa   : > { %v4253_v34 = vsel %vm539_vm1, %v1639_v10, %v1640_v26  ;;  %v4259_v44 = vsel %vm797_vm2, %v1991_v16, %v1992_v29  ;;  %v4262_v46 = vsel %vm797_vm2, %v1992_v29, 0.0  ;;  %471 = vst.msk [vmem:[#allocation2 + $0xf0] sm:$0xff] %vm436_vm0, %v432_v30  ;;  %3374 = vmatprep.subr.bf16.mxu1 %v3723_v1  ;;  %v2224_v10 = vld [vmem:[#allocation10 + $0x78] sm:$0xff]  ;;  %451 = vst.msk [vmem:[#allocation2 + $0x50] sm:$0xff] %vm436_vm0, %v412_v4  ;;  %v2225_v30 = vld [vmem:[#allocation10 + $0x80] sm:$0xff] }
  0xab   : > { %645 = vst.msk [vmem:[#allocation3 + $0xd8] sm:$0xff] %vm436_vm0, %v4253_v34  ;;  %2085 = vst.msk [vmem:[#allocation3 + $0x70] sm:$0xff] %vm436_vm0, %v4259_v44  ;;  %3330 = vmatpush1.bf16.msra.mxu0 %v3329_v37  ;;  %1444 = vrot.lane.b32.xlu0 %v4092_v36, %s3724_s24  ;;  %v381_v16 = vadd.f32 %v3986_v3, %v343_v7  ;;  %v402_v17 = vadd.f32 %v3986_v3, %v364_v11 }
  0xac   : > { %2086 = vst.msk [vmem:[#allocation3 + $0x88] sm:$0xff] %vm436_vm0, %v4262_v46  ;;  %898 = vrot.lane.b32.xlu1 %v4115_v42, %s3725_s26  ;;  %3331 = vmatprep.subr.bf16.mxu0 %v3723_v1  ;;  %v344_v42 = vmul.f32 %v3984_v2, %v306_v59  ;;  %v403_v22 = vadd.f32 %v3986_v3, %v365_v12  ;;  %472 = vst.msk [vmem:[#allocation2 + $0xf8] sm:$0xff] %vm436_vm0, %v433_v14  ;;  %v1381_v59 = vrot.slane %v4102_v41, 1  ;;  %v2230_v12 = vld [vmem:[#allocation10 + $0xa8] sm:$0xff] }
  0xad   : > { %3390 = vmatpush1.bf16.msra.mxu1 %v3329_v37  ;;  %v3335_v26 = vpack.c.bf16 %v2224_v10, %v2223_v8  ;;  %v413_v29 = vmax.f32 %v381_v16, 0.0  ;;  %v434_v37 = vmax.f32 %v402_v17, 0.0  ;;  %v3338_v52 = vpack.c.bf16 %v2226_v32, %v2225_v30 }
  0xae   : > { %3375 = vmatprep.subr.bf16.mxu1 %v3723_v1  ;;  %v382_v20 = vadd.f32 %v3986_v3, %v344_v42  ;;  %v435_v47 = vmax.f32 %v403_v22, 0.0  ;;  %v3341_v7 = vpack.c.bf16 %v2228_v56, %v2227_v54  ;;  %v2229_v42 = vld [vmem:[#allocation10 + $0xa0] sm:$0xff]  ;;  %v4356_v16 = vsel %vm797_vm2, %v1380_v57, %v1381_v59  ;;  %v2232_v54 = vld [vmem:[#allocation10 + $0xb8] sm:$0xff] }
  0xaf   : > { %3333 = vmatpush1.bf16.msra.mxu0 %v3332_v61  ;;  %1733 = vrot.lane.b32.xlu0 %v4142_v49, %s3725_s26  ;;  %452 = vst.msk [vmem:[#allocation2 + $0x58] sm:$0xff] %vm436_vm0, %v413_v29  ;;  %473 = vst.msk [vmem:[#allocation2 + $0x100] sm:$0xff] %vm436_vm0, %v434_v37 }
  0xb0   : > { %1187 = vrot.lane.b32.xlu1 %v4083_v31, %s3726_s13  ;;  %3334 = vmatprep.subr.bf16.mxu0 %v3723_v1  ;;  %v414_v38 = vmax.f32 %v382_v20, 0.0  ;;  %474 = vst.msk [vmem:[#allocation2 + $0x108] sm:$0xff] %vm436_vm0, %v435_v47 }
  0xb1   : > { %v4299_v25 = vld [vmem:[#allocation2 + $0xf0] sm:$0xff]  ;;  %3391 = vmatpush1.bf16.msra.mxu1 %v3332_v61 }
  0xb2   : > { %v1672_v31 = vrot.slane %v4299_v25, 7  ;;  %1340 = vst.msk [vmem:[#allocation3 + $0x2a8] sm:$0xff] %vm436_vm0, %v4299_v25  ;;  %3376 = vmatprep.subr.bf16.mxu1 %v3723_v1  ;;  %453 = vst.msk [vmem:[#allocation2 + $0x60] sm:$0xff] %vm436_vm0, %v414_v38  ;;  %v2024_v60 = vrot.slane %v4299_v25, 1  ;;  %v3344_v38 = vpack.c.bf16 %v2230_v12, %v2229_v42  ;;  %v2233_v12 = vld [vmem:[#allocation10 + $0xc0] sm:$0xff] }
  0xb3   : > { %3336 = vmatpush1.bf16.msra.mxu0 %v3335_v26  ;;  %1861 = vrot.lane.b32.xlu0 %v4098_v39, %s3726_s13  ;;  %v4333_v4 = vld [vmem:[#allocation2 + $0xf8] sm:$0xff] }
  0xb4   : > { %674 = vrot.lane.b32.xlu1 %v4064_v21, %s3724_s24  ;;  %v4312_v50 = vsel %vm539_vm1, 0.0, %v1672_v31  ;;  %3337 = vmatprep.subr.bf16.mxu0 %v3723_v1  ;;  %v4323_v21 = vld [vmem:[#allocation2 + $0x50] sm:$0xff]  ;;  %v1673_v8 = vrot.slane %v4333_v4, 7  ;;  %v2025_v10 = vrot.slane %v4333_v4, 1  ;;  %1341 = vst.msk [vmem:[#allocation3 + $0x2c0] sm:$0xff] %vm436_vm0, %v4333_v4 }
  0xb5   : > { %666 = vst.msk [vmem:[#allocation3 + $0x2d0] sm:$0xff] %vm436_vm0, %v4312_v50  ;;  %v1642_v61 = vrot.slane %v4323_v21, 7  ;;  %3392 = vmatpush1.bf16.msra.mxu1 %v3335_v26  ;;  %1320 = vst.msk [vmem:[#allocation3 + $0xc8] sm:$0xff] %vm436_vm0, %v4323_v21  ;;  %v1994_v11 = vrot.slane %v4323_v21, 1 }
  0xb6   : > { %3377 = vmatprep.subr.bf16.mxu1 %v3723_v1  ;;  %v4349_v14 = vld [vmem:[#allocation2 + $0x58] sm:$0xff]  ;;  %v4359_v17 = vsel %vm539_vm1, %v1672_v31, %v1673_v8  ;;  %v4362_v20 = vsel %vm797_vm2, %v2024_v60, %v2025_v10  ;;  %v4365_v22 = vsel %vm797_vm2, %v2025_v10, 0.0  ;;  %v4367_v26 = vld [vmem:[#allocation2 + $0x100] sm:$0xff] }
  0xb7   : > { %3339 = vmatpush1.bf16.msra.mxu0 %v3338_v52  ;;  %v4339_v5 = vsel %vm539_vm1, 0.0, %v1642_v61  ;;  %1446 = vrot.lane.b32.xlu0 %v4087_v35, %s3724_s24  ;;  %1321 = vst.msk [vmem:[#allocation3 + $0xe0] sm:$0xff] %vm436_vm0, %v4349_v14  ;;  %2107 = vst.msk [vmem:[#allocation3 + $0x280] sm:$0xff] %vm436_vm0, %v4362_v20  ;;  %v1995_v31 = vrot.slane %v4349_v14, 1  ;;  %v2027_v30 = vrot.slane %v4367_v26, 1  ;;  %v4383_v37 = vld [vmem:[#allocation2 + $0x108] sm:$0xff] }
  0xb8   : > { %1735 = vrot.lane.b32.xlu1 %v4154_v55, %s3725_s26  ;;  %3340 = vmatprep.subr.bf16.mxu0 %v3723_v1  ;;  %646 = vst.msk [vmem:[#allocation3 + $0xf0] sm:$0xff] %vm436_vm0, %v4339_v5  ;;  %2108 = vst.msk [vmem:[#allocation3 + $0x298] sm:$0xff] %vm436_vm0, %v4365_v22  ;;  %v2028_v47 = vrot.slane %v4383_v37, 1 }
  0xb9   : > { %3393 = vmatpush1.bf16.msra.mxu1 %v3338_v52  ;;  %v4371_v29 = vld [vmem:[#allocation2 + $0x60] sm:$0xff]  ;;  %1342 = vst.msk [vmem:[#allocation3 + $0x2d8] sm:$0xff] %vm436_vm0, %v4367_v26  ;;  %667 = vst.msk [vmem:[#allocation3 + $0x2e8] sm:$0xff] %vm436_vm0, %v4359_v17  ;;  %v2231_v52 = vld [vmem:[#allocation10 + $0xb0] sm:$0xff]  ;;  %v4399_v56 = vsel %vm797_vm2, %v1994_v11, %v1995_v31  ;;  %v4402_v57 = vsel %vm797_vm2, %v1995_v31, 0.0 }
  0xba   : > { %3378 = vmatprep.subr.bf16.mxu1 %v3723_v1  ;;  %v1645_v32 = vrot.slane %v4371_v29, 7  ;;  %1322 = vst.msk [vmem:[#allocation3 + $0xf8] sm:$0xff] %vm436_vm0, %v4371_v29  ;;  %1343 = vst.msk [vmem:[#allocation3 + $0x2f0] sm:$0xff] %vm436_vm0, %v4383_v37  ;;  %v4414_v8 = vsel %vm797_vm2, %v2027_v30, %v2028_v47  ;;  %v4417_v10 = vsel %vm797_vm2, %v2028_v47, 0.0  ;;  %v2234_v31 = vld [vmem:[#allocation10 + $0xc8] sm:$0xff]  ;;  %v834_v30 = vrot.slane %v4134_v48, 1 }
  0xbb   : > { %3342 = vmatpush1.bf16.msra.mxu0 %v3341_v7  ;;  %1488 = vrot.lane.b32.xlu0 %v4356_v16, %s3724_s24  ;;  %2087 = vst.msk [vmem:[#allocation3 + $0xa0] sm:$0xff] %vm436_vm0, %v4399_v56  ;;  %2088 = vst.msk [vmem:[#allocation3 + $0xb8] sm:$0xff] %vm436_vm0, %v4402_v57 }
  0xbc   : > { %900 = vrot.lane.b32.xlu1 %v4170_v62, %s3725_s26  ;;  %v307_v62 = vld [vmem:[%s3964_s15 + $0x58] sm:$0xff]  ;;  %3343 = vmatprep.subr.bf16.mxu0 %v3723_v1  ;;  %v4407_v60 = vsel %vm539_vm1, 0.0, %v1645_v32  ;;  %2109 = vst.msk [vmem:[#allocation3 + $0x2b0] sm:$0xff] %vm436_vm0, %v4414_v8  ;;  %2110 = vst.msk [vmem:[#allocation3 + $0x2c8] sm:$0xff] %vm436_vm0, %v4417_v10 }
  0xbd   : > { %3394 = vmatpush1.bf16.msra.mxu1 %v3341_v7  ;;  %v345_v11 = vmul.f32 %v3984_v2, %v307_v62  ;;  %648 = vst.msk [vmem:[#allocation3 + $0x120] sm:$0xff] %vm436_vm0, %v4407_v60  ;;  %v3347_v7 = vpack.c.bf16 %v2232_v54, %v2231_v52  ;;  %v835_v62 = vrot.slane %v4145_v51, 1  ;;  %v3350_v52 = vpack.c.bf16 %v2234_v31, %v2233_v12  ;;  %v2235_v54 = vld [vmem:[#allocation10 + $0xd0] sm:$0xff] }
  0xbe   : > { %3379 = vmatprep.subr.bf16.mxu1 %v3723_v1  ;;  %v1997_v12 = vrot.slane %v4371_v29, 1  ;;  %v2239_v31 = vld [vmem:[#allocation10 + $0xf0] sm:$0xff] }
  0xbf   : > { %3345 = vmatpush1.bf16.msra.mxu0 %v3344_v38  ;;  %v383_v42 = vadd.f32 %v3986_v3, %v345_v11  ;;  %716 = vrot.lane.b32.xlu0 %v4134_v48, %s3724_s24  ;;  %v2236_v48 = vld [vmem:[#allocation10 + $0xd8] sm:$0xff]  ;;  %v836_v11 = vsel %vm797_vm2, %v834_v30, %v835_v62 }
  0xc0   : > { %1863 = vrot.lane.b32.xlu1 %v4125_v45, %s3726_s13  ;;  %3346 = vmatprep.subr.bf16.mxu0 %v3723_v1  ;;  %v2240_v30 = vld [vmem:[#allocation10 + $0xf8] sm:$0xff] }
  0xc1   : > { %3395 = vmatpush1.bf16.msra.mxu1 %v3344_v38  ;;  %v415_v47 = vmax.f32 %v383_v42, 0.0  ;;  %v2237_v38 = vld [vmem:[#allocation10 + $0xe0] sm:$0xff]  ;;  %v2238_v42 = vld [vmem:[#allocation10 + $0xe8] sm:$0xff] }
  0xc2   : > { %3380 = vmatprep.subr.bf16.mxu1 %v3723_v1 }
  0xc3   : > { %3348 = vmatpush1.bf16.msra.mxu0 %v3347_v7  ;;  %454 = vst.msk [vmem:[#allocation2 + $0x68] sm:$0xff] %vm436_vm0, %v415_v47  ;;  %1777 = vrot.lane.b32.xlu0 %v4192_v6, %s3725_s26 }
  0xc4   : > { %1189 = vrot.lane.b32.xlu1 %v4118_v43, %s3726_s13  ;;  %3349 = vmatprep.subr.bf16.mxu0 %v3723_v1  ;;  %v3353_v43 = vpack.c.bf16 %v2236_v48, %v2235_v54  ;;  %v3359_v54 = vpack.c.bf16 %v2240_v30, %v2239_v31  ;;  %v4479_v48 = vsel %vm797_vm2, %v1381_v59, 0.0 }
  0xc5   : > { %3396 = vmatpush1.bf16.msra.mxu1 %v3347_v7 }
  0xc6   : > { %3381 = vmatprep.subr.bf16.mxu1 %v3723_v1 }
  0xc7   : > { %3351 = vmatpush1.bf16.msra.mxu0 %v3350_v52  ;;  %942 = vrot.lane.b32.xlu0 %v836_v11, %s3725_s26  ;;  %v308_v11 = vld [vmem:[%s3964_s15 + $0x60] sm:$0xff] }
  0xc8   : > { %1231 = vrot.lane.b32.xlu1 %v4209_v15, %s3726_s13  ;;  %3352 = vmatprep.subr.bf16.mxu0 %v3723_v1  ;;  %v3356_v15 = vpack.c.bf16 %v2238_v42, %v2237_v38  ;;  %v309_v42 = vld [vmem:[%s3964_s15 + $0x68] sm:$0xff] }
  0xc9   : > { %3397 = vmatpush1.bf16.msra.mxu1 %v3350_v52 }
  0xca   : > { %3382 = vmatprep.subr.bf16.mxu1 %v3723_v1  ;;  %v4452_v7 = vld [vmem:[#allocation2 + $0x68] sm:$0xff] }
  0xcb   : > { %3354 = vmatpush1.bf16.msra.mxu0 %v3353_v43  ;;  %1323 = vst.msk [vmem:[#allocation3 + $0x110] sm:$0xff] %vm436_vm0, %v4452_v7  ;;  %1905 = vrot.lane.b32.xlu0 %v4148_v53, %s3726_s13 }
  0xcc   : > { %676 = vrot.lane.b32.xlu1 %v4048_v13, %s3724_s24  ;;  %3355 = vmatprep.subr.bf16.mxu0 %v3723_v1  ;;  %v1998_v13 = vrot.slane %v4452_v7, 1 }
  0xcd   : > { %3398 = vmatpush1.bf16.msra.mxu1 %v3353_v43  ;;  %v346_v43 = vmul.f32 %v3984_v2, %v308_v11 }
  0xce   : > { %3383 = vmatprep.subr.bf16.mxu1 %v3723_v1  ;;  %v4464_v47 = vsel %vm797_vm2, %v1997_v12, %v1998_v13  ;;  %v4467_v52 = vsel %vm797_vm2, %v1998_v13, 0.0 }
  0xcf   : > { %3357 = vmatpush1.bf16.msra.mxu0 %v3356_v15  ;;  %2089 = vst.msk [vmem:[#allocation3 + $0xd0] sm:$0xff] %vm436_vm0, %v4464_v47  ;;  %2090 = vst.msk [vmem:[#allocation3 + $0xe8] sm:$0xff] %vm436_vm0, %v4467_v52  ;;  %1448 = vrot.lane.b32.xlu0 %v4173_v63, %s3724_s24  ;;  %v384_v38 = vadd.f32 %v3986_v3, %v346_v43 }
  0xd0   : > { %1737 = vrot.lane.b32.xlu1 %v4218_v23, %s3725_s26  ;;  %3358 = vmatprep.subr.bf16.mxu0 %v3723_v1 }
  0xd1   : > { %3399 = vmatpush1.bf16.msra.mxu1 %v3356_v15  ;;  %v416_v59 = vmax.f32 %v384_v38, 0.0  ;;  %v347_v15 = vmul.f32 %v3984_v2, %v309_v42  ;;  %v311_v42 = vld [vmem:[%s3964_s15 + $0x78] sm:$0xff] }
  0xd2   : > { %3384 = vmatprep.subr.bf16.mxu1 %v3723_v1  ;;  %v874_v1 = vsel %vm797_vm2, %v835_v62, 0.0  ;;  %v4527_v62 = vld [vmem:[#allocation2 + $0x118] sm:$0xff] }
  0xd3   : > { %3360 = vmatpush1.bf16.msra.mxu0 %v3359_v54  ;;  %1490 = vrot.lane.b32.xlu0 %v4479_v48, %s3724_s24  ;;  %455 = vst.msk [vmem:[#allocation2 + $0x70] sm:$0xff] %vm436_vm0, %v416_v59  ;;  %v2031_v12 = vrot.slane %v4527_v62, 1  ;;  %v385_v13 = vadd.f32 %v3986_v3, %v347_v15 }
  0xd4   : > { %902 = vrot.lane.b32.xlu1 %v4092_v36, %s3725_s26 }
  0xd5   : > { %3400 = vmatpush1.bf16.msra.mxu1 %v3359_v54  ;;  %v2080_v30 = vsel %vm797_vm2, %v2031_v12, 0.0  ;;  %v310_v54 = vld [vmem:[%s3964_s15 + $0x70] sm:$0xff] }
  0xd6   : > { %2112 = vst.msk [vmem:[#allocation3 + $0x2f8] sm:$0xff] %vm436_vm0, %v2080_v30  ;;  %v348_v11 = vmul.f32 %v3984_v2, %v310_v54 }
  0xd7   : > { %718 = vrot.lane.b32.xlu0 %v4145_v51, %s3724_s24 }
  0xd8   : > { %1865 = vrot.lane.b32.xlu1 %v4158_v58, %s3726_s13 }
  0xda   : > { %v4502_v36 = vld [vmem:[#allocation2 + $0x70] sm:$0xff] }
  0xdb   : > { %1779 = vrot.lane.b32.xlu0 %v4221_v24, %s3725_s26  ;;  %v1648_v51 = vrot.slane %v4502_v36, 7  ;;  %1324 = vst.msk [vmem:[#allocation3 + $0x128] sm:$0xff] %vm436_vm0, %v4502_v36 }
  0xdc   : > { %1191 = vrot.lane.b32.xlu1 %v4142_v49, %s3726_s13 }
  0xdd   : > { %v4512_v49 = vsel %vm539_vm1, 0.0, %v1648_v51 }
  0xde   : > { %650 = vst.msk [vmem:[#allocation3 + $0x150] sm:$0xff] %vm436_vm0, %v4512_v49 }
  0xdf   : > { %944 = vrot.lane.b32.xlu0 %v874_v1, %s3725_s26 }
  0xe0   : > { %1233 = vrot.lane.b32.xlu1 %v4250_v33, %s3726_s13  ;;  %v4522_v33 = vld [vmem:[#allocation2 + $0x110] sm:$0xff] }
  0xe3   : > { %1907 = vrot.lane.b32.xlu0 %v4196_v9, %s3726_s13 }
  0xe4   : > { %678 = vrot.lane.b32.xlu1 %v4062_v19, %s3724_s24  ;;  %v2030_v19 = vrot.slane %v4522_v33, 1 }
  0xe6   : > { %v2032_v31 = vsel %vm797_vm2, %v2030_v19, %v2031_v12  ;;  %v349_v12 = vmul.f32 %v3984_v2, %v311_v42 }
  0xe7   : > { %1450 = vrot.lane.b32.xlu0 %v4176_v0, %s3724_s24  ;;  %2111 = vst.msk [vmem:[#allocation3 + $0x2e0] sm:$0xff] %vm436_vm0, %v2032_v31 }
  0xe8   : > { %1739 = vrot.lane.b32.xlu1 %v4253_v34, %s3725_s26 }
  0xeb   : > { %1492 = vrot.lane.b32.xlu0 %v4232_v27, %s3724_s24 }
  0xec   : > { %904 = vrot.lane.b32.xlu1 %v4087_v35, %s3725_s26  ;;  %v417_v35 = vmax.f32 %v385_v13, 0.0  ;;  %v387_v13 = vadd.f32 %v3986_v3, %v349_v12 }
  0xee   : > { %456 = vst.msk [vmem:[#allocation2 + $0x78] sm:$0xff] %vm436_vm0, %v417_v35 }
  0xef   : > { %720 = vrot.lane.b32.xlu0 %v4100_v40, %s3724_s24  ;;  %v2000_v40 = vrot.slane %v4502_v36, 1 }
  0xf0   : > { %1867 = vrot.lane.b32.xlu1 %v4213_v18, %s3726_s13 }
  0xf3   : > { %1781 = vrot.lane.b32.xlu0 %v4312_v50, %s3725_s26 }
  0xf4   : > { %1193 = vrot.lane.b32.xlu1 %v4154_v55, %s3726_s13  ;;  %v386_v55 = vadd.f32 %v3986_v3, %v348_v11  ;;  %v1643_v11 = vrot.slane %v4349_v14, 7 }
  0xf5   : > { %v4554_v43 = vld [vmem:[#allocation2 + $0x78] sm:$0xff] }
  0xf6   : > { %1325 = vst.msk [vmem:[#allocation3 + $0x140] sm:$0xff] %vm436_vm0, %v4554_v43  ;;  %v418_v38 = vmax.f32 %v386_v55, 0.0 }
  0xf7   : > { %946 = vrot.lane.b32.xlu0 %v4356_v16, %s3725_s26 }
  0xf8   : > { %1235 = vrot.lane.b32.xlu1 %v4192_v6, %s3726_s13  ;;  %v2001_v6 = vrot.slane %v4554_v43, 1  ;;  %457 = vst.msk [vmem:[#allocation2 + $0x80] sm:$0xff] %vm436_vm0, %v418_v38 }
  0xfa   : > { %v4566_v1 = vsel %vm797_vm2, %v2000_v40, %v2001_v6  ;;  %v4569_v19 = vsel %vm797_vm2, %v2001_v6, 0.0  ;;  %v4617_v40 = vld [vmem:[#allocation7] ss:$0 sm:$0xff] }
  0xfb   : > { %1909 = vrot.lane.b32.xlu0 %v4299_v25, %s3726_s13  ;;  %2091 = vst.msk [vmem:[#allocation3 + $0x100] sm:$0xff] %vm436_vm0, %v4566_v1  ;;  %2092 = vst.msk [vmem:[#allocation3 + $0x118] sm:$0xff] %vm436_vm0, %v4569_v19 }
  0xfc   : > { %680 = vrot.lane.b32.xlu1 %v4098_v39, %s3724_s24 }
  0xff   : > { %1452 = vrot.lane.b32.xlu0 %v4259_v44, %s3724_s24  ;;  %v4589_v15 = vld [vmem:[#allocation2 + $0x80] sm:$0xff] }
 0x100   : > { %1741 = vrot.lane.b32.xlu1 %v4339_v5, %s3725_s26  ;;  %v1651_v30 = vrot.slane %v4589_v15, 7  ;;  %1326 = vst.msk [vmem:[#allocation3 + $0x158] sm:$0xff] %vm436_vm0, %v4589_v15  ;;  %v2003_v38 = vrot.slane %v4589_v15, 1 }
 0x102   : > { %v671_v16 = vpop.permute.xlu1 %670  ;;  %v4601_v2 = vsel %vm539_vm1, 0.0, %v1651_v30 }
 0x103   : > { %v669_v59 = vpop.permute.xlu0 %668  ;;  %766 = vst.msk [vmem:[#allocation3 + $0x18] sm:$0xff] %vm764_vm3, %v671_v16  ;;  %1494 = vrot.lane.b32.xlu0 %v4235_v28, %s3724_s24  ;;  %v4627_v16 = vld [vmem:[#allocation9] ss:$0 sm:$0xff] }
 0x104   : > { %765 = vst.msk [vmem:[#allocation3] sm:$0xff] %vm764_vm3, %v669_v59  ;;  %906 = vrot.lane.b32.xlu1 %v4173_v63, %s3725_s26  ;;  %v419_v63 = vmax.f32 %v387_v13, 0.0 }
 0x105   : > { %652 = vst.msk [vmem:[#allocation3 + $0x180] sm:$0xff] %vm436_vm0, %v4601_v2 }
 0x106   : > { %v895_v39 = vpop.permute.xlu1 %894  ;;  %458 = vst.msk [vmem:[#allocation2 + $0x88] sm:$0xff] %vm436_vm0, %v419_v63 }
 0x107   : > { %991 = vst.msk [vmem:[#allocation3] sm:$0xff] %vm990_vm4, %v895_v39  ;;  %722 = vrot.lane.b32.xlu0 %v4102_v41, %s3724_s24  ;;  %v312_v41 = vld [vmem:[%s3964_s15 + $0x80] sm:$0xff] }
 0x108   : > { %1869 = vrot.lane.b32.xlu1 %v4323_v21, %s3726_s13  ;;  %v350_v55 = vmul.f32 %v4617_v40, %v312_v41 }
 0x109   : > { %v1858_v3 = vpop.permute.xlu0 %1857 }
 0x10a   : > { %v897_v31 = vpop.permute.xlu1 %896 }
 0x10b   : > { %992 = vst.msk [vmem:[#allocation3 + $0x18] sm:$0xff] %vm990_vm4, %v897_v31  ;;  %1783 = vrot.lane.b32.xlu0 %v4359_v17, %s3725_s26 }
 0x10c   : > { %1195 = vrot.lane.b32.xlu1 %v4218_v23, %s3726_s13 }
 0x10d   : > { %v1860_v54 = vpop.permute.xlu0 %1859  ;;  %v4622_v6 = vld [vmem:[#allocation2 + $0x88] sm:$0xff] }
 0x10e   : > { %v673_v35 = vpop.permute.xlu1 %672  ;;  %1327 = vst.msk [vmem:[#allocation3 + $0x170] sm:$0xff] %vm436_vm0, %v4622_v6  ;;  %v2004_v39 = vrot.slane %v4622_v6, 1 }
 0x10f   : > { %767 = vst.msk [vmem:[#allocation3 + $0x30] sm:$0xff] %vm764_vm3, %v673_v35  ;;  %948 = vrot.lane.b32.xlu0 %v4479_v48, %s3725_s26  ;;  %v4636_v48 = vsel %vm539_vm1, %v1642_v61, %v1643_v11 }
 0x110   : > { %1237 = vrot.lane.b32.xlu1 %v4221_v24, %s3726_s13  ;;  %v388_v24 = vadd.f32 %v4627_v16, %v350_v55  ;;  %v4648_v61 = vsel %vm797_vm2, %v2004_v39, 0.0  ;;  %647 = vst.msk [vmem:[#allocation3 + $0x108] sm:$0xff] %vm436_vm0, %v4636_v48 }
 0x111   : > { %v1441_v59 = vpop.permute.xlu0 %1440  ;;  %2094 = vst.msk [vmem:[#allocation3 + $0x148] sm:$0xff] %vm436_vm0, %v4648_v61 }
 0x112   : > { %v1730_v23 = vpop.permute.xlu1 %1729  ;;  %1536 = vst.msk [vmem:[#allocation3 + $0x8] sm:$0xff] %vm764_vm3, %v1441_v59  ;;  %v420_v42 = vmax.f32 %v388_v24, 0.0 }
 0x113   : > { %1825 = vst.msk [vmem:[#allocation3 + $0x8] sm:$0xff] %vm990_vm4, %v1730_v23  ;;  %1911 = vrot.lane.b32.xlu0 %v4333_v4, %s3726_s13 }
 0x114   : > { %682 = vrot.lane.b32.xlu1 %v4125_v45, %s3724_s24  ;;  %1953 = vst.msk [vmem:[#allocation3 + $0x8] sm:$0xff] %vm1279_vm5, %v1858_v3  ;;  %v4645_v45 = vsel %vm797_vm2, %v2003_v38, %v2004_v39  ;;  %v313_v3 = vld [vmem:[%s3964_s15 + $0x88] sm:$0xff] }
 0x115   : > { %459 = vst.msk [vmem:[#allocation2 + $0x90] sm:$0xff] %vm436_vm0, %v420_v42  ;;  %v1443_v31 = vpop.permute.xlu0 %1442  ;;  %2093 = vst.msk [vmem:[#allocation3 + $0x130] sm:$0xff] %vm436_vm0, %v4645_v45  ;;  %v351_v35 = vmul.f32 %v4617_v40, %v313_v3 }
 0x116   : > { %v1184_v12 = vpop.permute.xlu1 %1183  ;;  %1537 = vst.msk [vmem:[#allocation3 + $0x20] sm:$0xff] %vm764_vm3, %v1443_v31 }
 0x117   : > { %1280 = vst.msk [vmem:[#allocation3] sm:$0xff] %vm1279_vm5, %v1184_v12  ;;  %1454 = vrot.lane.b32.xlu0 %v4262_v46, %s3724_s24  ;;  %v389_v24 = vadd.f32 %v4627_v16, %v351_v35  ;;  %v314_v35 = vld [vmem:[%s3964_s15 + $0x90] sm:$0xff] }
 0x118   : > { %1743 = vrot.lane.b32.xlu1 %v4636_v48, %s3725_s26 }
 0x119   : > { %v1732_v63 = vpop.permute.xlu0 %1731  ;;  %v421_v39 = vmax.f32 %v389_v24, 0.0 }
 0x11a   : > { %v1186_v13 = vpop.permute.xlu1 %1185  ;;  %1826 = vst.msk [vmem:[#allocation3 + $0x20] sm:$0xff] %vm990_vm4, %v1732_v63 }
 0x11b   : > { %1281 = vst.msk [vmem:[#allocation3 + $0x18] sm:$0xff] %vm1279_vm5, %v1186_v13  ;;  %1954 = vst.msk [vmem:[#allocation3 + $0x20] sm:$0xff] %vm1279_vm5, %v1860_v54  ;;  %1496 = vrot.lane.b32.xlu0 %v4362_v20, %s3724_s24  ;;  %v2114_v41 = vld [vmem:[#allocation3 + $0x8] sm:$0xff] }
 0x11c   : > { %908 = vrot.lane.b32.xlu1 %v4176_v0, %s3725_s26  ;;  %v4669_v23 = vld [vmem:[#allocation2 + $0x90] sm:$0xff]  ;;  %2405 = vmatprep.mubr.f32.mxu0 %v2114_v41  ;;  %v1675_v0 = vrot.slane %v4367_v26, 7  ;;  %460 = vst.msk [vmem:[#allocation2 + $0x98] sm:$0xff] %vm436_vm0, %v421_v39 }
 0x11d   : > { %v1654_v38 = vrot.slane %v4669_v23, 7  ;;  %1328 = vst.msk [vmem:[#allocation3 + $0x188] sm:$0xff] %vm436_vm0, %v4669_v23  ;;  %v1445_v54 = vpop.permute.xlu0 %1444 }
 0x11e   : > { %v899_v11 = vpop.permute.xlu1 %898  ;;  %v2113_v55 = vld [vmem:[#allocation3] sm:$0xff]  ;;  %1538 = vst.msk [vmem:[#allocation3 + $0x38] sm:$0xff] %vm764_vm3, %v1445_v54  ;;  %v4692_v12 = vsel %vm539_vm1, 0.0, %v1675_v0 }
 0x11f   : > { %993 = vst.msk [vmem:[#allocation3 + $0x30] sm:$0xff] %vm990_vm4, %v899_v11  ;;  %2406 = vmatmul.mubr.f32.vlgmr.msra.gmra.mrb[0].mxu0 %v2113_v55  ;;  %v4683_v59 = vsel %vm539_vm1, 0.0, %v1654_v38  ;;  %724 = vrot.lane.b32.xlu0 %v4148_v53, %s3724_s24  ;;  %v2006_v55 = vrot.slane %v4669_v23, 1 }
 0x120   : > { %1871 = vrot.lane.b32.xlu1 %v4349_v14, %s3726_s13  ;;  %654 = vst.msk [vmem:[#allocation3 + $0x1b0] sm:$0xff] %vm436_vm0, %v4683_v59 }
 0x121   : > { %v1734_v31 = vpop.permute.xlu0 %1733 }
 0x122   : > { %v1188_v42 = vpop.permute.xlu1 %1187  ;;  %v2116_v13 = vld [vmem:[#allocation3 + $0x18] sm:$0xff]  ;;  %1827 = vst.msk [vmem:[#allocation3 + $0x38] sm:$0xff] %vm990_vm4, %v1734_v31  ;;  %v2117_v53 = vld [vmem:[#allocation3 + $0x20] sm:$0xff] }
 0x123   : > { %1282 = vst.msk [vmem:[#allocation3 + $0x30] sm:$0xff] %vm1279_vm5, %v1188_v42  ;;  %1785 = vrot.lane.b32.xlu0 %v4692_v12, %s3725_s26  ;;  %2410 = vmatprep.mubr.f32.mxu0 %v2117_v53  ;;  %v4709_v11 = vld [vmem:[#allocation2 + $0x98] sm:$0xff] }
 0x124   : > { %1197 = vrot.lane.b32.xlu1 %v4253_v34, %s3726_s13  ;;  %2411 = vmatmul.mubr.f32.gmra.mrb[2].mxu0 %v2116_v13  ;;  %v352_v34 = vmul.f32 %v4617_v40, %v314_v35  ;;  %1329 = vst.msk [vmem:[#allocation3 + $0x1a0] sm:$0xff] %vm436_vm0, %v4709_v11  ;;  %v315_v35 = vld [vmem:[%s3964_s15 + $0x98] sm:$0xff] }
 0x125   : > { %v1862_v3 = vpop.permute.xlu0 %1861 }
 0x126   : > { %v675_v63 = vpop.permute.xlu1 %674  ;;  %1955 = vst.msk [vmem:[#allocation3 + $0x38] sm:$0xff] %vm1279_vm5, %v1862_v3  ;;  %v390_v24 = vadd.f32 %v4627_v16, %v352_v34  ;;  %v353_v34 = vmul.f32 %v4617_v40, %v315_v35 }
 0x127   : > { %768 = vst.msk [vmem:[#allocation3 + $0x48] sm:$0xff] %vm764_vm3, %v675_v63  ;;  %950 = vrot.lane.b32.xlu0 %v4232_v27, %s3725_s26 }
 0x128   : > { %1239 = vrot.lane.b32.xlu1 %v4312_v50, %s3726_s13  ;;  %v2007_v50 = vrot.slane %v4709_v11, 1  ;;  %v422_v39 = vmax.f32 %v390_v24, 0.0  ;;  %v1676_v24 = vrot.slane %v4383_v37, 7 }
 0x129   : > { %v1447_v54 = vpop.permute.xlu0 %1446 }
 0x12a   : > { %v1736_v41 = vpop.permute.xlu1 %1735  ;;  %1539 = vst.msk [vmem:[#allocation3 + $0x50] sm:$0xff] %vm764_vm3, %v1447_v54  ;;  %v2119_v42 = vld [vmem:[#allocation3 + $0x30] sm:$0xff]  ;;  %v4724_v31 = vsel %vm797_vm2, %v2006_v55, %v2007_v50 }
 0x12b   : > { %1913 = vrot.lane.b32.xlu0 %v4367_v26, %s3726_s13  ;;  %1828 = vst.msk [vmem:[#allocation3 + $0x50] sm:$0xff] %vm990_vm4, %v1736_v41 }
 0x12c   : > { %684 = vrot.lane.b32.xlu1 %v4158_v58, %s3724_s24  ;;  %v4727_v58 = vsel %vm797_vm2, %v2007_v50, 0.0  ;;  %461 = vst.msk [vmem:[#allocation2 + $0xa0] sm:$0xff] %vm436_vm0, %v422_v39  ;;  %2095 = vst.msk [vmem:[#allocation3 + $0x160] sm:$0xff] %vm436_vm0, %v4724_v31  ;;  %v391_v50 = vadd.f32 %v4627_v16, %v353_v34 }
 0x12d   : > { %v1489_v13 = vpop.permute.xlu0 %1488  ;;  %v2120_v53 = vld [vmem:[#allocation3 + $0x38] sm:$0xff]  ;;  %2096 = vst.msk [vmem:[#allocation3 + $0x178] sm:$0xff] %vm436_vm0, %v4727_v58 }
 0x12e   : > { %v901_v27 = vpop.permute.xlu1 %900  ;;  %1560 = vst.msk [vmem:[#allocation3 + $0x248] sm:$0xff] %vm764_vm3, %v1489_v13  ;;  %2415 = vmatprep.mubr.f32.mxu0 %v2120_v53  ;;  %v4768_v53 = vsel %vm539_vm1, %v1675_v0, %v1676_v24  ;;  %v316_v0 = vld [vmem:[%s3964_s15 + $0xa0] sm:$0xff] }
 0x12f   : > { %994 = vst.msk [vmem:[#allocation3 + $0x48] sm:$0xff] %vm990_vm4, %v901_v27  ;;  %1456 = vrot.lane.b32.xlu0 %v4399_v56, %s3724_s24  ;;  %2416 = vmatmul.mubr.f32.gmra.mrb[4].mxu0 %v2119_v42  ;;  %v423_v27 = vmax.f32 %v391_v50, 0.0  ;;  %v354_v35 = vmul.f32 %v4617_v40, %v316_v0  ;;  %v317_v0 = vld [vmem:[%s3964_s15 + $0xa8] sm:$0xff] }
 0x130   : > { %1745 = vrot.lane.b32.xlu1 %v4407_v60, %s3725_s26 }
 0x131   : > { %v717_v3 = vpop.permute.xlu0 %716  ;;  %462 = vst.msk [vmem:[#allocation2 + $0xa8] sm:$0xff] %vm436_vm0, %v423_v27 }
 0x132   : > { %v1864_v63 = vpop.permute.xlu1 %1863  ;;  %789 = vst.msk [vmem:[#allocation3 + $0x240] sm:$0xff] %vm764_vm3, %v717_v3 }
 0x133   : > { %1956 = vst.msk [vmem:[#allocation3 + $0x50] sm:$0xff] %vm1279_vm5, %v1864_v63  ;;  %1498 = vrot.lane.b32.xlu0 %v4365_v22, %s3724_s24  ;;  %v4747_v55 = vld [vmem:[#allocation2 + $0xa0] sm:$0xff] }
 0x134   : > { %910 = vrot.lane.b32.xlu1 %v4259_v44, %s3725_s26  ;;  %v1657_v54 = vrot.slane %v4747_v55, 7  ;;  %1330 = vst.msk [vmem:[#allocation3 + $0x1b8] sm:$0xff] %vm436_vm0, %v4747_v55  ;;  %v2009_v24 = vrot.slane %v4747_v55, 1 }
 0x135   : > { %v1778_v44 = vpop.permute.xlu0 %1777 }
 0x136   : > { %v1190_v41 = vpop.permute.xlu1 %1189  ;;  %1849 = vst.msk [vmem:[#allocation3 + $0x248] sm:$0xff] %vm990_vm4, %v1778_v44  ;;  %v4759_v39 = vsel %vm539_vm1, 0.0, %v1657_v54 }
 0x137   : > { %1283 = vst.msk [vmem:[#allocation3 + $0x48] sm:$0xff] %vm1279_vm5, %v1190_v41  ;;  %726 = vrot.lane.b32.xlu0 %v4196_v9, %s3724_s24 }
 0x138   : > { %1873 = vrot.lane.b32.xlu1 %v4371_v29, %s3726_s13  ;;  %656 = vst.msk [vmem:[#allocation3 + $0x1e0] sm:$0xff] %vm436_vm0, %v4759_v39  ;;  %v4786_v41 = vld [vmem:[#allocation2 + $0xa8] sm:$0xff] }
 0x139   : > { %v943_v63 = vpop.permute.xlu0 %942  ;;  %v1658_v50 = vrot.slane %v4786_v41, 7  ;;  %1331 = vst.msk [vmem:[#allocation3 + $0x1d0] sm:$0xff] %vm436_vm0, %v4786_v41 }
 0x13a   : > { %v1232_v42 = vpop.permute.xlu1 %1231  ;;  %v2123_v13 = vld [vmem:[#allocation3 + $0x50] sm:$0xff]  ;;  %1015 = vst.msk [vmem:[#allocation3 + $0x240] sm:$0xff] %vm990_vm4, %v943_v63 }
 0x13b   : > { %2420 = vmatprep.mubr.f32.mxu0 %v2123_v13  ;;  %1787 = vrot.lane.b32.xlu0 %v4768_v53, %s3725_s26  ;;  %1304 = vst.msk [vmem:[#allocation3 + $0x240] sm:$0xff] %vm1279_vm5, %v1232_v42  ;;  %v4802_v27 = vsel %vm539_vm1, %v1657_v54, %v1658_v50  ;;  %v2010_v42 = vrot.slane %v4786_v41, 1 }
 0x13c   : > { %1199 = vrot.lane.b32.xlu1 %v4339_v5, %s3726_s13  ;;  %v1646_v5 = vrot.slane %v4452_v7, 7  ;;  %657 = vst.msk [vmem:[#allocation3 + $0x1f8] sm:$0xff] %vm436_vm0, %v4802_v27 }
 0x13d   : > { %v1906_v26 = vpop.permute.xlu0 %1905  ;;  %v4815_v54 = vsel %vm797_vm2, %v2010_v42, 0.0 }
 0x13e   : > { %v677_v9 = vpop.permute.xlu1 %676  ;;  %v2122_v3 = vld [vmem:[#allocation3 + $0x48] sm:$0xff]  ;;  %1977 = vst.msk [vmem:[#allocation3 + $0x248] sm:$0xff] %vm1279_vm5, %v1906_v26 }
 0x13f   : > { %769 = vst.msk [vmem:[#allocation3 + $0x60] sm:$0xff] %vm764_vm3, %v677_v9  ;;  %2421 = vmatmul.mubr.f32.gmra.mrb[6].mxu0 %v2122_v3  ;;  %952 = vrot.lane.b32.xlu0 %v4235_v28, %s3725_s26  ;;  %v4799_v28 = vsel %vm539_vm1, %v1645_v32, %v1646_v5  ;;  %v4812_v32 = vsel %vm797_vm2, %v2009_v24, %v2010_v42  ;;  %v1678_v24 = vrot.slane %v4522_v33, 7 }
 0x140   : > { %1241 = vrot.lane.b32.xlu1 %v4359_v17, %s3726_s13  ;;  %v392_v17 = vadd.f32 %v4627_v16, %v354_v35  ;;  %2097 = vst.msk [vmem:[#allocation3 + $0x190] sm:$0xff] %vm436_vm0, %v4812_v32  ;;  %2098 = vst.msk [vmem:[#allocation3 + $0x1a8] sm:$0xff] %vm436_vm0, %v4815_v54  ;;  %v355_v5 = vmul.f32 %v4617_v40, %v317_v0 }
 0x141   : > { %v1449_v44 = vpop.permute.xlu0 %1448  ;;  %649 = vst.msk [vmem:[#allocation3 + $0x138] sm:$0xff] %vm436_vm0, %v4799_v28 }
 0x142   : > { %v1738_v34 = vpop.permute.xlu1 %1737  ;;  %1540 = vst.msk [vmem:[#allocation3 + $0x68] sm:$0xff] %vm764_vm3, %v1449_v44  ;;  %v424_v13 = vmax.f32 %v392_v17, 0.0  ;;  %v393_v17 = vadd.f32 %v4627_v16, %v355_v5  ;;  %v1712_v16 = vsel %vm539_vm1, 0.0, %v1678_v24 }
 0x143   : > { %1915 = vrot.lane.b32.xlu0 %v4383_v37, %s3726_s13  ;;  %1829 = vst.msk [vmem:[#allocation3 + $0x68] sm:$0xff] %vm990_vm4, %v1738_v34 }
 0x144   : > { %686 = vrot.lane.b32.xlu1 %v4213_v18, %s3724_s24  ;;  %v2185_v18 = vld [vmem:[#allocation3 + $0x240] sm:$0xff]  ;;  %463 = vst.msk [vmem:[#allocation2 + $0xb0] sm:$0xff] %vm436_vm0, %v424_v13  ;;  %v425_v40 = vmax.f32 %v393_v17, 0.0 }
 0x145   : > { %v1491_v9 = vpop.permute.xlu0 %1490  ;;  %v2186_v37 = vld [vmem:[#allocation3 + $0x248] sm:$0xff] }
 0x146   : > { %v903_v63 = vpop.permute.xlu1 %902  ;;  %1561 = vst.msk [vmem:[#allocation3 + $0x260] sm:$0xff] %vm764_vm3, %v1491_v9  ;;  %2525 = vmatprep.mubr.f32.mxu1 %v2186_v37 }
 0x147   : > { %995 = vst.msk [vmem:[#allocation3 + $0x60] sm:$0xff] %vm990_vm4, %v903_v63  ;;  %1458 = vrot.lane.b32.xlu0 %v4402_v57, %s3724_s24  ;;  %2526 = vmatmul.mubr.f32.vlgmr.msra.gmra.mrb[0].mxu1 %v2185_v18 }
 0x148   : > { %1747 = vrot.lane.b32.xlu1 %v4799_v28, %s3725_s26  ;;  %464 = vst.msk [vmem:[#allocation2 + $0xb8] sm:$0xff] %vm436_vm0, %v425_v40 }
 0x149   : > { %v719_v26 = vpop.permute.xlu0 %718 }
 0x14a   : > { %v1866_v3 = vpop.permute.xlu1 %1865  ;;  %790 = vst.msk [vmem:[#allocation3 + $0x258] sm:$0xff] %vm764_vm3, %v719_v26 }
 0x14b   : > { %1957 = vst.msk [vmem:[#allocation3 + $0x68] sm:$0xff] %vm1279_vm5, %v1866_v3  ;;  %1500 = vrot.lane.b32.xlu0 %v4414_v8, %s3724_s24  ;;  %v4835_v34 = vld [vmem:[#allocation2 + $0xb0] sm:$0xff] }
 0x14c   : > { %912 = vrot.lane.b32.xlu1 %v4262_v46, %s3725_s26  ;;  %v1660_v50 = vrot.slane %v4835_v34, 7  ;;  %1332 = vst.msk [vmem:[#allocation3 + $0x1e8] sm:$0xff] %vm436_vm0, %v4835_v34  ;;  %v2012_v3 = vrot.slane %v4835_v34, 1 }
 0x14d   : > { %v1780_v46 = vpop.permute.xlu0 %1779 }
 0x14e   : > { %v1192_v35 = vpop.permute.xlu1 %1191  ;;  %1850 = vst.msk [vmem:[#allocation3 + $0x260] sm:$0xff] %vm990_vm4, %v1780_v46  ;;  %v4847_v8 = vsel %vm539_vm1, 0.0, %v1660_v50 }
 0x14f   : > { %1284 = vst.msk [vmem:[#allocation3 + $0x60] sm:$0xff] %vm1279_vm5, %v1192_v35  ;;  %728 = vrot.lane.b32.xlu0 %v4299_v25, %s3724_s24  ;;  %v4868_v37 = vld [vmem:[#allocation2 + $0xb8] sm:$0xff] }
 0x150   : > { %1875 = vrot.lane.b32.xlu1 %v4452_v7, %s3726_s13  ;;  %658 = vst.msk [vmem:[#allocation3 + $0x210] sm:$0xff] %vm436_vm0, %v4847_v8  ;;  %v1661_v26 = vrot.slane %v4868_v37, 7  ;;  %1333 = vst.msk [vmem:[#allocation3 + $0x200] sm:$0xff] %vm436_vm0, %v4868_v37 }
 0x151   : > { %v945_v13 = vpop.permute.xlu0 %944 }
 0x152   : > { %v1234_v44 = vpop.permute.xlu1 %1233  ;;  %v2126_v42 = vld [vmem:[#allocation3 + $0x68] sm:$0xff]  ;;  %1016 = vst.msk [vmem:[#allocation3 + $0x258] sm:$0xff] %vm990_vm4, %v945_v13  ;;  %v1679_v13 = vrot.slane %v4527_v62, 7 }
 0x153   : > { %2425 = vmatprep.mubr.f32.mxu0 %v2126_v42  ;;  %1789 = vrot.lane.b32.xlu0 %v1712_v16, %s3725_s26  ;;  %1305 = vst.msk [vmem:[#allocation3 + $0x258] sm:$0xff] %vm1279_vm5, %v1234_v44  ;;  %v4908_v16 = vld [vmem:[#allocation2 + $0xc0] sm:$0xff] }
 0x154   : > { %1201 = vrot.lane.b32.xlu1 %v4636_v48, %s3726_s13  ;;  %1334 = vst.msk [vmem:[#allocation3 + $0x218] sm:$0xff] %vm436_vm0, %v4908_v16 }
 0x155   : > { %v1908_v18 = vpop.permute.xlu0 %1907 }
 0x156   : > { %v679_v25 = vpop.permute.xlu1 %678  ;;  %v2125_v63 = vld [vmem:[#allocation3 + $0x60] sm:$0xff]  ;;  %1978 = vst.msk [vmem:[#allocation3 + $0x260] sm:$0xff] %vm1279_vm5, %v1908_v18 }
 0x157   : > { %770 = vst.msk [vmem:[#allocation3 + $0x78] sm:$0xff] %vm764_vm3, %v679_v25  ;;  %2426 = vmatmul.mubr.f32.gmra.mrb[8].mxu0 %v2125_v63  ;;  %954 = vrot.lane.b32.xlu0 %v4362_v20, %s3725_s26  ;;  %v2013_v20 = vrot.slane %v4868_v37, 1  ;;  %v1680_v63 = vsel %vm539_vm1, %v1678_v24, %v1679_v13  ;;  %v2241_v18 = vld [vmem:[#allocation10 + $0x100] sm:$0xff]  ;;  %v2243_v24 = vld [vmem:[#allocation10 + $0x110] sm:$0xff] }
 0x158   : > { %1243 = vrot.lane.b32.xlu1 %v4692_v12, %s3726_s13  ;;  %v4878_v12 = vsel %vm539_vm1, %v1660_v50, %v1661_v26 }
 0x159   : > { %v1451_v0 = vpop.permute.xlu0 %1450  ;;  %659 = vst.msk [vmem:[#allocation3 + $0x228] sm:$0xff] %vm436_vm0, %v4878_v12  ;;  %v4891_v50 = vsel %vm797_vm2, %v2013_v20, 0.0 }
 0x15a   : > { %v1740_v9 = vpop.permute.xlu1 %1739  ;;  %1541 = vst.msk [vmem:[#allocation3 + $0x80] sm:$0xff] %vm764_vm3, %v1451_v0  ;;  %v2188_v35 = vld [vmem:[#allocation3 + $0x258] sm:$0xff] }
 0x15b   : > { %1917 = vrot.lane.b32.xlu0 %v4522_v33, %s3726_s13  ;;  %1830 = vst.msk [vmem:[#allocation3 + $0x80] sm:$0xff] %vm990_vm4, %v1740_v9  ;;  %v2242_v9 = vld [vmem:[#allocation10 + $0x108] sm:$0xff]  ;;  %v2244_v0 = vld [vmem:[#allocation10 + $0x118] sm:$0xff] }
 0x15c   : > { %688 = vrot.lane.b32.xlu1 %v4323_v21, %s3724_s24  ;;  %v4888_v21 = vsel %vm797_vm2, %v2012_v3, %v2013_v20  ;;  %2100 = vst.msk [vmem:[#allocation3 + $0x1d8] sm:$0xff] %vm436_vm0, %v4891_v50  ;;  %v3361_v26 = vpack.c.bf16 %v2242_v9, %v2241_v18  ;;  %v3365_v20 = vpack.c.bf16 %v2244_v0, %v2243_v24 }
 0x15d   : > { %v1493_v17 = vpop.permute.xlu0 %1492  ;;  %v2189_v46 = vld [vmem:[#allocation3 + $0x260] sm:$0xff]  ;;  %2099 = vst.msk [vmem:[#allocation3 + $0x1c0] sm:$0xff] %vm436_vm0, %v4888_v21 }
 0x15e   : > { %v905_v5 = vpop.permute.xlu1 %904  ;;  %1562 = vst.msk [vmem:[#allocation3 + $0x278] sm:$0xff] %vm764_vm3, %v1493_v17  ;;  %2530 = vmatprep.mubr.f32.mxu1 %v2189_v46  ;;  %3362 = vmatprep.subr.bf16.mxu1 %v3361_v26 }
 0x15f   : > { %996 = vst.msk [vmem:[#allocation3 + $0x78] sm:$0xff] %vm990_vm4, %v905_v5  ;;  %1460 = vrot.lane.b32.xlu0 %v4464_v47, %s3724_s24  ;;  %2531 = vmatmul.mubr.f32.gmra.mrb[2].mxu1 %v2188_v35  ;;  %v4935_v5 = vld [vmem:[#allocation2 + $0xc8] sm:$0xff]  ;;  %v2015_v35 = vrot.slane %v4908_v16, 1 }
 0x160   : > { %1749 = vrot.lane.b32.xlu1 %v4512_v49, %s3725_s26  ;;  %3364 = vmatpush3.bf16.msra.mxu1 %v3361_v26  ;;  %1335 = vst.msk [vmem:[#allocation3 + $0x230] sm:$0xff] %vm436_vm0, %v4935_v5  ;;  %v4995_v26 = vld [vmem:[#allocation2 + $0xd0] sm:$0xff] }
 0x161   : > { %v721_v44 = vpop.permute.xlu0 %720  ;;  %3366 = vmatprep.subr.bf16.mxu1 %v3365_v20 }
 0x162   : > { %v1868_v40 = vpop.permute.xlu1 %1867  ;;  %791 = vst.msk [vmem:[#allocation3 + $0x270] sm:$0xff] %vm764_vm3, %v721_v44 }
 0x163   : > { %1958 = vst.msk [vmem:[#allocation3 + $0x80] sm:$0xff] %vm1279_vm5, %v1868_v40  ;;  %1502 = vrot.lane.b32.xlu0 %v4417_v10, %s3724_s24  ;;  %v1649_v40 = vrot.slane %v4554_v43, 7 }
 0x164   : > { %914 = vrot.lane.b32.xlu1 %v4399_v56, %s3725_s26  ;;  %3368 = vmatpush3.bf16.msra.mxu1 %v3365_v20 }
 0x165   : > { %v1782_v25 = vpop.permute.xlu0 %1781 }
 0x166   : > { %v1194_v42 = vpop.permute.xlu1 %1193  ;;  %1851 = vst.msk [vmem:[#allocation3 + $0x278] sm:$0xff] %vm990_vm4, %v1782_v25  ;;  %v4967_v25 = vsel %vm539_vm1, %v1648_v51, %v1649_v40 }
 0x167   : > { %1285 = vst.msk [vmem:[#allocation3 + $0x78] sm:$0xff] %vm1279_vm5, %v1194_v42  ;;  %730 = vrot.lane.b32.xlu0 %v4333_v4, %s3724_s24 }
 0x168   : > { %1877 = vrot.lane.b32.xlu1 %v4502_v36, %s3726_s13  ;;  %651 = vst.msk [vmem:[#allocation3 + $0x168] sm:$0xff] %vm436_vm0, %v4967_v25 }
 0x169   : > { %v947_v3 = vpop.permute.xlu0 %946 }
 0x16a   : > { %v1236_v56 = vpop.permute.xlu1 %1235  ;;  %v2129_v10 = vld [vmem:[#allocation3 + $0x80] sm:$0xff]  ;;  %1017 = vst.msk [vmem:[#allocation3 + $0x270] sm:$0xff] %vm990_vm4, %v947_v3 }
 0x16b   : > { %2430 = vmatprep.mubr.f32.mxu0 %v2129_v10  ;;  %1791 = vrot.lane.b32.xlu0 %v1680_v63, %s3725_s26  ;;  %1306 = vst.msk [vmem:[#allocation3 + $0x270] sm:$0xff] %vm1279_vm5, %v1236_v56 }
 0x16c   : > { %1203 = vrot.lane.b32.xlu1 %v4407_v60, %s3726_s13 }
 0x16d   : > { %v1910_v60 = vpop.permute.xlu0 %1909 }
 0x16e   : > { %v681_v4 = vpop.permute.xlu1 %680  ;;  %v2128_v33 = vld [vmem:[#allocation3 + $0x78] sm:$0xff]  ;;  %1979 = vst.msk [vmem:[#allocation3 + $0x278] sm:$0xff] %vm1279_vm5, %v1910_v60  ;;  %v1652_v60 = vrot.slane %v4622_v6, 7 }
 0x16f   : > { %771 = vst.msk [vmem:[#allocation3 + $0x90] sm:$0xff] %vm764_vm3, %v681_v4  ;;  %2431 = vmatmul.mubr.f32.gmra.mrb[10].mxu0 %v2128_v33  ;;  %956 = vrot.lane.b32.xlu0 %v4365_v22, %s3725_s26  ;;  %v2018_v4 = vrot.slane %v4995_v26, 1 }
 0x170   : > { %1245 = vrot.lane.b32.xlu1 %v4768_v53, %s3726_s13  ;;  %v2016_v53 = vrot.slane %v4935_v5, 1 }
 0x171   : > { %v1453_v17 = vpop.permute.xlu0 %1452 }
 0x172   : > { %v1742_v48 = vpop.permute.xlu1 %1741  ;;  %1542 = vst.msk [vmem:[#allocation3 + $0x98] sm:$0xff] %vm764_vm3, %v1453_v17  ;;  %v2191_v46 = vld [vmem:[#allocation3 + $0x270] sm:$0xff]  ;;  %v4950_v44 = vsel %vm797_vm2, %v2015_v35, %v2016_v53 }
 0x173   : > { %1919 = vrot.lane.b32.xlu0 %v4527_v62, %s3726_s13  ;;  %1831 = vst.msk [vmem:[#allocation3 + $0x98] sm:$0xff] %vm990_vm4, %v1742_v48 }
 0x174   : > { %690 = vrot.lane.b32.xlu1 %v4349_v14, %s3724_s24  ;;  %v4953_v14 = vsel %vm797_vm2, %v2016_v53, 0.0  ;;  %2101 = vst.msk [vmem:[#allocation3 + $0x1f0] sm:$0xff] %vm436_vm0, %v4950_v44  ;;  %v5021_v53 = vsel %vm539_vm1, %v1651_v30, %v1652_v60 }
 0x175   : > { %v1495_v42 = vpop.permute.xlu0 %1494  ;;  %v2192_v13 = vld [vmem:[#allocation3 + $0x278] sm:$0xff]  ;;  %2102 = vst.msk [vmem:[#allocation3 + $0x208] sm:$0xff] %vm436_vm0, %v4953_v14  ;;  %653 = vst.msk [vmem:[#allocation3 + $0x198] sm:$0xff] %vm436_vm0, %v5021_v53 }
 0x176   : > { %v907_v22 = vpop.permute.xlu1 %906  ;;  %1563 = vst.msk [vmem:[#allocation3 + $0x290] sm:$0xff] %vm764_vm3, %v1495_v42  ;;  %2535 = vmatprep.mubr.f32.mxu1 %v2192_v13 }
 0x177   : > { %997 = vst.msk [vmem:[#allocation3 + $0x90] sm:$0xff] %vm990_vm4, %v907_v22  ;;  %1462 = vrot.lane.b32.xlu0 %v4467_v52, %s3724_s24  ;;  %2536 = vmatmul.mubr.f32.gmra.mrb[4].mxu1 %v2191_v46 }
 0x178   : > { %916 = vrot.lane.b32.xlu1 %v4402_v57, %s3725_s26 }
 0x179   : > { %v723_v57 = vpop.permute.xlu0 %722 }
 0x17a   : > { %v1870_v62 = vpop.permute.xlu1 %1869  ;;  %792 = vst.msk [vmem:[#allocation3 + $0x288] sm:$0xff] %vm764_vm3, %v723_v57 }
 0x17b   : > { %1959 = vst.msk [vmem:[#allocation3 + $0x98] sm:$0xff] %vm1279_vm5, %v1870_v62  ;;  %1751 = vrot.lane.b32.xlu0 %v4967_v25, %s3725_s26 }
 0x17c   : > { %1205 = vrot.lane.b32.xlu1 %v4799_v28, %s3726_s13  ;;  %v5000_v28 = vld [vmem:[#allocation2 + $0xd8] sm:$0xff] }
 0x17d   : > { %v1784_v10 = vpop.permute.xlu0 %1783 }
 0x17e   : > { %v1196_v56 = vpop.permute.xlu1 %1195  ;;  %1852 = vst.msk [vmem:[#allocation3 + $0x290] sm:$0xff] %vm990_vm4, %v1784_v10 }
 0x17f   : > { %1286 = vst.msk [vmem:[#allocation3 + $0x90] sm:$0xff] %vm1279_vm5, %v1196_v56  ;;  %1879 = vrot.lane.b32.xlu0 %v4554_v43, %s3726_s13 }
 0x180   : > { %692 = vrot.lane.b32.xlu1 %v4371_v29, %s3724_s24 }
 0x181   : > { %v949_v18 = vpop.permute.xlu0 %948 }
 0x182   : > { %v1238_v51 = vpop.permute.xlu1 %1237  ;;  %v2132_v63 = vld [vmem:[#allocation3 + $0x98] sm:$0xff]  ;;  %1018 = vst.msk [vmem:[#allocation3 + $0x288] sm:$0xff] %vm990_vm4, %v949_v18 }
 0x183   : > { %2435 = vmatprep.mubr.f32.mxu0 %v2132_v63  ;;  %1464 = vrot.lane.b32.xlu0 %v4566_v1, %s3724_s24  ;;  %1307 = vst.msk [vmem:[#allocation3 + $0x288] sm:$0xff] %vm1279_vm5, %v1238_v51 }
 0x184   : > { %918 = vrot.lane.b32.xlu1 %v4464_v47, %s3725_s26 }
 0x185   : > { %v1912_v3 = vpop.permute.xlu0 %1911 }
 0x186   : > { %v683_v29 = vpop.permute.xlu1 %682  ;;  %v2131_v9 = vld [vmem:[#allocation3 + $0x90] sm:$0xff]  ;;  %1980 = vst.msk [vmem:[#allocation3 + $0x290] sm:$0xff] %vm1279_vm5, %v1912_v3 }
 0x187   : > { %772 = vst.msk [vmem:[#allocation3 + $0xa8] sm:$0xff] %vm764_vm3, %v683_v29  ;;  %2436 = vmatmul.mubr.f32.gmra.mrb[12].mxu0 %v2131_v9  ;;  %1753 = vrot.lane.b32.xlu0 %v4601_v2, %s3725_s26 }
 0x188   : > { %1207 = vrot.lane.b32.xlu1 %v4512_v49, %s3726_s13  ;;  %v2019_v49 = vrot.slane %v5000_v28, 1 }
 0x189   : > { %v1455_v33 = vpop.permute.xlu0 %1454 }
 0x18a   : > { %v1744_v47 = vpop.permute.xlu1 %1743  ;;  %1543 = vst.msk [vmem:[#allocation3 + $0xb0] sm:$0xff] %vm764_vm3, %v1455_v33  ;;  %v2194_v0 = vld [vmem:[#allocation3 + $0x288] sm:$0xff]  ;;  %v2020_v20 = vsel %vm797_vm2, %v2018_v4, %v2019_v49 }
 0x18b   : > { %1881 = vrot.lane.b32.xlu0 %v4589_v15, %s3726_s13  ;;  %1832 = vst.msk [vmem:[#allocation3 + $0xb0] sm:$0xff] %vm990_vm4, %v1744_v47 }
 0x18c   : > { %694 = vrot.lane.b32.xlu1 %v4452_v7, %s3724_s24  ;;  %v2076_v7 = vsel %vm797_vm2, %v2019_v49, 0.0  ;;  %2103 = vst.msk [vmem:[#allocation3 + $0x220] sm:$0xff] %vm436_vm0, %v2020_v20 }
 0x18d   : > { %v1497_v48 = vpop.permute.xlu0 %1496  ;;  %v2195_v35 = vld [vmem:[#allocation3 + $0x290] sm:$0xff]  ;;  %2104 = vst.msk [vmem:[#allocation3 + $0x238] sm:$0xff] %vm436_vm0, %v2076_v7 }
 0x18e   : > { %v909_v24 = vpop.permute.xlu1 %908  ;;  %1564 = vst.msk [vmem:[#allocation3 + $0x2a8] sm:$0xff] %vm764_vm3, %v1497_v48  ;;  %2540 = vmatprep.mubr.f32.mxu1 %v2195_v35 }
 0x18f   : > { %998 = vst.msk [vmem:[#allocation3 + $0xa8] sm:$0xff] %vm990_vm4, %v909_v24  ;;  %1466 = vrot.lane.b32.xlu0 %v4569_v19, %s3724_s24  ;;  %2541 = vmatmul.mubr.f32.gmra.mrb[6].mxu1 %v2194_v0 }
 0x190   : > { %920 = vrot.lane.b32.xlu1 %v4467_v52, %s3725_s26 }
 0x191   : > { %v725_v52 = vpop.permute.xlu0 %724 }
 0x192   : > { %v1872_v17 = vpop.permute.xlu1 %1871  ;;  %793 = vst.msk [vmem:[#allocation3 + $0x2a0] sm:$0xff] %vm764_vm3, %v725_v52 }
 0x193   : > { %1960 = vst.msk [vmem:[#allocation3 + $0xb0] sm:$0xff] %vm1279_vm5, %v1872_v17  ;;  %1755 = vrot.lane.b32.xlu0 %v5021_v53, %s3725_s26 }
 0x194   : > { %1209 = vrot.lane.b32.xlu1 %v4967_v25, %s3726_s13 }
 0x195   : > { %v1786_v46 = vpop.permute.xlu0 %1785 }
 0x196   : > { %v1198_v22 = vpop.permute.xlu1 %1197  ;;  %1853 = vst.msk [vmem:[#allocation3 + $0x2a8] sm:$0xff] %vm990_vm4, %v1786_v46 }
 0x197   : > { %1287 = vst.msk [vmem:[#allocation3 + $0xa8] sm:$0xff] %vm1279_vm5, %v1198_v22  ;;  %1883 = vrot.lane.b32.xlu0 %v4622_v6, %s3726_s13 }
 0x198   : > { %696 = vrot.lane.b32.xlu1 %v4502_v36, %s3724_s24 }
 0x199   : > { %v951_v42 = vpop.permute.xlu0 %950 }
 0x19a   : > { %v1240_v30 = vpop.permute.xlu1 %1239  ;;  %v2135_v40 = vld [vmem:[#allocation3 + $0xb0] sm:$0xff]  ;;  %1019 = vst.msk [vmem:[#allocation3 + $0x2a0] sm:$0xff] %vm990_vm4, %v951_v42 }
 0x19b   : > { %2440 = vmatprep.mubr.f32.mxu0 %v2135_v40  ;;  %1468 = vrot.lane.b32.xlu0 %v4645_v45, %s3724_s24  ;;  %1308 = vst.msk [vmem:[#allocation3 + $0x2a0] sm:$0xff] %vm1279_vm5, %v1240_v30 }
 0x19c   : > { %922 = vrot.lane.b32.xlu1 %v4566_v1, %s3725_s26 }
 0x19d   : > { %v1914_v62 = vpop.permute.xlu0 %1913 }
 0x19e   : > { %v685_v36 = vpop.permute.xlu1 %684  ;;  %v2134_v13 = vld [vmem:[#allocation3 + $0xa8] sm:$0xff]  ;;  %1981 = vst.msk [vmem:[#allocation3 + $0x2a8] sm:$0xff] %vm1279_vm5, %v1914_v62 }
 0x19f   : > { %773 = vst.msk [vmem:[#allocation3 + $0xc0] sm:$0xff] %vm764_vm3, %v685_v36  ;;  %2441 = vmatmul.mubr.f32.gmra.mrb[14].mxu0 %v2134_v13  ;;  %1757 = vrot.lane.b32.xlu0 %v4683_v59, %s3725_s26 }
 0x1a0   : > { %1211 = vrot.lane.b32.xlu1 %v4601_v2, %s3726_s13  ;;  %v1655_v2 = vrot.slane %v4709_v11, 7 }
 0x1a1   : > { %v1457_v57 = vpop.permute.xlu0 %1456 }
 0x1a2   : > { %v1746_v1 = vpop.permute.xlu1 %1745  ;;  %1544 = vst.msk [vmem:[#allocation3 + $0xc8] sm:$0xff] %vm764_vm3, %v1457_v57  ;;  %v2197_v56 = vld [vmem:[#allocation3 + $0x2a0] sm:$0xff]  ;;  %v5065_v63 = vsel %vm539_vm1, %v1654_v38, %v1655_v2 }
 0x1a3   : > { %1885 = vrot.lane.b32.xlu0 %v4669_v23, %s3726_s13  ;;  %1833 = vst.msk [vmem:[#allocation3 + $0xc8] sm:$0xff] %vm990_vm4, %v1746_v1 }
 0x1a4   : > { %698 = vrot.lane.b32.xlu1 %v4554_v43, %s3724_s24  ;;  %655 = vst.msk [vmem:[#allocation3 + $0x1c8] sm:$0xff] %vm436_vm0, %v5065_v63 }
 0x1a5   : > { %v1499_v10 = vpop.permute.xlu0 %1498  ;;  %v2198_v51 = vld [vmem:[#allocation3 + $0x2a8] sm:$0xff] }
 0x1a6   : > { %v911_v25 = vpop.permute.xlu1 %910  ;;  %1565 = vst.msk [vmem:[#allocation3 + $0x2c0] sm:$0xff] %vm764_vm3, %v1499_v10  ;;  %2545 = vmatprep.mubr.f32.mxu1 %v2198_v51 }
 0x1a7   : > { %999 = vst.msk [vmem:[#allocation3 + $0xc0] sm:$0xff] %vm990_vm4, %v911_v25  ;;  %1470 = vrot.lane.b32.xlu0 %v4648_v61, %s3724_s24  ;;  %2546 = vmatmul.mubr.f32.gmra.mrb[8].mxu1 %v2197_v56 }
 0x1a8   : > { %924 = vrot.lane.b32.xlu1 %v4569_v19, %s3725_s26 }
 0x1a9   : > { %v727_v18 = vpop.permute.xlu0 %726 }
 0x1aa   : > { %v1874_v43 = vpop.permute.xlu1 %1873  ;;  %794 = vst.msk [vmem:[#allocation3 + $0x2b8] sm:$0xff] %vm764_vm3, %v727_v18  ;;  %v2118_v18 = vld [vmem:[#allocation3 + $0x28] sm:$0xff] }
 0x1ab   : > { %1961 = vst.msk [vmem:[#allocation3 + $0xc8] sm:$0xff] %vm1279_vm5, %v1874_v43  ;;  %1759 = vrot.lane.b32.xlu0 %v5065_v63, %s3725_s26 }
 0x1ac   : > { %1213 = vrot.lane.b32.xlu1 %v5021_v53, %s3726_s13 }
 0x1ad   : > { %v1788_v29 = vpop.permute.xlu0 %1787 }
 0x1ae   : > { %v1200_v19 = vpop.permute.xlu1 %1199  ;;  %1854 = vst.msk [vmem:[#allocation3 + $0x2c0] sm:$0xff] %vm990_vm4, %v1788_v29 }
 0x1af   : > { %1288 = vst.msk [vmem:[#allocation3 + $0xc0] sm:$0xff] %vm1279_vm5, %v1200_v19  ;;  %1887 = vrot.lane.b32.xlu0 %v4709_v11, %s3726_s13 }
 0x1b0   : > { %700 = vrot.lane.b32.xlu1 %v4589_v15, %s3724_s24 }
 0x1b1   : > { %v953_v3 = vpop.permute.xlu0 %952 }
 0x1b2   : > { %v1242_v38 = vpop.permute.xlu1 %1241  ;;  %v2138_v9 = vld [vmem:[#allocation3 + $0xc8] sm:$0xff]  ;;  %1020 = vst.msk [vmem:[#allocation3 + $0x2b8] sm:$0xff] %vm990_vm4, %v953_v3  ;;  %v2124_v3 = vld [vmem:[#allocation3 + $0x58] sm:$0xff] }
 0x1b3   : > { %2445 = vmatprep.mubr.f32.mxu0 %v2138_v9  ;;  %1472 = vrot.lane.b32.xlu0 %v4724_v31, %s3724_s24  ;;  %1309 = vst.msk [vmem:[#allocation3 + $0x2b8] sm:$0xff] %vm1279_vm5, %v1242_v38  ;;  %v2121_v38 = vld [vmem:[#allocation3 + $0x40] sm:$0xff] }
 0x1b4   : > { %926 = vrot.lane.b32.xlu1 %v4645_v45, %s3725_s26 }
 0x1b5   : > { %v1916_v4 = vpop.permute.xlu0 %1915 }
 0x1b6   : > { %v687_v15 = vpop.permute.xlu1 %686  ;;  %v2137_v47 = vld [vmem:[#allocation3 + $0xc0] sm:$0xff]  ;;  %1982 = vst.msk [vmem:[#allocation3 + $0x2c0] sm:$0xff] %vm1279_vm5, %v1916_v4 }
 0x1b7   : > { %774 = vst.msk [vmem:[#allocation3 + $0xd8] sm:$0xff] %vm764_vm3, %v687_v15  ;;  %2446 = vmatmul.mubr.f32.gmra.mrb[16].mxu0 %v2137_v47  ;;  %1761 = vrot.lane.b32.xlu0 %v4759_v39, %s3725_s26  ;;  %v2127_v47 = vld [vmem:[#allocation3 + $0x70] sm:$0xff] }
 0x1b8   : > { %1215 = vrot.lane.b32.xlu1 %v4683_v59, %s3726_s13 }
 0x1b9   : > { %v1459_v33 = vpop.permute.xlu0 %1458 }
 0x1ba   : > { %v1748_v45 = vpop.permute.xlu1 %1747  ;;  %1545 = vst.msk [vmem:[#allocation3 + $0xe0] sm:$0xff] %vm764_vm3, %v1459_v33  ;;  %v2200_v24 = vld [vmem:[#allocation3 + $0x2b8] sm:$0xff] }
 0x1bb   : > { %1889 = vrot.lane.b32.xlu0 %v4747_v55, %s3726_s13  ;;  %1834 = vst.msk [vmem:[#allocation3 + $0xe0] sm:$0xff] %vm990_vm4, %v1748_v45 }
 0x1bc   : > { %702 = vrot.lane.b32.xlu1 %v4622_v6, %s3724_s24 }
 0x1bd   : > { %v1501_v59 = vpop.permute.xlu0 %1500  ;;  %v2201_v0 = vld [vmem:[#allocation3 + $0x2c0] sm:$0xff] }
 0x1be   : > { %v913_v49 = vpop.permute.xlu1 %912  ;;  %1566 = vst.msk [vmem:[#allocation3 + $0x2d8] sm:$0xff] %vm764_vm3, %v1501_v59  ;;  %2550 = vmatprep.mubr.f32.mxu1 %v2201_v0  ;;  %v2130_v59 = vld [vmem:[#allocation3 + $0x88] sm:$0xff] }
 0x1bf   : > { %1000 = vst.msk [vmem:[#allocation3 + $0xd8] sm:$0xff] %vm990_vm4, %v913_v49  ;;  %1474 = vrot.lane.b32.xlu0 %v4727_v58, %s3724_s24  ;;  %2551 = vmatmul.mubr.f32.gmra.mrb[10].mxu1 %v2200_v24  ;;  %v1666_v49 = vrot.slane %v4995_v26, 7 }
 0x1c0   : > { %928 = vrot.lane.b32.xlu1 %v4648_v61, %s3725_s26 }
 0x1c1   : > { %v729_v60 = vpop.permute.xlu0 %728 }
 0x1c2   : > { %v1876_v6 = vpop.permute.xlu1 %1875  ;;  %795 = vst.msk [vmem:[#allocation3 + $0x2d0] sm:$0xff] %vm764_vm3, %v729_v60 }
 0x1c3   : > { %1962 = vst.msk [vmem:[#allocation3 + $0xe0] sm:$0xff] %vm1279_vm5, %v1876_v6  ;;  %1763 = vrot.lane.b32.xlu0 %v4802_v27, %s3725_s26  ;;  %v1708_v6 = vsel %vm539_vm1, 0.0, %v1666_v49 }
 0x1c4   : > { %1217 = vrot.lane.b32.xlu1 %v5065_v63, %s3726_s13  ;;  %v2115_v63 = vld [vmem:[#allocation3 + $0x10] sm:$0xff] }
 0x1c5   : > { %v1790_v20 = vpop.permute.xlu0 %1789 }
 0x1c6   : > { %v1202_v61 = vpop.permute.xlu1 %1201  ;;  %1855 = vst.msk [vmem:[#allocation3 + $0x2d8] sm:$0xff] %vm990_vm4, %v1790_v20 }
 0x1c7   : > { %1289 = vst.msk [vmem:[#allocation3 + $0xd8] sm:$0xff] %vm1279_vm5, %v1202_v61  ;;  %1891 = vrot.lane.b32.xlu0 %v4786_v41, %s3726_s13  ;;  %v2136_v61 = vld [vmem:[#allocation3 + $0xb8] sm:$0xff] }
 0x1c8   : > { %704 = vrot.lane.b32.xlu1 %v4669_v23, %s3724_s24 }
 0x1c9   : > { %v955_v35 = vpop.permute.xlu0 %954 }
 0x1ca   : > { %v1244_v7 = vpop.permute.xlu1 %1243  ;;  %v2141_v48 = vld [vmem:[#allocation3 + $0xe0] sm:$0xff]  ;;  %1021 = vst.msk [vmem:[#allocation3 + $0x2d0] sm:$0xff] %vm990_vm4, %v955_v35 }
 0x1cb   : > { %2450 = vmatprep.mubr.f32.mxu0 %v2141_v48  ;;  %1476 = vrot.lane.b32.xlu0 %v4812_v32, %s3724_s24  ;;  %1310 = vst.msk [vmem:[#allocation3 + $0x2d0] sm:$0xff] %vm1279_vm5, %v1244_v7  ;;  %v2142_v7 = vld [vmem:[#allocation3 + $0xe8] sm:$0xff]  ;;  %v2145_v35 = vld [vmem:[#allocation3 + $0x100] sm:$0xff] }
 0x1cc   : > { %930 = vrot.lane.b32.xlu1 %v4724_v31, %s3725_s26 }
 0x1cd   : > { %v1918_v53 = vpop.permute.xlu0 %1917 }
 0x1ce   : > { %v689_v23 = vpop.permute.xlu1 %688  ;;  %v2140_v17 = vld [vmem:[#allocation3 + $0xd8] sm:$0xff]  ;;  %1983 = vst.msk [vmem:[#allocation3 + $0x2d8] sm:$0xff] %vm1279_vm5, %v1918_v53 }
 0x1cf   : > { %775 = vst.msk [vmem:[#allocation3 + $0xf0] sm:$0xff] %vm764_vm3, %v689_v23  ;;  %2451 = vmatmul.mubr.f32.gmra.mrb[18].mxu0 %v2140_v17  ;;  %1765 = vrot.lane.b32.xlu0 %v4847_v8, %s3725_s26 }
 0x1d0   : > { %1219 = vrot.lane.b32.xlu1 %v4759_v39, %s3726_s13 }
 0x1d1   : > { %v1461_v52 = vpop.permute.xlu0 %1460 }
 0x1d2   : > { %v1750_v31 = vpop.permute.xlu1 %1749  ;;  %1546 = vst.msk [vmem:[#allocation3 + $0xf8] sm:$0xff] %vm764_vm3, %v1461_v52  ;;  %v2203_v46 = vld [vmem:[#allocation3 + $0x2d0] sm:$0xff] }
 0x1d3   : > { %1893 = vrot.lane.b32.xlu0 %v4835_v34, %s3726_s13  ;;  %1835 = vst.msk [vmem:[#allocation3 + $0xf8] sm:$0xff] %vm990_vm4, %v1750_v31  ;;  %v1667_v31 = vrot.slane %v5000_v28, 7 }
 0x1d4   : > { %706 = vrot.lane.b32.xlu1 %v4709_v11, %s3724_s24 }
 0x1d5   : > { %v1503_v39 = vpop.permute.xlu0 %1502  ;;  %v2204_v30 = vld [vmem:[#allocation3 + $0x2d8] sm:$0xff] }
 0x1d6   : > { %v915_v22 = vpop.permute.xlu1 %914  ;;  %1567 = vst.msk [vmem:[#allocation3 + $0x2f0] sm:$0xff] %vm764_vm3, %v1503_v39  ;;  %2555 = vmatprep.mubr.f32.mxu1 %v2204_v30  ;;  %v1668_v39 = vsel %vm539_vm1, %v1666_v49, %v1667_v31  ;;  %v2196_v49 = vld [vmem:[#allocation3 + $0x298] sm:$0xff] }
 0x1d7   : > { %1001 = vst.msk [vmem:[#allocation3 + $0xf0] sm:$0xff] %vm990_vm4, %v915_v22  ;;  %1478 = vrot.lane.b32.xlu0 %v4815_v54, %s3724_s24  ;;  %2556 = vmatmul.mubr.f32.gmra.mrb[12].mxu1 %v2203_v46  ;;  %v2148_v22 = vld [vmem:[#allocation3 + $0x118] sm:$0xff] }
 0x1d8   : > { %932 = vrot.lane.b32.xlu1 %v4727_v58, %s3725_s26 }
 0x1d9   : > { %v731_v40 = vpop.permute.xlu0 %730 }
 0x1da   : > { %v1878_v11 = vpop.permute.xlu1 %1877  ;;  %796 = vst.msk [vmem:[#allocation3 + $0x2e8] sm:$0xff] %vm764_vm3, %v731_v40 }
 0x1db   : > { %1963 = vst.msk [vmem:[#allocation3 + $0xf8] sm:$0xff] %vm1279_vm5, %v1878_v11  ;;  %1767 = vrot.lane.b32.xlu0 %v4878_v12, %s3725_s26  ;;  %v2154_v11 = vld [vmem:[#allocation3 + $0x148] sm:$0xff] }
 0x1dc   : > { %1221 = vrot.lane.b32.xlu1 %v4802_v27, %s3726_s13  ;;  %v1663_v27 = vrot.slane %v4908_v16, 7 }
 0x1dd   : > { %v1792_v42 = vpop.permute.xlu0 %1791 }
 0x1de   : > { %v1204_v58 = vpop.permute.xlu1 %1203  ;;  %1856 = vst.msk [vmem:[#allocation3 + $0x2f0] sm:$0xff] %vm990_vm4, %v1792_v42  ;;  %v5163_v57 = vsel %vm539_vm1, 0.0, %v1663_v27  ;;  %v2163_v42 = vld [vmem:[#allocation3 + $0x190] sm:$0xff] }
 0x1df   : > { %1290 = vst.msk [vmem:[#allocation3 + $0xf0] sm:$0xff] %vm1279_vm5, %v1204_v58  ;;  %1895 = vrot.lane.b32.xlu0 %v4868_v37, %s3726_s13  ;;  %v2160_v58 = vld [vmem:[#allocation3 + $0x178] sm:$0xff] }
 0x1e0   : > { %708 = vrot.lane.b32.xlu1 %v4747_v55, %s3724_s24 }
 0x1e1   : > { %v957_v62 = vpop.permute.xlu0 %956 }
 0x1e2   : > { %v1246_v36 = vpop.permute.xlu1 %1245  ;;  %v2144_v13 = vld [vmem:[#allocation3 + $0xf8] sm:$0xff]  ;;  %1022 = vst.msk [vmem:[#allocation3 + $0x2e8] sm:$0xff] %vm990_vm4, %v957_v62 }
 0x1e3   : > { %2455 = vmatprep.mubr.f32.mxu0 %v2144_v13  ;;  %1480 = vrot.lane.b32.xlu0 %v4888_v21, %s3724_s24  ;;  %1311 = vst.msk [vmem:[#allocation3 + $0x2e8] sm:$0xff] %vm1279_vm5, %v1246_v36 }
 0x1e4   : > { %934 = vrot.lane.b32.xlu1 %v4812_v32, %s3725_s26 }
 0x1e5   : > { %v1920_v25 = vpop.permute.xlu0 %1919 }
 0x1e6   : > { %v691_v55 = vpop.permute.xlu1 %690  ;;  %v2143_v1 = vld [vmem:[#allocation3 + $0xf0] sm:$0xff]  ;;  %1984 = vst.msk [vmem:[#allocation3 + $0x2f0] sm:$0xff] %vm1279_vm5, %v1920_v25  ;;  %v2169_v25 = vld [vmem:[#allocation3 + $0x1c0] sm:$0xff] }
 0x1e7   : > { %776 = vst.msk [vmem:[#allocation3 + $0x108] sm:$0xff] %vm764_vm3, %v691_v55  ;;  %2456 = vmatmul.mubr.f32.gmra.mrb[20].mxu0 %v2143_v1  ;;  %1769 = vrot.lane.b32.xlu0 %v5163_v57, %s3725_s26 }
 0x1e8   : > { %1223 = vrot.lane.b32.xlu1 %v4847_v8, %s3726_s13  ;;  %v1664_v8 = vrot.slane %v4935_v5, 7 }
 0x1e9   : > { %v1463_v56 = vpop.permute.xlu0 %1462 }
 0x1ea   : > { %v917_v32 = vpop.permute.xlu1 %916  ;;  %1547 = vst.msk [vmem:[#allocation3 + $0x110] sm:$0xff] %vm764_vm3, %v1463_v56  ;;  %v2206_v10 = vld [vmem:[#allocation3 + $0x2e8] sm:$0xff]  ;;  %v2172_v56 = vld [vmem:[#allocation3 + $0x1d8] sm:$0xff] }
 0x1eb   : > { %1002 = vst.msk [vmem:[#allocation3 + $0x108] sm:$0xff] %vm990_vm4, %v917_v32  ;;  %1897 = vrot.lane.b32.xlu0 %v4908_v16, %s3726_s13  ;;  %v5186_v16 = vsel %vm539_vm1, %v1663_v27, %v1664_v8 }
 0x1ec   : > { %710 = vrot.lane.b32.xlu1 %v4786_v41, %s3724_s24 }
 0x1ed   : > { %v1752_v51 = vpop.permute.xlu0 %1751  ;;  %v2207_v43 = vld [vmem:[#allocation3 + $0x2f0] sm:$0xff] }
 0x1ee   : > { %v1206_v2 = vpop.permute.xlu1 %1205  ;;  %1836 = vst.msk [vmem:[#allocation3 + $0x110] sm:$0xff] %vm990_vm4, %v1752_v51  ;;  %2560 = vmatprep.mubr.f32.mxu1 %v2207_v43  ;;  %v2178_v51 = vld [vmem:[#allocation3 + $0x208] sm:$0xff] }
 0x1ef   : > { %1291 = vst.msk [vmem:[#allocation3 + $0x108] sm:$0xff] %vm1279_vm5, %v1206_v2  ;;  %1482 = vrot.lane.b32.xlu0 %v4891_v50, %s3724_s24  ;;  %2561 = vmatmul.mubr.f32.gmra.mrb[14].mxu1 %v2206_v10  ;;  %v2175_v2 = vld [vmem:[#allocation3 + $0x1f0] sm:$0xff] }
 0x1f0   : > { %936 = vrot.lane.b32.xlu1 %v4815_v54, %s3725_s26  ;;  %3265 = vmatprep.mubr.msk.f32.mxu1 %vm436_vm0, %v2115_v63  ;;  %v2181_v63 = vld [vmem:[#allocation3 + $0x220] sm:$0xff] }
 0x1f1   : > { %v1880_v29 = vpop.permute.xlu0 %1879 }
 0x1f2   : > { %v693_v41 = vpop.permute.xlu1 %692  ;;  %v5188_v19 = vpop.f32.mrb[0].mxu0  ;;  %1964 = vst.msk [vmem:[#allocation3 + $0x110] sm:$0xff] %vm1279_vm5, %v1880_v29 }
 0x1f3   : > { %777 = vst.msk [vmem:[#allocation3 + $0x120] sm:$0xff] %vm764_vm3, %v693_v41  ;;  %v2409_v54 = vpop.f32.mrb[1].mxu0  ;;  %1771 = vrot.lane.b32.xlu0 %v5186_v16, %s3725_s26  ;;  %3266 = vmatmul.mubr.msk.f32.vlgmr.msra.gmra.mrb[16].mxu1 %vm436_vm0, %v2118_v18 }
 0x1f4   : > { %1225 = vrot.lane.b32.xlu1 %v4878_v12, %s3726_s13  ;;  %3268 = vmatprep.mubr.msk.f32.mxu1 %vm436_vm0, %v2121_v38  ;;  %v2184_v38 = vld [vmem:[#allocation3 + $0x238] sm:$0xff] }
 0x1f5   : > { %v1465_v15 = vpop.permute.xlu0 %1464 }
 0x1f6   : > { %v919_v9 = vpop.permute.xlu1 %918  ;;  %1548 = vst.msk [vmem:[#allocation3 + $0x128] sm:$0xff] %vm764_vm3, %v1465_v15  ;;  %v2146_v33 = vld [vmem:[#allocation3 + $0x108] sm:$0xff] }
 0x1f7   : > { %1003 = vst.msk [vmem:[#allocation3 + $0x120] sm:$0xff] %vm990_vm4, %v919_v9  ;;  %1899 = vrot.lane.b32.xlu0 %v4935_v5, %s3726_s13  ;;  %3269 = vmatmul.mubr.msk.f32.gmra.mrb[18].mxu1 %vm436_vm0, %v2124_v3  ;;  %v5205_v12 = vpop.f32.mrb[2].mxu0  ;;  %v2133_v5 = vld [vmem:[#allocation3 + $0xa0] sm:$0xff]  ;;  %v2187_v9 = vld [vmem:[#allocation3 + $0x250] sm:$0xff] }
 0x1f8   : > { %712 = vrot.lane.b32.xlu1 %v4835_v34, %s3724_s24  ;;  %v2414_v45 = vpop.f32.mrb[3].mxu0  ;;  %3271 = vmatprep.mubr.msk.f32.mxu1 %vm436_vm0, %v2127_v47  ;;  %v2190_v47 = vld [vmem:[#allocation3 + $0x268] sm:$0xff] }
 0x1f9   : > { %v1754_v24 = vpop.permute.xlu0 %1753  ;;  %v2147_v34 = vld [vmem:[#allocation3 + $0x110] sm:$0xff] }
 0x1fa   : > { %v1208_v4 = vpop.permute.xlu1 %1207  ;;  %1837 = vst.msk [vmem:[#allocation3 + $0x128] sm:$0xff] %vm990_vm4, %v1754_v24  ;;  %2460 = vmatprep.mubr.f32.mxu0 %v2147_v34  ;;  %v2199_v24 = vld [vmem:[#allocation3 + $0x2b0] sm:$0xff] }
 0x1fb   : > { %1292 = vst.msk [vmem:[#allocation3 + $0x120] sm:$0xff] %vm1279_vm5, %v1208_v4  ;;  %1484 = vrot.lane.b32.xlu0 %v4950_v44, %s3724_s24  ;;  %2461 = vmatmul.mubr.f32.gmra.mrb[22].mxu0 %v2146_v33  ;;  %v2193_v4 = vld [vmem:[#allocation3 + $0x280] sm:$0xff] }
 0x1fc   : > { %938 = vrot.lane.b32.xlu1 %v4888_v21, %s3725_s26  ;;  %3272 = vmatmul.mubr.msk.f32.gmra.mrb[20].mxu1 %vm436_vm0, %v2130_v59  ;;  %v2139_v21 = vld [vmem:[#allocation3 + $0xd0] sm:$0xff] }
 0x1fd   : > { %v1882_v60 = vpop.permute.xlu0 %1881  ;;  %3274 = vmatprep.mubr.msk.f32.mxu1 %vm436_vm0, %v2133_v5 }
 0x1fe   : > { %v695_v0 = vpop.permute.xlu1 %694  ;;  %1965 = vst.msk [vmem:[#allocation3 + $0x128] sm:$0xff] %vm1279_vm5, %v1882_v60 }
 0x1ff   : > { %778 = vst.msk [vmem:[#allocation3 + $0x138] sm:$0xff] %vm764_vm3, %v695_v0  ;;  %1773 = vrot.lane.b32.xlu0 %v1708_v6, %s3725_s26 }
 0x200   : > { %1227 = vrot.lane.b32.xlu1 %v5163_v57, %s3726_s13  ;;  %3275 = vmatmul.mubr.msk.f32.gmra.mrb[22].mxu1 %vm436_vm0, %v2136_v61  ;;  %v2166_v57 = vld [vmem:[#allocation3 + $0x1a8] sm:$0xff] }
 0x201   : > { %v1467_v20 = vpop.permute.xlu0 %1466  ;;  %3277 = vmatprep.mubr.msk.f32.mxu1 %vm436_vm0, %v2139_v21  ;;  %v2202_v61 = vld [vmem:[#allocation3 + $0x2c8] sm:$0xff]  ;;  %v2205_v21 = vld [vmem:[#allocation3 + $0x2e0] sm:$0xff] }
 0x202   : > { %v921_v44 = vpop.permute.xlu1 %920  ;;  %1549 = vst.msk [vmem:[#allocation3 + $0x140] sm:$0xff] %vm764_vm3, %v1467_v20  ;;  %v5229_v48 = vpop.f32.mrb[4].mxu0  ;;  %v2149_v53 = vld [vmem:[#allocation3 + $0x120] sm:$0xff] }
 0x203   : > { %1004 = vst.msk [vmem:[#allocation3 + $0x138] sm:$0xff] %vm990_vm4, %v921_v44  ;;  %1901 = vrot.lane.b32.xlu0 %v4995_v26, %s3726_s13  ;;  %v2419_v23 = vpop.f32.mrb[5].mxu0  ;;  %v2151_v26 = vld [vmem:[#allocation3 + $0x130] sm:$0xff] }
 0x204   : > { %714 = vrot.lane.b32.xlu1 %v4868_v37, %s3724_s24  ;;  %3278 = vmatmul.mubr.msk.f32.gmra.mrb[24].mxu1 %vm436_vm0, %v2142_v7  ;;  %v2208_v7 = vld [vmem:[#allocation3 + $0x2f8] sm:$0xff] }
 0x205   : > { %v1756_v52 = vpop.permute.xlu0 %1755  ;;  %3280 = vmatprep.mubr.msk.f32.mxu1 %vm436_vm0, %v2145_v35  ;;  %v2150_v37 = vld [vmem:[#allocation3 + $0x128] sm:$0xff] }
 0x206   : > { %v1210_v17 = vpop.permute.xlu1 %1209  ;;  %1838 = vst.msk [vmem:[#allocation3 + $0x140] sm:$0xff] %vm990_vm4, %v1756_v52  ;;  %2465 = vmatprep.mubr.f32.mxu0 %v2150_v37 }
 0x207   : > { %1293 = vst.msk [vmem:[#allocation3 + $0x138] sm:$0xff] %vm1279_vm5, %v1210_v17  ;;  %1486 = vrot.lane.b32.xlu0 %v4953_v14, %s3724_s24  ;;  %2466 = vmatmul.mubr.f32.gmra.mrb[24].mxu0 %v2149_v53 }
 0x208   : > { %940 = vrot.lane.b32.xlu1 %v4891_v50, %s3725_s26  ;;  %3281 = vmatmul.mubr.msk.f32.gmra.mrb[26].mxu1 %vm436_vm0, %v2148_v22  ;;  %v2157_v50 = vld [vmem:[#allocation3 + $0x160] sm:$0xff] }
 0x209   : > { %v1884_v30 = vpop.permute.xlu0 %1883  ;;  %3283 = vmatprep.mubr.msk.f32.mxu1 %vm436_vm0, %v2151_v26 }
 0x20a   : > { %v697_v46 = vpop.permute.xlu1 %696  ;;  %1966 = vst.msk [vmem:[#allocation3 + $0x140] sm:$0xff] %vm1279_vm5, %v1884_v30 }
 0x20b   : > { %779 = vst.msk [vmem:[#allocation3 + $0x150] sm:$0xff] %vm764_vm3, %v697_v46  ;;  %1775 = vrot.lane.b32.xlu0 %v1668_v39, %s3725_s26 }
 0x20c   : > { %1229 = vrot.lane.b32.xlu1 %v5186_v16, %s3726_s13  ;;  %3284 = vmatmul.mubr.msk.f32.gmra.mrb[28].mxu1 %vm436_vm0, %v2154_v11 }
 0x20d   : > { %v1469_v40 = vpop.permute.xlu0 %1468  ;;  %3286 = vmatprep.mubr.msk.f32.mxu1 %vm436_vm0, %v2157_v50 }
 0x20e   : > { %v923_v14 = vpop.permute.xlu1 %922  ;;  %1550 = vst.msk [vmem:[#allocation3 + $0x158] sm:$0xff] %vm764_vm3, %v1469_v40  ;;  %v2152_v27 = vld [vmem:[#allocation3 + $0x138] sm:$0xff] }
 0x20f   : > { %1005 = vst.msk [vmem:[#allocation3 + $0x150] sm:$0xff] %vm990_vm4, %v923_v14  ;;  %1903 = vrot.lane.b32.xlu0 %v5000_v28, %s3726_s13 }
 0x210   : > { %3287 = vmatmul.mubr.msk.f32.gmra.mrb[30].mxu1 %vm436_vm0, %v2160_v58 }
 0x211   : > { %v1758_v55 = vpop.permute.xlu0 %1757  ;;  %3289 = vmatprep.mubr.msk.f32.mxu1 %vm436_vm0, %v2163_v42  ;;  %v2153_v1 = vld [vmem:[#allocation3 + $0x140] sm:$0xff] }
 0x212   : > { %v5256_v36 = vpop.f32.mrb[6].mxu0  ;;  %v1212_v13 = vpop.permute.xlu1 %1211  ;;  %1839 = vst.msk [vmem:[#allocation3 + $0x158] sm:$0xff] %vm990_vm4, %v1758_v55  ;;  %2470 = vmatprep.mubr.f32.mxu0 %v2153_v1 }
 0x213   : > { %1294 = vst.msk [vmem:[#allocation3 + $0x150] sm:$0xff] %vm1279_vm5, %v1212_v13  ;;  %v2424_v62 = vpop.f32.mrb[7].mxu0  ;;  %2471 = vmatmul.mubr.f32.gmra.mrb[26].mxu0 %v2152_v27 }
 0x214   : > { %3290 = vmatmul.mubr.msk.f32.gmra.mrb[32].mxu1 %vm436_vm0, %v2166_v57 }
 0x215   : > { %v1886_v32 = vpop.permute.xlu0 %1885  ;;  %3292 = vmatprep.mubr.msk.f32.mxu1 %vm436_vm0, %v2169_v25 }
 0x216   : > { %v699_v28 = vpop.permute.xlu1 %698  ;;  %1967 = vst.msk [vmem:[#allocation3 + $0x158] sm:$0xff] %vm1279_vm5, %v1886_v32 }
 0x217   : > { %780 = vst.msk [vmem:[#allocation3 + $0x168] sm:$0xff] %vm764_vm3, %v699_v28 }
 0x218   : > { %3293 = vmatmul.mubr.msk.f32.gmra.mrb[34].mxu1 %vm436_vm0, %v2172_v56 }
 0x219   : > { %v1471_v8 = vpop.permute.xlu0 %1470  ;;  %3295 = vmatprep.mubr.msk.f32.mxu1 %vm436_vm0, %v2175_v2 }
 0x21a   : > { %v925_v10 = vpop.permute.xlu1 %924  ;;  %1551 = vst.msk [vmem:[#allocation3 + $0x170] sm:$0xff] %vm764_vm3, %v1471_v8  ;;  %v5270_v43 = vpop.f32.mrb[0].mxu1  ;;  %v2155_v18 = vld [vmem:[#allocation3 + $0x150] sm:$0xff] }
 0x21b   : > { %1006 = vst.msk [vmem:[#allocation3 + $0x168] sm:$0xff] %vm990_vm4, %v925_v10  ;;  %v2529_v41 = vpop.f32.mrb[1].mxu1 }
 0x21c   : > { %3296 = vmatmul.mubr.msk.f32.gmra.mrb[36].mxu1 %vm436_vm0, %v2178_v51 }
 0x21d   : > { %v1760_v29 = vpop.permute.xlu0 %1759  ;;  %3298 = vmatprep.mubr.msk.f32.mxu1 %vm436_vm0, %v2181_v63  ;;  %v2156_v54 = vld [vmem:[#allocation3 + $0x158] sm:$0xff] }
 0x21e   : > { %v1214_v16 = vpop.permute.xlu1 %1213  ;;  %1840 = vst.msk [vmem:[#allocation3 + $0x170] sm:$0xff] %vm990_vm4, %v1760_v29  ;;  %2475 = vmatprep.mubr.f32.mxu0 %v2156_v54 }
 0x21f   : > { %1295 = vst.msk [vmem:[#allocation3 + $0x168] sm:$0xff] %vm1279_vm5, %v1214_v16  ;;  %2476 = vmatmul.mubr.f32.gmra.mrb[28].mxu0 %v2155_v18 }
 0x220   : > { %3299 = vmatmul.mubr.msk.f32.gmra.mrb[38].mxu1 %vm436_vm0, %v2184_v38 }
 0x221   : > { %v1888_v15 = vpop.permute.xlu0 %1887  ;;  %3301 = vmatprep.mubr.msk.f32.mxu1 %vm436_vm0, %v2187_v9 }
 0x222   : > { %v701_v3 = vpop.permute.xlu1 %700  ;;  %1968 = vst.msk [vmem:[#allocation3 + $0x170] sm:$0xff] %vm1279_vm5, %v1888_v15 }
 0x223   : > { %781 = vst.msk [vmem:[#allocation3 + $0x180] sm:$0xff] %vm764_vm3, %v701_v3 }
 0x224   : > { %3302 = vmatmul.mubr.msk.f32.gmra.mrb[40].mxu1 %vm436_vm0, %v2190_v47 }
 0x225   : > { %v1473_v33 = vpop.permute.xlu0 %1472  ;;  %3304 = vmatprep.mubr.msk.f32.mxu1 %vm436_vm0, %v2193_v4 }
 0x226   : > { %v927_v45 = vpop.permute.xlu1 %926  ;;  %1552 = vst.msk [vmem:[#allocation3 + $0x188] sm:$0xff] %vm764_vm3, %v1473_v33  ;;  %v2158_v5 = vld [vmem:[#allocation3 + $0x168] sm:$0xff] }
 0x227   : > { %1007 = vst.msk [vmem:[#allocation3 + $0x180] sm:$0xff] %vm990_vm4, %v927_v45 }
 0x228   : > { %3305 = vmatmul.mubr.msk.f32.gmra.mrb[42].mxu1 %vm436_vm0, %v2196_v49 }
 0x229   : > { %v1762_v6 = vpop.permute.xlu0 %1761  ;;  %3307 = vmatprep.mubr.msk.f32.mxu1 %vm436_vm0, %v2199_v24  ;;  %v2159_v60 = vld [vmem:[#allocation3 + $0x170] sm:$0xff] }
 0x22a   : > { %v5284_v34 = vpop.f32.mrb[8].mxu0  ;;  %v1216_v59 = vpop.permute.xlu1 %1215  ;;  %1841 = vst.msk [vmem:[#allocation3 + $0x188] sm:$0xff] %vm990_vm4, %v1762_v6  ;;  %2480 = vmatprep.mubr.f32.mxu0 %v2159_v60 }
 0x22b   : > { %1296 = vst.msk [vmem:[#allocation3 + $0x180] sm:$0xff] %vm1279_vm5, %v1216_v59  ;;  %v2429_v0 = vpop.f32.mrb[9].mxu0  ;;  %2481 = vmatmul.mubr.f32.gmra.mrb[30].mxu0 %v2158_v5 }
 0x22c   : > { %3308 = vmatmul.mubr.msk.f32.gmra.mrb[44].mxu1 %vm436_vm0, %v2202_v61 }
 0x22d   : > { %v1890_v20 = vpop.permute.xlu0 %1889  ;;  %3310 = vmatprep.mubr.msk.f32.mxu1 %vm436_vm0, %v2205_v21 }
 0x22e   : > { %v703_v44 = vpop.permute.xlu1 %702  ;;  %1969 = vst.msk [vmem:[#allocation3 + $0x188] sm:$0xff] %vm1279_vm5, %v1890_v20 }
 0x22f   : > { %782 = vst.msk [vmem:[#allocation3 + $0x198] sm:$0xff] %vm764_vm3, %v703_v44 }
 0x230   : > { %3311 = vmatmul.mubr.msk.f32.gmra.mrb[46].mxu1 %vm436_vm0, %v2208_v7 }
 0x231   : > { %v1475_v23 = vpop.permute.xlu0 %1474 }
 0x232   : > { %v929_v35 = vpop.permute.xlu1 %928  ;;  %1553 = vst.msk [vmem:[#allocation3 + $0x1a0] sm:$0xff] %vm764_vm3, %v1475_v23  ;;  %v5297_v17 = vpop.f32.mrb[2].mxu1  ;;  %v2161_v52 = vld [vmem:[#allocation3 + $0x180] sm:$0xff] }
 0x233   : > { %1008 = vst.msk [vmem:[#allocation3 + $0x198] sm:$0xff] %vm990_vm4, %v929_v35  ;;  %v2534_v53 = vpop.f32.mrb[3].mxu1 }
 0x235   : > { %v1764_v37 = vpop.permute.xlu0 %1763  ;;  %v2162_v22 = vld [vmem:[#allocation3 + $0x188] sm:$0xff] }
 0x236   : > { %v1218_v31 = vpop.permute.xlu1 %1217  ;;  %1842 = vst.msk [vmem:[#allocation3 + $0x1a0] sm:$0xff] %vm990_vm4, %v1764_v37  ;;  %2485 = vmatprep.mubr.f32.mxu0 %v2162_v22 }
 0x237   : > { %1297 = vst.msk [vmem:[#allocation3 + $0x198] sm:$0xff] %vm1279_vm5, %v1218_v31  ;;  %2486 = vmatmul.mubr.f32.gmra.mrb[32].mxu0 %v2161_v52 }
 0x239   : > { %v1892_v46 = vpop.permute.xlu0 %1891 }
 0x23a   : > { %v705_v26 = vpop.permute.xlu1 %704  ;;  %1970 = vst.msk [vmem:[#allocation3 + $0x1a0] sm:$0xff] %vm1279_vm5, %v1892_v46 }
 0x23b   : > { %783 = vst.msk [vmem:[#allocation3 + $0x1b0] sm:$0xff] %vm764_vm3, %v705_v26 }
 0x23d   : > { %v1477_v30 = vpop.permute.xlu0 %1476 }
 0x23e   : > { %v931_v39 = vpop.permute.xlu1 %930  ;;  %1554 = vst.msk [vmem:[#allocation3 + $0x1b8] sm:$0xff] %vm764_vm3, %v1477_v30  ;;  %v2164_v14 = vld [vmem:[#allocation3 + $0x198] sm:$0xff] }
 0x23f   : > { %1009 = vst.msk [vmem:[#allocation3 + $0x1b0] sm:$0xff] %vm990_vm4, %v931_v39 }
 0x241   : > { %v1766_v58 = vpop.permute.xlu0 %1765  ;;  %v2165_v42 = vld [vmem:[#allocation3 + $0x1a0] sm:$0xff] }
 0x242   : > { %v5305_v11 = vpop.f32.mrb[10].mxu0  ;;  %v1220_v50 = vpop.permute.xlu1 %1219  ;;  %1843 = vst.msk [vmem:[#allocation3 + $0x1b8] sm:$0xff] %vm990_vm4, %v1766_v58  ;;  %2490 = vmatprep.mubr.f32.mxu0 %v2165_v42 }
 0x243   : > { %1298 = vst.msk [vmem:[#allocation3 + $0x1b0] sm:$0xff] %vm1279_vm5, %v1220_v50  ;;  %v2434_v40 = vpop.f32.mrb[11].mxu0  ;;  %2491 = vmatmul.mubr.f32.gmra.mrb[34].mxu0 %v2164_v14 }
 0x245   : > { %v1894_v27 = vpop.permute.xlu0 %1893 }
 0x246   : > { %v707_v13 = vpop.permute.xlu1 %706  ;;  %1971 = vst.msk [vmem:[#allocation3 + $0x1b8] sm:$0xff] %vm1279_vm5, %v1894_v27 }
 0x247   : > { %784 = vst.msk [vmem:[#allocation3 + $0x1c8] sm:$0xff] %vm764_vm3, %v707_v13 }
 0x249   : > { %v1479_v55 = vpop.permute.xlu0 %1478 }
 0x24a   : > { %v933_v62 = vpop.permute.xlu1 %932  ;;  %1555 = vst.msk [vmem:[#allocation3 + $0x1d0] sm:$0xff] %vm764_vm3, %v1479_v55  ;;  %v5313_v1 = vpop.f32.mrb[4].mxu1  ;;  %v2167_v28 = vld [vmem:[#allocation3 + $0x1b0] sm:$0xff] }
 0x24b   : > { %1010 = vst.msk [vmem:[#allocation3 + $0x1c8] sm:$0xff] %vm990_vm4, %v933_v62  ;;  %v2539_v57 = vpop.f32.mrb[5].mxu1 }
 0x24d   : > { %v1768_v32 = vpop.permute.xlu0 %1767  ;;  %v2168_v56 = vld [vmem:[#allocation3 + $0x1b8] sm:$0xff] }
 0x24e   : > { %v1222_v25 = vpop.permute.xlu1 %1221  ;;  %1844 = vst.msk [vmem:[#allocation3 + $0x1d0] sm:$0xff] %vm990_vm4, %v1768_v32  ;;  %2495 = vmatprep.mubr.f32.mxu0 %v2168_v56 }
 0x24f   : > { %1299 = vst.msk [vmem:[#allocation3 + $0x1c8] sm:$0xff] %vm1279_vm5, %v1222_v25  ;;  %2496 = vmatmul.mubr.f32.gmra.mrb[36].mxu0 %v2167_v28 }
 0x251   : > { %v1896_v10 = vpop.permute.xlu0 %1895 }
 0x252   : > { %v709_v2 = vpop.permute.xlu1 %708  ;;  %1972 = vst.msk [vmem:[#allocation3 + $0x1d0] sm:$0xff] %vm1279_vm5, %v1896_v10 }
 0x253   : > { %785 = vst.msk [vmem:[#allocation3 + $0x1e0] sm:$0xff] %vm764_vm3, %v709_v2 }
 0x255   : > { %v1481_v51 = vpop.permute.xlu0 %1480 }
 0x256   : > { %v935_v8 = vpop.permute.xlu1 %934  ;;  %1556 = vst.msk [vmem:[#allocation3 + $0x1e8] sm:$0xff] %vm764_vm3, %v1481_v51  ;;  %v2170_v16 = vld [vmem:[#allocation3 + $0x1c8] sm:$0xff] }
 0x257   : > { %1011 = vst.msk [vmem:[#allocation3 + $0x1e0] sm:$0xff] %vm990_vm4, %v935_v8 }
 0x259   : > { %v1770_v29 = vpop.permute.xlu0 %1769  ;;  %v2171_v54 = vld [vmem:[#allocation3 + $0x1d0] sm:$0xff] }
 0x25a   : > { %v5321_v63 = vpop.f32.mrb[12].mxu0  ;;  %v1224_v41 = vpop.permute.xlu1 %1223  ;;  %1845 = vst.msk [vmem:[#allocation3 + $0x1e8] sm:$0xff] %vm990_vm4, %v1770_v29  ;;  %2500 = vmatprep.mubr.f32.mxu0 %v2171_v54 }
 0x25b   : > { %1300 = vst.msk [vmem:[#allocation3 + $0x1e0] sm:$0xff] %vm1279_vm5, %v1224_v41  ;;  %v2439_v18 = vpop.f32.mrb[13].mxu0  ;;  %2501 = vmatmul.mubr.f32.gmra.mrb[38].mxu0 %v2170_v16 }
 0x25d   : > { %v1898_v9 = vpop.permute.xlu0 %1897 }
 0x25e   : > { %v711_v38 = vpop.permute.xlu1 %710  ;;  %1973 = vst.msk [vmem:[#allocation3 + $0x1e8] sm:$0xff] %vm1279_vm5, %v1898_v9 }
 0x25f   : > { %786 = vst.msk [vmem:[#allocation3 + $0x1f8] sm:$0xff] %vm764_vm3, %v711_v38 }
 0x261   : > { %v1483_v15 = vpop.permute.xlu0 %1482 }
 0x262   : > { %v937_v3 = vpop.permute.xlu1 %936  ;;  %1557 = vst.msk [vmem:[#allocation3 + $0x200] sm:$0xff] %vm764_vm3, %v1483_v15  ;;  %v5329_v47 = vpop.f32.mrb[6].mxu1  ;;  %v2173_v33 = vld [vmem:[#allocation3 + $0x1e0] sm:$0xff] }
 0x263   : > { %1012 = vst.msk [vmem:[#allocation3 + $0x1f8] sm:$0xff] %vm990_vm4, %v937_v3  ;;  %v2544_v4 = vpop.f32.mrb[7].mxu1 }
 0x265   : > { %v1772_v49 = vpop.permute.xlu0 %1771  ;;  %v2174_v24 = vld [vmem:[#allocation3 + $0x1e8] sm:$0xff] }
 0x266   : > { %v1226_v45 = vpop.permute.xlu1 %1225  ;;  %1846 = vst.msk [vmem:[#allocation3 + $0x200] sm:$0xff] %vm990_vm4, %v1772_v49  ;;  %2505 = vmatprep.mubr.f32.mxu0 %v2174_v24 }
 0x267   : > { %1301 = vst.msk [vmem:[#allocation3 + $0x1f8] sm:$0xff] %vm1279_vm5, %v1226_v45  ;;  %2506 = vmatmul.mubr.f32.gmra.mrb[40].mxu0 %v2173_v33 }
 0x269   : > { %v1900_v5 = vpop.permute.xlu0 %1899 }
 0x26a   : > { %v713_v59 = vpop.permute.xlu1 %712  ;;  %1974 = vst.msk [vmem:[#allocation3 + $0x200] sm:$0xff] %vm1279_vm5, %v1900_v5 }
 0x26b   : > { %787 = vst.msk [vmem:[#allocation3 + $0x210] sm:$0xff] %vm764_vm3, %v713_v59 }
 0x26d   : > { %v1485_v6 = vpop.permute.xlu0 %1484 }
 0x26e   : > { %v939_v0 = vpop.permute.xlu1 %938  ;;  %1558 = vst.msk [vmem:[#allocation3 + $0x218] sm:$0xff] %vm764_vm3, %v1485_v6  ;;  %v2176_v21 = vld [vmem:[#allocation3 + $0x1f8] sm:$0xff] }
 0x26f   : > { %1013 = vst.msk [vmem:[#allocation3 + $0x210] sm:$0xff] %vm990_vm4, %v939_v0 }
 0x271   : > { %v1774_v20 = vpop.permute.xlu0 %1773  ;;  %v2177_v7 = vld [vmem:[#allocation3 + $0x200] sm:$0xff] }
 0x272   : > { %v5337_v60 = vpop.f32.mrb[14].mxu0  ;;  %v1228_v61 = vpop.permute.xlu1 %1227  ;;  %1847 = vst.msk [vmem:[#allocation3 + $0x218] sm:$0xff] %vm990_vm4, %v1774_v20  ;;  %2510 = vmatprep.mubr.f32.mxu0 %v2177_v7 }
 0x273   : > { %1302 = vst.msk [vmem:[#allocation3 + $0x210] sm:$0xff] %vm1279_vm5, %v1228_v61  ;;  %v2444_v44 = vpop.f32.mrb[15].mxu0  ;;  %2511 = vmatmul.mubr.f32.gmra.mrb[42].mxu0 %v2176_v21 }
 0x275   : > { %v1902_v23 = vpop.permute.xlu0 %1901 }
 0x276   : > { %v715_v35 = vpop.permute.xlu1 %714  ;;  %1975 = vst.msk [vmem:[#allocation3 + $0x218] sm:$0xff] %vm1279_vm5, %v1902_v23 }
 0x277   : > { %788 = vst.msk [vmem:[#allocation3 + $0x228] sm:$0xff] %vm764_vm3, %v715_v35 }
 0x279   : > { %v1487_v31 = vpop.permute.xlu0 %1486 }
 0x27a   : > { %v941_v53 = vpop.permute.xlu1 %940  ;;  %1559 = vst.msk [vmem:[#allocation3 + $0x230] sm:$0xff] %vm764_vm3, %v1487_v31  ;;  %v5345_v52 = vpop.f32.mrb[8].mxu1  ;;  %v2179_v26 = vld [vmem:[#allocation3 + $0x210] sm:$0xff] }
 0x27b   : > { %1014 = vst.msk [vmem:[#allocation3 + $0x228] sm:$0xff] %vm990_vm4, %v941_v53  ;;  %v2549_v37 = vpop.f32.mrb[9].mxu1 }
 0x27d   : > { %v1776_v46 = vpop.permute.xlu0 %1775  ;;  %v2180_v39 = vld [vmem:[#allocation3 + $0x218] sm:$0xff] }
 0x27e   : > { %v1230_v22 = vpop.permute.xlu1 %1229  ;;  %1848 = vst.msk [vmem:[#allocation3 + $0x230] sm:$0xff] %vm990_vm4, %v1776_v46  ;;  %2515 = vmatprep.mubr.f32.mxu0 %v2180_v39 }
 0x27f   : > { %1303 = vst.msk [vmem:[#allocation3 + $0x228] sm:$0xff] %vm1279_vm5, %v1230_v22  ;;  %2516 = vmatmul.mubr.f32.gmra.mrb[44].mxu0 %v2179_v26 }
 0x281   : > { %v1904_v30 = vpop.permute.xlu0 %1903 }
 0x282   : > { %1976 = vst.msk [vmem:[#allocation3 + $0x230] sm:$0xff] %vm1279_vm5, %v1904_v30 }
 0x286   : > { %v2182_v14 = vld [vmem:[#allocation3 + $0x228] sm:$0xff] }
 0x289   : > { %v2183_v58 = vld [vmem:[#allocation3 + $0x230] sm:$0xff] }
 0x28a   : > { %v5350_v50 = vpop.f32.mrb[16].mxu0  ;;  %2520 = vmatprep.mubr.f32.mxu0 %v2183_v58 }
 0x28b   : > { %v2449_v40 = vpop.f32.mrb[17].mxu0  ;;  %2521 = vmatmul.mubr.f32.gmra.mrb[46].mxu0 %v2182_v14 }
 0x292   : > { %v5352_v42 = vpop.f32.mrb[10].mxu1 }
 0x293   : > { %v2554_v13 = vpop.f32.mrb[11].mxu1 }
 0x2a2   : > { %v5354_v27 = vpop.f32.mrb[18].mxu0 }
 0x2a3   : > { %v2454_v62 = vpop.f32.mrb[19].mxu0 }
 0x2aa   : > { %v5356_v55 = vpop.f32.mrb[12].mxu1 }
 0x2ab   : > { %v2559_v57 = vpop.f32.mrb[13].mxu1 }
 0x2ba   : > { %v5358_v25 = vpop.f32.mrb[20].mxu0 }
 0x2bb   : > { %v2459_v28 = vpop.f32.mrb[21].mxu0 }
 0x2c2   : > { %v5360_v32 = vpop.f32.mrb[14].mxu1 }
 0x2c3   : > { %v2564_v56 = vpop.f32.mrb[15].mxu1 }
 0x2c6   : > { %v3267_v2 = vpop.f32.mrb[16].mxu1 }
 0x2c7   : > { %v2638_v10 = vadd.f32 %v3267_v2, %v5205_v12  ;;  %v2632_v8 = vpop.f32.mrb[17].mxu1 }
 0x2c8   : > { %v2633_v51 = vadd.f32 %v2632_v8, %v5188_v19 }
 0x2c9   : > { %2792 = vst.msk [vmem:[%s5366_s14 + $0x8] sm:$0xff] %vm436_vm0, %v2638_v10  ;;  %v2824_v41 = vsel %vm436_vm0, %v2638_v10, 0.0  ;;  %v2893_v16 = vmul.f32 %v2638_v10, %v2638_v10 }
 0x2ca   : > { %2791 = vst.msk [vmem:[%s5366_s14] sm:$0xff] %vm436_vm0, %v2633_v51  ;;  %v2823_v18 = vsel %vm436_vm0, %v2633_v51, 0.0  ;;  %v2892_v12 = vmul.f32 %v2633_v51, %v2633_v51  ;;  %v3270_v29 = vpop.f32.mrb[18].mxu1 }
 0x2cb   : > { %v2925_v19 = vsel %vm436_vm0, %v2893_v16, 0.0  ;;  %v2825_v54 = vadd.f32 %v2824_v41, %v2823_v18  ;;  %v2648_v38 = vadd.f32 %v3270_v29, %v5256_v36  ;;  %v2642_v9 = vpop.f32.mrb[19].mxu1 }
 0x2cc   : > { %v2924_v3 = vsel %vm436_vm0, %v2892_v12, 0.0  ;;  %v2643_v15 = vadd.f32 %v2642_v9, %v5229_v48 }
 0x2cd   : > { %v2926_v4 = vadd.f32 %v2925_v19, %v2924_v3  ;;  %2794 = vst.msk [vmem:[%s5366_s14 + $0x18] sm:$0xff] %vm436_vm0, %v2648_v38  ;;  %v2895_v45 = vmul.f32 %v2648_v38, %v2648_v38  ;;  %v2828_v0 = vsel %vm436_vm0, %v2648_v38, 0.0 }
 0x2ce   : > { %2793 = vst.msk [vmem:[%s5366_s14 + $0x10] sm:$0xff] %vm436_vm0, %v2643_v15  ;;  %v2826_v33 = vsel %vm436_vm0, %v2643_v15, 0.0  ;;  %v2894_v49 = vmul.f32 %v2643_v15, %v2643_v15  ;;  %v2462_v24 = vpop.f32.mrb[22].mxu0 }
 0x2cf   : > { %v2827_v59 = vadd.f32 %v2826_v33, %v2825_v54  ;;  %v3273_v5 = vpop.f32.mrb[20].mxu1  ;;  %v2464_v36 = vpop.f32.mrb[23].mxu0  ;;  %v2929_v7 = vsel %vm436_vm0, %v2895_v45, 0.0 }
 0x2d0   : > { %v2927_v6 = vsel %vm436_vm0, %v2894_v49, 0.0  ;;  %v2658_v48 = vadd.f32 %v3273_v5, %v5305_v11  ;;  %v2652_v61 = vpop.f32.mrb[21].mxu1 }
 0x2d1   : > { %v2928_v21 = vadd.f32 %v2927_v6, %v2926_v4  ;;  %v2653_v44 = vadd.f32 %v2652_v61, %v5284_v34  ;;  %v2829_v20 = vadd.f32 %v2828_v0, %v2827_v59 }
 0x2d2   : > { %2796 = vst.msk [vmem:[%s5366_s14 + $0x28] sm:$0xff] %vm436_vm0, %v2658_v48  ;;  %v2897_v35 = vmul.f32 %v2658_v48, %v2658_v48  ;;  %v2832_v34 = vsel %vm436_vm0, %v2658_v48, 0.0 }
 0x2d3   : > { %2795 = vst.msk [vmem:[%s5366_s14 + $0x20] sm:$0xff] %vm436_vm0, %v2653_v44  ;;  %v2830_v23 = vsel %vm436_vm0, %v2653_v44, 0.0  ;;  %v2896_v53 = vmul.f32 %v2653_v44, %v2653_v44  ;;  %v2930_v31 = vadd.f32 %v2929_v7, %v2928_v21  ;;  %v3276_v37 = vpop.f32.mrb[22].mxu1 }
 0x2d4   : > { %v2831_v11 = vadd.f32 %v2830_v23, %v2829_v20  ;;  %v2668_v22 = vadd.f32 %v3276_v37, %v5337_v60  ;;  %v2662_v26 = vpop.f32.mrb[23].mxu1  ;;  %v2933_v40 = vsel %vm436_vm0, %v2897_v35, 0.0 }
 0x2d5   : > { %v2931_v46 = vsel %vm436_vm0, %v2896_v53, 0.0  ;;  %v2663_v39 = vadd.f32 %v2662_v26, %v5321_v63 }
 0x2d6   : > { %v2932_v30 = vadd.f32 %v2931_v46, %v2930_v31  ;;  %2798 = vst.msk [vmem:[%s5366_s14 + $0x38] sm:$0xff] %vm436_vm0, %v2668_v22  ;;  %v2833_v14 = vadd.f32 %v2832_v34, %v2831_v11  ;;  %v2899_v58 = vmul.f32 %v2668_v22, %v2668_v22  ;;  %v2836_v2 = vsel %vm436_vm0, %v2668_v22, 0.0 }
 0x2d7   : > { %2797 = vst.msk [vmem:[%s5366_s14 + $0x30] sm:$0xff] %vm436_vm0, %v2663_v39  ;;  %v2834_v13 = vsel %vm436_vm0, %v2663_v39, 0.0  ;;  %v2898_v60 = vmul.f32 %v2663_v39, %v2663_v39  ;;  %v3279_v62 = vpop.f32.mrb[24].mxu1 }
 0x2d8   : > { %v2835_v57 = vadd.f32 %v2834_v13, %v2833_v14  ;;  %v2934_v28 = vadd.f32 %v2933_v40, %v2932_v30  ;;  %v2678_v56 = vadd.f32 %v3279_v62, %v5354_v27  ;;  %v2672_v63 = vpop.f32.mrb[25].mxu1  ;;  %v2937_v18 = vsel %vm436_vm0, %v2899_v58, 0.0 }
 0x2d9   : > { %v2935_v10 = vsel %vm436_vm0, %v2898_v60, 0.0  ;;  %v2673_v8 = vadd.f32 %v2672_v63, %v5350_v50 }
 0x2da   : > { %v2936_v51 = vadd.f32 %v2935_v10, %v2934_v28  ;;  %2800 = vst.msk [vmem:[%s5366_s14 + $0x48] sm:$0xff] %vm436_vm0, %v2678_v56  ;;  %v2837_v41 = vadd.f32 %v2836_v2, %v2835_v57  ;;  %v2467_v16 = vpop.f32.mrb[24].mxu0  ;;  %v2901_v12 = vmul.f32 %v2678_v56, %v2678_v56  ;;  %v2840_v15 = vsel %vm436_vm0, %v2678_v56, 0.0 }
 0x2db   : > { %2799 = vst.msk [vmem:[%s5366_s14 + $0x40] sm:$0xff] %vm436_vm0, %v2673_v8  ;;  %v2838_v27 = vsel %vm436_vm0, %v2673_v8, 0.0  ;;  %v2900_v29 = vmul.f32 %v2673_v8, %v2673_v8  ;;  %v3282_v19 = vpop.f32.mrb[26].mxu1  ;;  %v2469_v54 = vpop.f32.mrb[25].mxu0 }
 0x2dc   : > { %v2839_v38 = vadd.f32 %v2838_v27, %v2837_v41  ;;  %v2938_v9 = vadd.f32 %v2937_v18, %v2936_v51  ;;  %v2688_v50 = vadd.f32 %v3282_v19, %v2462_v24  ;;  %v2682_v3 = vpop.f32.mrb[27].mxu1  ;;  %v2941_v59 = vsel %vm436_vm0, %v2901_v12, 0.0 }
 0x2dd   : > { %v2939_v4 = vsel %vm436_vm0, %v2900_v29, 0.0  ;;  %v2683_v45 = vadd.f32 %v2682_v3, %v5358_v25 }
 0x2de   : > { %v2940_v33 = vadd.f32 %v2939_v4, %v2938_v9  ;;  %2802 = vst.msk [vmem:[%s5366_s14 + $0x58] sm:$0xff] %vm436_vm0, %v2688_v50  ;;  %v2841_v49 = vadd.f32 %v2840_v15, %v2839_v38  ;;  %v2903_v5 = vmul.f32 %v2688_v50, %v2688_v50  ;;  %v2844_v21 = vsel %vm436_vm0, %v2688_v50, 0.0 }
 0x2df   : > { %2801 = vst.msk [vmem:[%s5366_s14 + $0x50] sm:$0xff] %vm436_vm0, %v2683_v45  ;;  %v2842_v36 = vsel %vm436_vm0, %v2683_v45, 0.0  ;;  %v2902_v24 = vmul.f32 %v2683_v45, %v2683_v45  ;;  %v3285_v0 = vpop.f32.mrb[28].mxu1 }
 0x2e0   : > { %v2843_v6 = vadd.f32 %v2842_v36, %v2841_v49  ;;  %v2942_v48 = vadd.f32 %v2941_v59, %v2940_v33  ;;  %v2692_v61 = vpop.f32.mrb[29].mxu1  ;;  %v2945_v35 = vsel %vm436_vm0, %v2903_v5, 0.0 }
 0x2e1   : > { %v2943_v25 = vsel %vm436_vm0, %v2902_v24, 0.0  ;;  %v2693_v44 = vadd.f32 %v2692_v61, %v2467_v16 }
 0x2e2   : > { %v2944_v20 = vadd.f32 %v2943_v25, %v2942_v48  ;;  %v2845_v7 = vadd.f32 %v2844_v21, %v2843_v6 }
 0x2e3   : > { %2803 = vst.msk [vmem:[%s5366_s14 + $0x60] sm:$0xff] %vm436_vm0, %v2693_v44  ;;  %v2846_v23 = vsel %vm436_vm0, %v2693_v44, 0.0  ;;  %v2904_v53 = vmul.f32 %v2693_v44, %v2693_v44  ;;  %v3288_v31 = vpop.f32.mrb[30].mxu1 }
 0x2e4   : > { %v2847_v37 = vadd.f32 %v2846_v23, %v2845_v7  ;;  %v2946_v11 = vadd.f32 %v2945_v35, %v2944_v20  ;;  %v2702_v22 = vpop.f32.mrb[31].mxu1 }
 0x2e5   : > { %v2947_v26 = vsel %vm436_vm0, %v2904_v53, 0.0 }
 0x2e6   : > { %v2948_v34 = vadd.f32 %v2947_v26, %v2946_v11  ;;  %v2472_v46 = vpop.f32.mrb[26].mxu0 }
 0x2e7   : > { %v2698_v39 = vadd.f32 %v3285_v0, %v2472_v46  ;;  %v2474_v30 = vpop.f32.mrb[27].mxu0  ;;  %v5429_v14 = vpop.f32.mrb[32].mxu1 }
 0x2e8   : > { %v2712_v40 = vpop.f32.mrb[33].mxu1 }
 0x2e9   : > { %2804 = vst.msk [vmem:[%s5366_s14 + $0x68] sm:$0xff] %vm436_vm0, %v2698_v39  ;;  %v2848_v58 = vsel %vm436_vm0, %v2698_v39, 0.0  ;;  %v2905_v13 = vmul.f32 %v2698_v39, %v2698_v39 }
 0x2ea   : > { %v2849_v60 = vadd.f32 %v2848_v58, %v2847_v37 }
 0x2eb   : > { %v2949_v62 = vsel %vm436_vm0, %v2905_v13, 0.0  ;;  %v5435_v57 = vpop.f32.mrb[34].mxu1 }
 0x2ec   : > { %v2950_v28 = vadd.f32 %v2949_v62, %v2948_v34  ;;  %v5437_v56 = vpop.f32.mrb[35].mxu1 }
 0x2ef   : > { %v5439_v63 = vpop.f32.mrb[36].mxu1 }
 0x2f0   : > { %v5441_v2 = vpop.f32.mrb[37].mxu1 }
 0x2f2   : > { %v2477_v10 = vpop.f32.mrb[28].mxu0 }
 0x2f3   : > { %v2703_v8 = vadd.f32 %v2702_v22, %v2477_v10  ;;  %v2479_v51 = vpop.f32.mrb[29].mxu0  ;;  %v5443_v41 = vpop.f32.mrb[38].mxu1 }
 0x2f4   : > { %v5445_v16 = vpop.f32.mrb[39].mxu1 }
 0x2f5   : > { %2805 = vst.msk [vmem:[%s5366_s14 + $0x70] sm:$0xff] %vm436_vm0, %v2703_v8  ;;  %v2850_v18 = vsel %vm436_vm0, %v2703_v8, 0.0  ;;  %v2906_v12 = vmul.f32 %v2703_v8, %v2703_v8 }
 0x2f6   : > { %v2851_v27 = vadd.f32 %v2850_v18, %v2849_v60 }
 0x2f7   : > { %v2951_v29 = vsel %vm436_vm0, %v2906_v12, 0.0  ;;  %v3303_v19 = vpop.f32.mrb[40].mxu1 }
 0x2f8   : > { %v2952_v54 = vadd.f32 %v2951_v29, %v2950_v28  ;;  %v5452_v38 = vadd.f32 %v3303_v19, %v5297_v17  ;;  %v2752_v9 = vpop.f32.mrb[41].mxu1 }
 0x2f9   : > { %v5455_v50 = vadd.f32 %v2752_v9, %v5270_v43 }
 0x2fa   : > { %2816 = vst.msk [vmem:[%s5366_s14 + $0xc8] sm:$0xff] %vm436_vm0, %v5452_v38 }
 0x2fb   : > { %2815 = vst.msk [vmem:[%s5366_s14 + $0xc0] sm:$0xff] %vm436_vm0, %v5455_v50  ;;  %v3306_v3 = vpop.f32.mrb[42].mxu1 }
 0x2fc   : > { %v5464_v15 = vadd.f32 %v3306_v3, %v5329_v47  ;;  %v2762_v4 = vpop.f32.mrb[43].mxu1 }
 0x2fd   : > { %v5467_v17 = vadd.f32 %v2762_v4, %v5313_v1 }
 0x2fe   : > { %2818 = vst.msk [vmem:[%s5366_s14 + $0xd8] sm:$0xff] %vm436_vm0, %v5464_v15  ;;  %v2482_v43 = vpop.f32.mrb[30].mxu0 }
 0x2ff   : > { %2817 = vst.msk [vmem:[%s5366_s14 + $0xd0] sm:$0xff] %vm436_vm0, %v5467_v17  ;;  %v2708_v45 = vadd.f32 %v3288_v31, %v2482_v43  ;;  %v3309_v33 = vpop.f32.mrb[44].mxu1  ;;  %v2484_v49 = vpop.f32.mrb[31].mxu0 }
 0x300   : > { %v5476_v47 = vadd.f32 %v3309_v33, %v5352_v42  ;;  %v2772_v59 = vpop.f32.mrb[45].mxu1 }
 0x301   : > { %2806 = vst.msk [vmem:[%s5366_s14 + $0x78] sm:$0xff] %vm436_vm0, %v2708_v45  ;;  %v2852_v1 = vsel %vm436_vm0, %v2708_v45, 0.0  ;;  %v2907_v5 = vmul.f32 %v2708_v45, %v2708_v45  ;;  %v5482_v36 = vadd.f32 %v2772_v59, %v5345_v52 }
 0x302   : > { %v2853_v24 = vadd.f32 %v2852_v1, %v2851_v27  ;;  %2820 = vst.msk [vmem:[%s5366_s14 + $0xe8] sm:$0xff] %vm436_vm0, %v5476_v47 }
 0x303   : > { %v2953_v0 = vsel %vm436_vm0, %v2907_v5, 0.0  ;;  %2819 = vst.msk [vmem:[%s5366_s14 + $0xe0] sm:$0xff] %vm436_vm0, %v5482_v36  ;;  %v3312_v42 = vpop.f32.mrb[46].mxu1 }
 0x304   : > { %v2954_v6 = vadd.f32 %v2953_v0, %v2952_v54  ;;  %v5492_v48 = vadd.f32 %v3312_v42, %v5360_v32  ;;  %v2782_v61 = vpop.f32.mrb[47].mxu1 }
 0x305   : > { %v5495_v21 = vadd.f32 %v2782_v61, %v5356_v55 }
 0x306   : > { %2822 = vst.msk [vmem:[%s5366_s14 + $0xf8] sm:$0xff] %vm436_vm0, %v5492_v48 }
 0x307   : > { %2821 = vst.msk [vmem:[%s5366_s14 + $0xf0] sm:$0xff] %vm436_vm0, %v5495_v21 }
 0x30a   : > { %v2487_v52 = vpop.f32.mrb[32].mxu0 }
 0x30b   : > { %v2713_v25 = vadd.f32 %v2712_v40, %v2487_v52  ;;  %v2489_v44 = vpop.f32.mrb[33].mxu0 }
 0x30d   : > { %2807 = vst.msk [vmem:[%s5366_s14 + $0x80] sm:$0xff] %vm436_vm0, %v2713_v25  ;;  %v2854_v20 = vsel %vm436_vm0, %v2713_v25, 0.0  ;;  %v2908_v32 = vmul.f32 %v2713_v25, %v2713_v25 }
 0x30e   : > { %v2855_v7 = vadd.f32 %v2854_v20, %v2853_v24 }
 0x30f   : > { %v2955_v35 = vsel %vm436_vm0, %v2908_v32, 0.0  ;;  %v2916_v32 = vmul.f32 %v5455_v50, %v5455_v50 }
 0x310   : > { %v2956_v55 = vadd.f32 %v2955_v35, %v2954_v6 }
 0x316   : > { %v2492_v23 = vpop.f32.mrb[34].mxu0 }
 0x317   : > { %v2718_v53 = vadd.f32 %v5429_v14, %v2492_v23  ;;  %v2494_v31 = vpop.f32.mrb[35].mxu0 }
 0x319   : > { %2808 = vst.msk [vmem:[%s5366_s14 + $0x88] sm:$0xff] %vm436_vm0, %v2718_v53  ;;  %v2856_v37 = vsel %vm436_vm0, %v2718_v53, 0.0  ;;  %v2909_v11 = vmul.f32 %v2718_v53, %v2718_v53 }
 0x31a   : > { %v2857_v22 = vadd.f32 %v2856_v37, %v2855_v7 }
 0x31b   : > { %v2957_v26 = vsel %vm436_vm0, %v2909_v11, 0.0 }
 0x31c   : > { %v2958_v34 = vadd.f32 %v2957_v26, %v2956_v55 }
 0x322   : > { %v2497_v46 = vpop.f32.mrb[36].mxu0 }
 0x323   : > { %v2723_v39 = vadd.f32 %v5437_v56, %v2497_v46  ;;  %v2499_v30 = vpop.f32.mrb[37].mxu0 }
 0x325   : > { %2809 = vst.msk [vmem:[%s5366_s14 + $0x90] sm:$0xff] %vm436_vm0, %v2723_v39  ;;  %v2858_v40 = vsel %vm436_vm0, %v2723_v39, 0.0  ;;  %v2910_v14 = vmul.f32 %v2723_v39, %v2723_v39 }
 0x326   : > { %v2859_v58 = vadd.f32 %v2858_v40, %v2857_v22 }
 0x327   : > { %v2959_v13 = vsel %vm436_vm0, %v2910_v14, 0.0 }
 0x328   : > { %v2960_v60 = vadd.f32 %v2959_v13, %v2958_v34 }
 0x32e   : > { %v2502_v62 = vpop.f32.mrb[38].mxu0 }
 0x32f   : > { %v2728_v28 = vadd.f32 %v5435_v57, %v2502_v62  ;;  %v2504_v10 = vpop.f32.mrb[39].mxu0 }
 0x331   : > { %2810 = vst.msk [vmem:[%s5366_s14 + $0x98] sm:$0xff] %vm436_vm0, %v2728_v28  ;;  %v2860_v8 = vsel %vm436_vm0, %v2728_v28, 0.0  ;;  %v2911_v56 = vmul.f32 %v2728_v28, %v2728_v28 }
 0x332   : > { %v2861_v51 = vadd.f32 %v2860_v8, %v2859_v58 }
 0x333   : > { %v2961_v18 = vsel %vm436_vm0, %v2911_v56, 0.0 }
 0x334   : > { %v2962_v12 = vadd.f32 %v2961_v18, %v2960_v60 }
 0x33a   : > { %v2507_v27 = vpop.f32.mrb[40].mxu0 }
 0x33b   : > { %v2733_v29 = vadd.f32 %v5441_v2, %v2507_v27  ;;  %v2509_v19 = vpop.f32.mrb[41].mxu0 }
 0x33d   : > { %2811 = vst.msk [vmem:[%s5366_s14 + $0xa0] sm:$0xff] %vm436_vm0, %v2733_v29  ;;  %v2862_v54 = vsel %vm436_vm0, %v2733_v29, 0.0  ;;  %v2912_v57 = vmul.f32 %v2733_v29, %v2733_v29 }
 0x33e   : > { %v2863_v9 = vadd.f32 %v2862_v54, %v2861_v51 }
 0x33f   : > { %v2963_v3 = vsel %vm436_vm0, %v2912_v57, 0.0 }
 0x340   : > { %v2964_v4 = vadd.f32 %v2963_v3, %v2962_v12 }
 0x346   : > { %v2512_v43 = vpop.f32.mrb[42].mxu0 }
 0x347   : > { %v2738_v45 = vadd.f32 %v5439_v63, %v2512_v43  ;;  %v2514_v33 = vpop.f32.mrb[43].mxu0 }
 0x349   : > { %2812 = vst.msk [vmem:[%s5366_s14 + $0xa8] sm:$0xff] %vm436_vm0, %v2738_v45  ;;  %v2864_v2 = vsel %vm436_vm0, %v2738_v45, 0.0  ;;  %v2913_v49 = vmul.f32 %v2738_v45, %v2738_v45 }
 0x34a   : > { %v2865_v59 = vadd.f32 %v2864_v2, %v2863_v9 }
 0x34b   : > { %v2965_v1 = vsel %vm436_vm0, %v2913_v49, 0.0 }
 0x34c   : > { %v2966_v5 = vadd.f32 %v2965_v1, %v2964_v4 }
 0x352   : > { %v2517_v24 = vpop.f32.mrb[44].mxu0 }
 0x353   : > { %v2743_v0 = vadd.f32 %v5445_v16, %v2517_v24  ;;  %v2519_v42 = vpop.f32.mrb[45].mxu0 }
 0x355   : > { %2813 = vst.msk [vmem:[%s5366_s14 + $0xb0] sm:$0xff] %vm436_vm0, %v2743_v0  ;;  %v2866_v63 = vsel %vm436_vm0, %v2743_v0, 0.0  ;;  %v2914_v6 = vmul.f32 %v2743_v0, %v2743_v0 }
 0x356   : > { %v2867_v61 = vadd.f32 %v2866_v63, %v2865_v59 }
 0x357   : > { %v2967_v52 = vsel %vm436_vm0, %v2914_v6, 0.0 }
 0x358   : > { %v2968_v25 = vadd.f32 %v2967_v52, %v2966_v5 }
 0x35e   : > { %v2522_v44 = vpop.f32.mrb[46].mxu0 }
 0x35f   : > { %v2748_v16 = vadd.f32 %v5443_v41, %v2522_v44  ;;  %v2524_v20 = vpop.f32.mrb[47].mxu0 }
 0x361   : > { %2814 = vst.msk [vmem:[%s5366_s14 + $0xb8] sm:$0xff] %vm436_vm0, %v2748_v16  ;;  %v2868_v7 = vsel %vm436_vm0, %v2748_v16, 0.0  ;;  %v2915_v35 = vmul.f32 %v2748_v16, %v2748_v16 }
 0x362   : > { %v2869_v55 = vadd.f32 %v2868_v7, %v2867_v61 }
 0x363   : > { %3621 = shalt.err (!%p3618_p13)
}
 0x364   : > { %s3622_s15 = scalar_lea.hbm %s5542_s29, 4096  ;;  %s3626_s13 = scalar_lea.hbm %s5669_s4, 8192 }
 0x365   : > { %p3623_p0 = scmp.ne.s32.totalorder %s5542_s29, %s3622_s15  ;;  %p3627_p9 = scmp.lt.u32.totalorder %s5542_s29, %s5669_s4 }
 0x366   : > { %p3628_p12 = scmp.lt.u32.totalorder %s3626_s13, %s3622_s15  ;;  %p3630_p1 = scmp.lt.u32.totalorder %s3622_s15, %s5542_s29 }
 0x367   : > { %p3624_p5 = pnand %p3623_p0, %p3907_p6 }
 0x368   : > { %p3629_p2 = por %p3628_p12, %p3627_p9 }
 0x369   : > { %p3625_p11 = pneg %p3624_p5 }
 0x36a   : > { %p3631_p4 = por %p3630_p1, %p3629_p2 }
 0x36c   : > { %p3632_p8 = pnand %p3631_p4, %p3625_p11 }
 0x36e   : > { %3635 = shalt.err (!%p3632_p8)
}
 0x36f   : > { %s3728_s28 = smov 128   ;;  %s3729_s10 = smov 8   ;;  %v2917_v41 = vmul.f32 %v5452_v38, %v5452_v38  ;;  %v2870_v23 = vsel %vm436_vm0, %v5455_v50, 0.0  ;;  %v2969_v53 = vsel %vm436_vm0, %v2915_v35, 0.0  ;;  %v2872_v11 = vsel %vm436_vm0, %v5452_v38, 0.0 }
 0x370   : > { %3415 = dma.vmem_to_hbm [thread:$0]  (%p3907_p6), %s5544_s30, 4096, %s5542_s29, %s2997_s12, %s3728_s28, %s3728_s28, %s3729_s10   ;;  %v2871_v31 = vadd.f32 %v2870_v23, %v2869_v55  ;;  %v2970_v37 = vadd.f32 %v2969_v53, %v2968_v25  ;;  %v2971_v22 = vsel %vm436_vm0, %v2916_v32, 0.0  ;;  %v2918_v26 = vmul.f32 %v5467_v17, %v5467_v17 }
 0x371   : > { %v2973_v39 = vsel %vm436_vm0, %v2917_v41, 0.0  ;;  %v2919_v30 = vmul.f32 %v5464_v15, %v5464_v15  ;;  %v2874_v50 = vsel %vm436_vm0, %v5467_v17, 0.0  ;;  %v2876_v38 = vsel %vm436_vm0, %v5464_v15, 0.0  ;;  %s3177_s30 = sshll.u32 %s3958_s17, 1  ;;  %s3216_s29 = sshll.u32 %s3782_s22, 5 }
 0x372   : > { %v2873_v34 = vadd.f32 %v2872_v11, %v2871_v31  ;;  %v2972_v46 = vadd.f32 %v2971_v22, %v2970_v37  ;;  %v2975_v58 = vsel %vm436_vm0, %v2918_v26, 0.0  ;;  %v2920_v13 = vmul.f32 %v5482_v36, %v5482_v36  ;;  %s293_s12 = scalar_lea.vmem [#allocation13], %s3177_s30  ;;  %s5620_s9 = scalar_lea.hbm %s5670_s5, %s3216_s29 }
 0x373   : > { %v2977_v28 = vsel %vm436_vm0, %v2919_v30, 0.0  ;;  %v2921_v10 = vmul.f32 %v5476_v47, %v5476_v47  ;;  %v2878_v17 = vsel %vm436_vm0, %v5482_v36, 0.0  ;;  %v2880_v15 = vsel %vm436_vm0, %v5476_v47, 0.0  ;;  %s3031_s23 = sshll.u32 %s293_s12, 4  ;;  %s3002_s15 = scalar_lea.sflag [#allocation14], %s3958_s17  ;;  %s5622_s23 = int_to_ptr.vmem [resolvable:$true] %s3031_s23 }
 0x374   : > { %v2875_v40 = vadd.f32 %v2874_v50, %v2873_v34  ;;  %v2974_v14 = vadd.f32 %v2973_v39, %v2972_v46  ;;  %v2979_v51 = vsel %vm436_vm0, %v2920_v13, 0.0  ;;  %v2922_v18 = vmul.f32 %v5495_v21, %v5495_v21  ;;  %s3636_s22 = scalar_lea.vmem %s5622_s23, 32  ;;  %s3730_s24 = smov [#allocation13]  }
 0x375   : > { %v2981_v29 = vsel %vm436_vm0, %v2921_v10, 0.0  ;;  %v2923_v19 = vmul.f32 %v5492_v48, %v5492_v48  ;;  %v2882_v36 = vsel %vm436_vm0, %v5495_v21, 0.0  ;;  %v2884_v47 = vsel %vm436_vm0, %v5492_v48, 0.0  ;;  %p3637_p3 = scmp.ne.s32.totalorder %s5622_s23, %s3636_s22  ;;  %s3640_s26 = sshll.u32 %s3730_s24, 4  ;;  %s3641_s26 = int_to_ptr.vmem [resolvable:$false] %s3640_s26 }
 0x376   : > { %v2877_v60 = vadd.f32 %v2876_v38, %v2875_v40  ;;  %v2976_v62 = vadd.f32 %v2975_v58, %v2974_v14  ;;  %v2983_v9 = vsel %vm436_vm0, %v2922_v18, 0.0  ;;  %vm2994_vm6 = vcmask 254976   ;;  %s3642_s13 = scalar_lea.vmem %s3641_s26, 64  ;;  %p3643_p13 = scmp.lt.s32.totalorder %s5622_s23, %s3641_s26 }
 0x377   : > { %v2985_v43 = vsel %vm436_vm0, %v2923_v19, 0.0  ;;  %p3638_p7 = pnand %p3637_p3, %p3907_p6  ;;  %p3644_p0 = scmp.lt.s32.totalorder %s3642_s13, %s3636_s22 }
 0x378   : > { %v2879_v8 = vadd.f32 %v2878_v17, %v2877_v60  ;;  %v2978_v56 = vadd.f32 %v2977_v28, %v2976_v62 }
 0x379   : > { %p3639_p10 = pneg %p3638_p7  ;;  %p3645_p5 = por %p3644_p0, %p3643_p13 }
 0x37a   : > { %v2881_v12 = vadd.f32 %v2880_v15, %v2879_v8  ;;  %v2980_v27 = vadd.f32 %v2979_v51, %v2978_v56 }
 0x37b   : > { %p3646_p11 = pnand %p3645_p5, %p3639_p10 }
 0x37c   : > { %v2883_v54 = vadd.f32 %v2882_v36, %v2881_v12  ;;  %v2982_v57 = vadd.f32 %v2981_v29, %v2980_v27 }
 0x37e   : > { %v2984_v3 = vadd.f32 %v2983_v9, %v2982_v57  ;;  %v2885_v4 = vadd.f32 %v2884_v47, %v2883_v54 }
 0x380   : > { %v2886_v45 = vrot.slane %v2885_v4, 4  ;;  %v2986_v33 = vadd.f32 %v2985_v43, %v2984_v3 }
 0x382   : > { %v2887_v2 = vadd.f32 %v2886_v45, %v2885_v4  ;;  %v2987_v49 = vrot.slane %v2986_v33, 4 }
 0x384   : > { %v2888_v59 = vrot.slane %v2887_v2, 2  ;;  %v2988_v1 = vadd.f32 %v2987_v49, %v2986_v33 }
 0x386   : > { %v2889_v21 = vadd.f32 %v2888_v59, %v2887_v2  ;;  %v2989_v5 = vrot.slane %v2988_v1, 2 }
 0x388   : > { %v2890_v24 = vrot.slane %v2889_v21, 1  ;;  %v2990_v48 = vadd.f32 %v2989_v5, %v2988_v1 }
 0x38a   : > { %v2991_v0 = vrot.slane %v2990_v48, 1  ;;  %v2891_v42 = vadd.f32 %v2890_v24, %v2889_v21 }
 0x38c   : > { %v2992_v63 = vadd.f32 %v2991_v0, %v2990_v48 }
 0x38e   : > { %v2993_v6 = vsel %vm539_vm1, %v2891_v42, %v2992_v63 }
 0x38f   : > { %2995 = vst.msk [vmem:[%s293_s12] sm:$0x3] %vm2994_vm6, %v2993_v6 }
 0x390   : > { %3649 = shalt.err (!%p3646_p11)
}
 0x391   : > { %s3650_s17 = scalar_lea.hbm %s5620_s9, 32  ;;  %s3654_s28 = scalar_lea.hbm %s5670_s5, 64 }
 0x392   : > { %p3651_p9 = scmp.ne.s32.totalorder %s5620_s9, %s3650_s17  ;;  %p3655_p1 = scmp.lt.u32.totalorder %s5620_s9, %s5670_s5 }
 0x393   : > { %p3656_p4 = scmp.lt.u32.totalorder %s3654_s28, %s3650_s17  ;;  %p3658_p3 = scmp.lt.u32.totalorder %s3650_s17, %s5620_s9 }
 0x394   : > { %p3652_p12 = pnand %p3651_p9, %p3907_p6 }
 0x395   : > { %p3657_p8 = por %p3656_p4, %p3655_p1 }
 0x396   : > { %p3653_p2 = pneg %p3652_p12 }
 0x397   : > { %p3659_p7 = por %p3658_p3, %p3657_p8 }
 0x399   : > { %p3660_p10 = pnand %p3659_p7, %p3653_p2 }
 0x39b   : > { %3663 = shalt.err (!%p3660_p10)
}
 0x39c   : > { %3416 = dma.vmem_to_hbm [thread:$0]  (%p3907_p6), %s5622_s23, 32, %s5620_s9, %s3002_s15  }
 0x39d PF: > { %s3043_s29 = sand.u32 1, %s3702_s18   ;;  %p5688_p13 = scmp.ne.s32.totalorder %s5675_s25, 0 }
 0x39e   : > { %p5689_p0 = scmp.ge.s32.totalorder %s3714_s21, 2  ;;  %s3044_s12 = scalar_lea.sflag [#allocation6], %s3043_s29 }
 0x3a0   : > { %p3434_p5 = pnand %p5689_p0, %p5688_p13 }
 0x3a2   : > { %3693 = dma.done.wait (!%p3434_p5), %s3044_s12, 4096  }
 0x3a3   : > { %3695 = vsyncadd (!%p3434_p5), %s3044_s12, 4294963200  ;;  %s3053_s7 = scalar_lea.sflag [#allocation14], %s3043_s29 }
 0x3a4   : > { %3697 = dma.done.wait (!%p3434_p5), %s3053_s7, 32  }
 0x3a5   : > { %3699 = vsyncadd (!%p3434_p5), %s3053_s7, 4294967264  ;;  %p24_p6 = scmp.ge.s32.totalorder %s3893_s16, 4   ;;  %s5690_s18 = smov %s3706_s19 }
 0x3a6   : > { %s5691_s19 = smov %s3710_s20  ;;  %s5692_s20 = smov %s3903_s27 }
 0x3a7   : > { %s5693_s21 = smov %s3893_s16  ;;  %26 = sbr.rel (!%p24_p6) target bundleno = 9 (0x9), region = 113 }
 0x3ae   :  { %3058 = vsyncpa [#allocation5], 1 }
 0x3af   :  { %3060 = vsyncpa [#allocation5 + $0x1], 1 }
 0x3b0   :  { %3061 = vsyncpa [#allocation8], 1 }
 0x3b1   :  { %3062 = vsyncpa [#allocation11], 1 }
 0x3b2   :  { %3063 = vsyncpa [#allocation6], 1 }
 0x3b3   :  { %3065 = vsyncpa [#allocation6 + $0x1], 1 }
 0x3b4   :  { %3066 = vsyncpa [#allocation14], 1 }
 0x3b5   :  { %3068 = vsyncpa [#allocation14 + $0x1], 1 }

</bundles_post_ra>
